<compile_context>
chip_gen: v6e
topology: v6e:2x2x1
jax: 0.10.0
libtpu: 0.0.40
codegen_flags: <defaults>
</compile_context>

<pallas_src>
import numpy as np
import jax
import jax.numpy as jnp
from jax.experimental import pallas as pl
from jax.experimental.pallas import tpu as pltpu


# ----------------------------------------------------------------------------
# Fused kernel: conv1 + relu + conv2 + relu + fc1 + relu, one image per step.
# ----------------------------------------------------------------------------
def _fused_cnn_kernel(xp_ref, k1_ref, b1_ref, k2_ref, b2_ref, wf_ref, bfc_ref,
                      o_ref, y1p_ref):
    h = y1p_ref.shape[0] - 2            # image height
    wp16 = y1p_ref.shape[1]             # (W+2)*16

    # ---- conv1 + bias + relu: (h, (W+2)*Cin) -> (h, (W+2)*16) --------------
    # bf16 operands, f32 accumulation; width-pad column blocks of k1/b1 are
    # zero so the output lands directly in padded width coordinates.
    acc1 = jnp.dot(xp_ref[0:h, :], k1_ref[0], preferred_element_type=jnp.float32)
    acc1 += jnp.dot(xp_ref[1:h + 1, :], k1_ref[1], preferred_element_type=jnp.float32)
    acc1 += jnp.dot(xp_ref[2:h + 2, :], k1_ref[2], preferred_element_type=jnp.float32)
    y1 = jnp.maximum(acc1 + b1_ref[...], 0.0)

    # ---- height-padded copy in VMEM: only the 2 boundary rows need zeroing -
    y1p_ref[0:1, :] = jnp.zeros((1, wp16), jnp.float32)
    y1p_ref[h + 1:h + 2, :] = jnp.zeros((1, wp16), jnp.float32)
    y1p_ref[1:h + 1, :] = y1

    # ---- conv2 + bias + relu: (h, (W+2)*16) -> (h, W*32) -------------------
    acc2 = jnp.dot(y1p_ref[0:h, :].astype(jnp.bfloat16), k2_ref[0],
                   preferred_element_type=jnp.float32)
    acc2 += jnp.dot(y1p_ref[1:h + 1, :].astype(jnp.bfloat16), k2_ref[1],
                    preferred_element_type=jnp.float32)
    acc2 += jnp.dot(y1p_ref[2:h + 2, :].astype(jnp.bfloat16), k2_ref[2],
                    preferred_element_type=jnp.float32)
    y2 = jnp.maximum(acc2 + b2_ref[...], 0.0)           # (h, W*32) f32

    # ---- fc1 + relu, fused: out = relu(sum_h y2[h] @ wf[h] + b) ------------
    # wf_ref is the (h, W*32, 128) bf16 fc weight resident in VMEM; the
    # (c,h,w)-flatten permutation of torch's Linear is pre-folded into it.
    acc = bfc_ref[...]                                   # (1, 128) f32
    for hh in range(h):                                  # static unroll
        acc = acc + jnp.dot(y2[hh:hh + 1, :].astype(jnp.bfloat16), wf_ref[hh],
                            preferred_element_type=jnp.float32)
    o_ref[...] = jnp.maximum(acc, 0.0)


def fused_cnn(xp, k1, b1row, k2, b2row, wf3, bfrow):
    """xp: (B, H+2, (W+2)*Cin) zero-padded, lane-flattened NHWC input (bf16).
    Returns the fc1 output as (B, 1, 128) float32."""
    B, hp, wpc = xp.shape
    h = hp - 2
    wp16 = k1.shape[2]          # (W+2)*16
    w32 = k2.shape[2]           # W*32
    nfc = wf3.shape[2]          # 128
    w = w32 // 32
    cin = wpc // (w + 2)

    # True flops (not counting the zero blocks of the folded weights).
    flops = 2 * B * h * w * 9 * (cin * 16 + 16 * 32) + 2 * B * (h * w * 32) * nfc
    bytes_accessed = (2 * (xp.size + k1.size + k2.size + wf3.size)       # bf16
                      + 4 * (b1row.size + b2row.size + bfrow.size)       # f32
                      + 4 * B * nfc)                                     # out

    return pl.pallas_call(
        _fused_cnn_kernel,
        out_shape=jax.ShapeDtypeStruct((B, 1, nfc), jnp.float32),
        grid_spec=pltpu.PrefetchScalarGridSpec(
            num_scalar_prefetch=0,
            grid=(B,),                                    # one image per step
            in_specs=[
                pl.BlockSpec((None, hp, wpc), lambda b: (b, 0, 0)),   # xp
                pl.BlockSpec((3, wpc, wp16), lambda b: (0, 0, 0)),    # k1 (bf16)
                pl.BlockSpec((1, wp16), lambda b: (0, 0)),            # b1 row
                pl.BlockSpec((3, wp16, w32), lambda b: (0, 0, 0)),    # k2 (bf16)
                pl.BlockSpec((1, w32), lambda b: (0, 0)),             # b2 row
                pl.BlockSpec((h, w32, nfc), lambda b: (0, 0, 0)),     # wf (bf16, resident)
                pl.BlockSpec((1, nfc), lambda b: (0, 0)),             # fc bias
            ],
            out_specs=pl.BlockSpec((None, 1, nfc), lambda b: (b, 0, 0)),
            scratch_shapes=[pltpu.VMEM((hp, wp16), jnp.float32)],      # padded y1
        ),
        compiler_params=pltpu.CompilerParams(
            dimension_semantics=("parallel",)),           # v7x: one image per TC
        cost_estimate=pl.CostEstimate(flops=flops, transcendentals=0,
                                      bytes_accessed=bytes_accessed),
    )(xp, k1, b1row, k2, b2row, wf3, bfrow)


# ----------------------------------------------------------------------------
# Parameters (deterministic, PyTorch-style uniform(-1/sqrt(fan_in), ...)).
# ----------------------------------------------------------------------------
def init_params(key, cin, h, w):
    ks = jax.random.split(key, 6)

    def u(k, shape, fan_in):
        bound = 1.0 / float(fan_in) ** 0.5
        return jax.random.uniform(k, shape, jnp.float32, -bound, bound)

    return dict(
        w1=u(ks[0], (16, cin, 3, 3), cin * 9),
        b1=u(ks[1], (16,), cin * 9),
        w2=u(ks[2], (32, 16, 3, 3), 16 * 9),
        b2=u(ks[3], (32,), 16 * 9),
        wf=u(ks[4], (128, 32 * h * w), 32 * h * w),      # torch Linear: (out, in)
        bf=u(ks[5], (128,), 32 * h * w),
    )


def _fold_conv_weight(w_oihw, img_w, pad_output):
    """(Cout, Cin, 3, 3) -> (3, (img_w+2)*Cin, out_cols*Cout) width-folded weights.

    K[dy][wi*Cin + ci, wo_col*Cout + co] = w[co, ci, dy, dx] with wi = wo + dx
    and wo_col = wo (+1 if pad_output).  If pad_output, the wo_col = 0 and
    img_w+1 column blocks stay zero so the conv output lands directly in
    padded width coordinates (ready for the next 3x3 conv)."""
    wk = np.asarray(jax.device_get(w_oihw), np.float32)
    cout, cin = wk.shape[0], wk.shape[1]
    out_off = 1 if pad_output else 0
    out_cols = img_w + 2 if pad_output else img_w
    folded = np.zeros((3, (img_w + 2) * cin, out_cols * cout), np.float32)
    for dy in range(3):
        for wo in range(img_w):
            for dx in range(3):
                wi = wo + dx
                oc = wo + out_off
                folded[dy, wi * cin:(wi + 1) * cin,
                       oc * cout:(oc + 1) * cout] = wk[:, :, dy, dx].T
    return folded


def prepare_params(params, h, w):
    """One-time, init-side layout work (hoisted out of the forward path)."""
    k1 = _fold_conv_weight(params["w1"], w, pad_output=True)    # (3, (w+2)*Cin, (w+2)*16)
    k2 = _fold_conv_weight(params["w2"], w, pad_output=False)   # (3, (w+2)*16, w*32)

    b1 = np.asarray(jax.device_get(params["b1"]), np.float32)
    b1row = np.zeros((1, (w + 2) * 16), np.float32)
    b1row[0, 16:(w + 1) * 16] = np.tile(b1, w)                  # zeros on pad columns
    b2 = np.asarray(jax.device_get(params["b2"]), np.float32)
    b2row = np.tile(b2, w).reshape(1, w * 32)

    # fc weight: fold torch's NCHW flatten order (c, h, w) into a one-time
    # permutation so the kernel can consume the (h, w, c)-ordered conv output
    # directly; shape (h, w*32, 128), bf16.
    wf = np.asarray(jax.device_get(params["wf"]), np.float32)   # (128, 32*h*w)
    wf3 = (wf.reshape(128, 32, h, w).transpose(2, 3, 1, 0)      # (h, w, 32, 128)
             .reshape(h, w * 32, 128))

    return dict(
        k1=jnp.asarray(k1, jnp.bfloat16),
        b1row=jnp.asarray(b1row),
        k2=jnp.asarray(k2, jnp.bfloat16),
        b2row=jnp.asarray(b2row),
        wf=jnp.asarray(wf3, jnp.bfloat16),
        bf=jnp.asarray(jax.device_get(params["bf"]), np.float32).reshape(1, 128),
    )


# ----------------------------------------------------------------------------
# Forward pass.
# ----------------------------------------------------------------------------
def simple_cnn_forward(prepped, x_nchw):
    B, C, H, W = x_nchw.shape
    # Tiny layout glue on the ~4 KiB input only: NCHW -> NHWC, zero-pad H/W by
    # 1, flatten (W+2, C) into lanes, cast to bf16 for the MXU bf16 path.
    x = jnp.transpose(x_nchw, (0, 2, 3, 1))
    xp = jnp.pad(x, ((0, 0), (1, 1), (1, 1), (0, 0)))
    xp = xp.reshape(B, H + 2, (W + 2) * C).astype(jnp.bfloat16)

    out = fused_cnn(xp, prepped["k1"], prepped["b1row"],
                    prepped["k2"], prepped["b2row"],
                    prepped["wf"], prepped["bf"])               # (B, 1, 128)
    return out.reshape(B, 128)


# ----------------------------------------------------------------------------
# Pure-JAX reference (same math, f32 HIGHEST precision) for a sanity check.
# ----------------------------------------------------------------------------
def reference_forward(params, x_nchw):
    def conv(x, w, b):
        y = jax.lax.conv_general_dilated(
            x, w, window_strides=(1, 1), padding="SAME",
            dimension_numbers=("NCHW", "OIHW", "NCHW"),
            precision=jax.lax.Precision.HIGHEST)
        return jnp.maximum(y + b[None, :, None, None], 0.0)

    B = x_nchw.shape[0]
    y = conv(x_nchw, params["w1"], params["b1"])
    y = conv(y, params["w2"], params["b2"])
    y = y.reshape(B, -1)
    y = jnp.dot(y, params["wf"].T, precision=jax.lax.Precision.HIGHEST) + params["bf"]
    return jnp.maximum(y, 0.0)


if __name__ == "__main__":
    key = jax.random.PRNGKey(0)
    kx, kp = jax.random.split(key)

    B, C, H, W = 2, 4, 16, 16
    x = jax.random.normal(kx, (B, C, H, W), jnp.float32)
    params = init_params(kp, C, H, W)
    prepped = prepare_params(params, H, W)      # one-time layout work

    fwd = jax.jit(simple_cnn_forward)
    out = jax.block_until_ready(fwd(prepped, x))
    assert out.shape == (B, 128) and out.dtype == jnp.float32

    ref = jax.block_until_ready(jax.jit(reference_forward)(params, x))
    max_err = float(jnp.max(jnp.abs(out - ref)))
    # Kernel runs the whole network on the MXU bf16 path (f32 accumulation);
    # expected deviation from the f32/HIGHEST reference is ~1e-3.
    assert jnp.allclose(out, ref, rtol=2e-2, atol=2e-2), max_err

    print("KERNEL_OK")
</pallas_src>

<mosaic_0001>
module attributes {stable_mosaic.version = 11 : i64} {
  func.func @_fused_cnn_kernel(%arg0: i32, %arg1: memref<1x18x72xbf16, #tpu.memory_space<vmem>>, %arg2: memref<3x72x288xbf16, #tpu.memory_space<vmem>>, %arg3: memref<1x288xf32, #tpu.memory_space<vmem>>, %arg4: memref<3x288x512xbf16, #tpu.memory_space<vmem>>, %arg5: memref<1x512xf32, #tpu.memory_space<vmem>>, %arg6: memref<16x512x128xbf16, #tpu.memory_space<vmem>>, %arg7: memref<1x128xf32, #tpu.memory_space<vmem>>, %arg8: memref<1x1x128xf32, #tpu.memory_space<vmem>>, %arg9: memref<18x288xf32, #tpu.memory_space<vmem>>) attributes {dimension_semantics = [#tpu.dimension_semantics<parallel>], iteration_bounds = array<i64: 2>, scalar_prefetch = 0 : i64, scratch_operands = 1 : i64, tpu.core_type = #tpu.core_type<tc>, window_params = [{transform_indices = @transform_0, window_bounds = array<i64: 1, 18, 72>}, {pipeline_mode = #tpu.pipeline_mode<synchronous>, transform_indices = @transform_1, window_bounds = array<i64: 3, 72, 288>}, {pipeline_mode = #tpu.pipeline_mode<synchronous>, transform_indices = @transform_2, window_bounds = array<i64: 1, 288>}, {pipeline_mode = #tpu.pipeline_mode<synchronous>, transform_indices = @transform_3, window_bounds = array<i64: 3, 288, 512>}, {pipeline_mode = #tpu.pipeline_mode<synchronous>, transform_indices = @transform_4, window_bounds = array<i64: 1, 512>}, {pipeline_mode = #tpu.pipeline_mode<synchronous>, transform_indices = @transform_5, window_bounds = array<i64: 16, 512, 128>}, {pipeline_mode = #tpu.pipeline_mode<synchronous>, transform_indices = @transform_6, window_bounds = array<i64: 1, 128>}, {transform_indices = @transform_7, window_bounds = array<i64: 1, 1, 128>}]} {
    %c0 = arith.constant 0 : index
    %c0_0 = arith.constant 0 : index
    %c0_1 = arith.constant 0 : index
    %0 = vector.load %arg1[%c0, %c0_0, %c0_1] : memref<1x18x72xbf16, #tpu.memory_space<vmem>>, vector<1x16x72xbf16>
    %1 = vector.shape_cast %0 : vector<1x16x72xbf16> to vector<16x72xbf16>
    %c0_2 = arith.constant 0 : index
    %c0_3 = arith.constant 0 : index
    %c0_4 = arith.constant 0 : index
    %2 = vector.load %arg2[%c0_2, %c0_3, %c0_4] : memref<3x72x288xbf16, #tpu.memory_space<vmem>>, vector<1x72x288xbf16>
    %3 = vector.shape_cast %2 : vector<1x72x288xbf16> to vector<72x288xbf16>
    %cst = arith.constant dense<0.000000e+00> : vector<16x288xf32>
    %4 = tpu.matmul %1, %3, %cst {dimension_numbers = #tpu.dot_dimension_numbers<[1], [0], [0], [1], [0, 0, 1, 1], [], []>} : vector<16x72xbf16>, vector<72x288xbf16>, vector<16x288xf32> -> vector<16x288xf32>
    %c0_5 = arith.constant 0 : index
    %c1 = arith.constant 1 : index
    %c0_6 = arith.constant 0 : index
    %5 = vector.load %arg1[%c0_5, %c1, %c0_6] : memref<1x18x72xbf16, #tpu.memory_space<vmem>>, vector<1x16x72xbf16>
    %6 = vector.shape_cast %5 : vector<1x16x72xbf16> to vector<16x72xbf16>
    %c1_7 = arith.constant 1 : index
    %c0_8 = arith.constant 0 : index
    %c0_9 = arith.constant 0 : index
    %7 = vector.load %arg2[%c1_7, %c0_8, %c0_9] : memref<3x72x288xbf16, #tpu.memory_space<vmem>>, vector<1x72x288xbf16>
    %8 = vector.shape_cast %7 : vector<1x72x288xbf16> to vector<72x288xbf16>
    %cst_10 = arith.constant dense<0.000000e+00> : vector<16x288xf32>
    %9 = tpu.matmul %6, %8, %cst_10 {dimension_numbers = #tpu.dot_dimension_numbers<[1], [0], [0], [1], [0, 0, 1, 1], [], []>} : vector<16x72xbf16>, vector<72x288xbf16>, vector<16x288xf32> -> vector<16x288xf32>
    %10 = arith.addf %4, %9 : vector<16x288xf32>
    %c0_11 = arith.constant 0 : index
    %c2 = arith.constant 2 : index
    %c0_12 = arith.constant 0 : index
    %11 = vector.load %arg1[%c0_11, %c2, %c0_12] : memref<1x18x72xbf16, #tpu.memory_space<vmem>>, vector<1x16x72xbf16>
    %12 = vector.shape_cast %11 : vector<1x16x72xbf16> to vector<16x72xbf16>
    %c2_13 = arith.constant 2 : index
    %c0_14 = arith.constant 0 : index
    %c0_15 = arith.constant 0 : index
    %13 = vector.load %arg2[%c2_13, %c0_14, %c0_15] : memref<3x72x288xbf16, #tpu.memory_space<vmem>>, vector<1x72x288xbf16>
    %14 = vector.shape_cast %13 : vector<1x72x288xbf16> to vector<72x288xbf16>
    %cst_16 = arith.constant dense<0.000000e+00> : vector<16x288xf32>
    %15 = tpu.matmul %12, %14, %cst_16 {dimension_numbers = #tpu.dot_dimension_numbers<[1], [0], [0], [1], [0, 0, 1, 1], [], []>} : vector<16x72xbf16>, vector<72x288xbf16>, vector<16x288xf32> -> vector<16x288xf32>
    %16 = arith.addf %10, %15 : vector<16x288xf32>
    %c0_17 = arith.constant 0 : index
    %c0_18 = arith.constant 0 : index
    %17 = vector.load %arg3[%c0_17, %c0_18] : memref<1x288xf32, #tpu.memory_space<vmem>>, vector<1x288xf32>
    %18 = vector.broadcast %17 : vector<1x288xf32> to vector<16x288xf32>
    %19 = arith.addf %16, %18 : vector<16x288xf32>
    %cst_19 = arith.constant 0.000000e+00 : f32
    %20 = vector.broadcast %cst_19 : f32 to vector<16x288xf32>
    %21 = arith.maximumf %19, %20 : vector<16x288xf32>
    %cst_20 = arith.constant 0.000000e+00 : f32
    %22 = vector.broadcast %cst_20 : f32 to vector<1x288xf32>
    %c0_21 = arith.constant 0 : index
    %c0_22 = arith.constant 0 : index
    %23 = vector.load %arg9[%c0_21, %c0_22] : memref<18x288xf32, #tpu.memory_space<vmem>>, vector<1x288xf32>
    tpu.vector_store %arg9[%c0_21, %c0_22], %22 {strides = array<i32>} : memref<18x288xf32, #tpu.memory_space<vmem>>, vector<1x288xf32>,
    %cst_23 = arith.constant 0.000000e+00 : f32
    %24 = vector.broadcast %cst_23 : f32 to vector<1x288xf32>
    %c17 = arith.constant 17 : index
    %c0_24 = arith.constant 0 : index
    %25 = vector.load %arg9[%c17, %c0_24] : memref<18x288xf32, #tpu.memory_space<vmem>>, vector<1x288xf32>
    tpu.vector_store %arg9[%c17, %c0_24], %24 {strides = array<i32>} : memref<18x288xf32, #tpu.memory_space<vmem>>, vector<1x288xf32>,
    %c1_25 = arith.constant 1 : index
    %c0_26 = arith.constant 0 : index
    %26 = vector.load %arg9[%c1_25, %c0_26] : memref<18x288xf32, #tpu.memory_space<vmem>>, vector<16x288xf32>
    tpu.vector_store %arg9[%c1_25, %c0_26], %21 {strides = array<i32>} : memref<18x288xf32, #tpu.memory_space<vmem>>, vector<16x288xf32>,
    %c0_27 = arith.constant 0 : index
    %c0_28 = arith.constant 0 : index
    %27 = vector.load %arg9[%c0_27, %c0_28] : memref<18x288xf32, #tpu.memory_space<vmem>>, vector<16x288xf32>
    %28 = arith.truncf %27 : vector<16x288xf32> to vector<16x288xbf16>
    %c0_29 = arith.constant 0 : index
    %c0_30 = arith.constant 0 : index
    %c0_31 = arith.constant 0 : index
    %29 = vector.load %arg4[%c0_29, %c0_30, %c0_31] : memref<3x288x512xbf16, #tpu.memory_space<vmem>>, vector<1x288x512xbf16>
    %30 = vector.shape_cast %29 : vector<1x288x512xbf16> to vector<288x512xbf16>
    %cst_32 = arith.constant dense<0.000000e+00> : vector<16x512xf32>
    %31 = tpu.matmul %28, %30, %cst_32 {dimension_numbers = #tpu.dot_dimension_numbers<[1], [0], [0], [1], [0, 0, 1, 1], [], []>} : vector<16x288xbf16>, vector<288x512xbf16>, vector<16x512xf32> -> vector<16x512xf32>
    %c1_33 = arith.constant 1 : index
    %c0_34 = arith.constant 0 : index
    %32 = vector.load %arg9[%c1_33, %c0_34] : memref<18x288xf32, #tpu.memory_space<vmem>>, vector<16x288xf32>
    %33 = arith.truncf %32 : vector<16x288xf32> to vector<16x288xbf16>
    %c1_35 = arith.constant 1 : index
    %c0_36 = arith.constant 0 : index
    %c0_37 = arith.constant 0 : index
    %34 = vector.load %arg4[%c1_35, %c0_36, %c0_37] : memref<3x288x512xbf16, #tpu.memory_space<vmem>>, vector<1x288x512xbf16>
    %35 = vector.shape_cast %34 : vector<1x288x512xbf16> to vector<288x512xbf16>
    %cst_38 = arith.constant dense<0.000000e+00> : vector<16x512xf32>
    %36 = tpu.matmul %33, %35, %cst_38 {dimension_numbers = #tpu.dot_dimension_numbers<[1], [0], [0], [1], [0, 0, 1, 1], [], []>} : vector<16x288xbf16>, vector<288x512xbf16>, vector<16x512xf32> -> vector<16x512xf32>
    %37 = arith.addf %31, %36 : vector<16x512xf32>
    %c2_39 = arith.constant 2 : index
    %c0_40 = arith.constant 0 : index
    %38 = vector.load %arg9[%c2_39, %c0_40] : memref<18x288xf32, #tpu.memory_space<vmem>>, vector<16x288xf32>
    %39 = arith.truncf %38 : vector<16x288xf32> to vector<16x288xbf16>
    %c2_41 = arith.constant 2 : index
    %c0_42 = arith.constant 0 : index
    %c0_43 = arith.constant 0 : index
    %40 = vector.load %arg4[%c2_41, %c0_42, %c0_43] : memref<3x288x512xbf16, #tpu.memory_space<vmem>>, vector<1x288x512xbf16>
    %41 = vector.shape_cast %40 : vector<1x288x512xbf16> to vector<288x512xbf16>
    %cst_44 = arith.constant dense<0.000000e+00> : vector<16x512xf32>
    %42 = tpu.matmul %39, %41, %cst_44 {dimension_numbers = #tpu.dot_dimension_numbers<[1], [0], [0], [1], [0, 0, 1, 1], [], []>} : vector<16x288xbf16>, vector<288x512xbf16>, vector<16x512xf32> -> vector<16x512xf32>
    %43 = arith.addf %37, %42 : vector<16x512xf32>
    %c0_45 = arith.constant 0 : index
    %c0_46 = arith.constant 0 : index
    %44 = vector.load %arg5[%c0_45, %c0_46] : memref<1x512xf32, #tpu.memory_space<vmem>>, vector<1x512xf32>
    %45 = vector.broadcast %44 : vector<1x512xf32> to vector<16x512xf32>
    %46 = arith.addf %43, %45 : vector<16x512xf32>
    %cst_47 = arith.constant 0.000000e+00 : f32
    %47 = vector.broadcast %cst_47 : f32 to vector<16x512xf32>
    %48 = arith.maximumf %46, %47 : vector<16x512xf32>
    %c0_48 = arith.constant 0 : index
    %c0_49 = arith.constant 0 : index
    %49 = vector.load %arg7[%c0_48, %c0_49] : memref<1x128xf32, #tpu.memory_space<vmem>>, vector<1x128xf32>
    %50 = vector.extract_strided_slice %48 {offsets = [0, 0], sizes = [1, 512], strides = [1, 1]} : vector<16x512xf32> to vector<1x512xf32>
    %51 = arith.truncf %50 : vector<1x512xf32> to vector<1x512xbf16>
    %c0_50 = arith.constant 0 : index
    %c0_51 = arith.constant 0 : index
    %c0_52 = arith.constant 0 : index
    %52 = vector.load %arg6[%c0_50, %c0_51, %c0_52] : memref<16x512x128xbf16, #tpu.memory_space<vmem>>, vector<1x512x128xbf16>
    %53 = vector.shape_cast %52 : vector<1x512x128xbf16> to vector<512x128xbf16>
    %cst_53 = arith.constant dense<0.000000e+00> : vector<1x128xf32>
    %54 = tpu.matmul %51, %53, %cst_53 {dimension_numbers = #tpu.dot_dimension_numbers<[1], [0], [0], [1], [0, 0, 1, 1], [], []>} : vector<1x512xbf16>, vector<512x128xbf16>, vector<1x128xf32> -> vector<1x128xf32>
    %55 = arith.addf %49, %54 : vector<1x128xf32>
    %56 = vector.extract_strided_slice %48 {offsets = [1, 0], sizes = [1, 512], strides = [1, 1]} : vector<16x512xf32> to vector<1x512xf32>
    %57 = arith.truncf %56 : vector<1x512xf32> to vector<1x512xbf16>
    %c1_54 = arith.constant 1 : index
    %c0_55 = arith.constant 0 : index
    %c0_56 = arith.constant 0 : index
    %58 = vector.load %arg6[%c1_54, %c0_55, %c0_56] : memref<16x512x128xbf16, #tpu.memory_space<vmem>>, vector<1x512x128xbf16>
    %59 = vector.shape_cast %58 : vector<1x512x128xbf16> to vector<512x128xbf16>
    %cst_57 = arith.constant dense<0.000000e+00> : vector<1x128xf32>
    %60 = tpu.matmul %57, %59, %cst_57 {dimension_numbers = #tpu.dot_dimension_numbers<[1], [0], [0], [1], [0, 0, 1, 1], [], []>} : vector<1x512xbf16>, vector<512x128xbf16>, vector<1x128xf32> -> vector<1x128xf32>
    %61 = arith.addf %55, %60 : vector<1x128xf32>
    %62 = vector.extract_strided_slice %48 {offsets = [2, 0], sizes = [1, 512], strides = [1, 1]} : vector<16x512xf32> to vector<1x512xf32>
    %63 = arith.truncf %62 : vector<1x512xf32> to vector<1x512xbf16>
    %c2_58 = arith.constant 2 : index
    %c0_59 = arith.constant 0 : index
    %c0_60 = arith.constant 0 : index
    %64 = vector.load %arg6[%c2_58, %c0_59, %c0_60] : memref<16x512x128xbf16, #tpu.memory_space<vmem>>, vector<1x512x128xbf16>
    %65 = vector.shape_cast %64 : vector<1x512x128xbf16> to vector<512x128xbf16>
    %cst_61 = arith.constant dense<0.000000e+00> : vector<1x128xf32>
    %66 = tpu.matmul %63, %65, %cst_61 {dimension_numbers = #tpu.dot_dimension_numbers<[1], [0], [0], [1], [0, 0, 1, 1], [], []>} : vector<1x512xbf16>, vector<512x128xbf16>, vector<1x128xf32> -> vector<1x128xf32>
    %67 = arith.addf %61, %66 : vector<1x128xf32>
    %68 = vector.extract_strided_slice %48 {offsets = [3, 0], sizes = [1, 512], strides = [1, 1]} : vector<16x512xf32> to vector<1x512xf32>
    %69 = arith.truncf %68 : vector<1x512xf32> to vector<1x512xbf16>
    %c3 = arith.constant 3 : index
    %c0_62 = arith.constant 0 : index
    %c0_63 = arith.constant 0 : index
    %70 = vector.load %arg6[%c3, %c0_62, %c0_63] : memref<16x512x128xbf16, #tpu.memory_space<vmem>>, vector<1x512x128xbf16>
    %71 = vector.shape_cast %70 : vector<1x512x128xbf16> to vector<512x128xbf16>
    %cst_64 = arith.constant dense<0.000000e+00> : vector<1x128xf32>
    %72 = tpu.matmul %69, %71, %cst_64 {dimension_numbers = #tpu.dot_dimension_numbers<[1], [0], [0], [1], [0, 0, 1, 1], [], []>} : vector<1x512xbf16>, vector<512x128xbf16>, vector<1x128xf32> -> vector<1x128xf32>
    %73 = arith.addf %67, %72 : vector<1x128xf32>
    %74 = vector.extract_strided_slice %48 {offsets = [4, 0], sizes = [1, 512], strides = [1, 1]} : vector<16x512xf32> to vector<1x512xf32>
    %75 = arith.truncf %74 : vector<1x512xf32> to vector<1x512xbf16>
    %c4 = arith.constant 4 : index
    %c0_65 = arith.constant 0 : index
    %c0_66 = arith.constant 0 : index
    %76 = vector.load %arg6[%c4, %c0_65, %c0_66] : memref<16x512x128xbf16, #tpu.memory_space<vmem>>, vector<1x512x128xbf16>
    %77 = vector.shape_cast %76 : vector<1x512x128xbf16> to vector<512x128xbf16>
    %cst_67 = arith.constant dense<0.000000e+00> : vector<1x128xf32>
    %78 = tpu.matmul %75, %77, %cst_67 {dimension_numbers = #tpu.dot_dimension_numbers<[1], [0], [0], [1], [0, 0, 1, 1], [], []>} : vector<1x512xbf16>, vector<512x128xbf16>, vector<1x128xf32> -> vector<1x128xf32>
    %79 = arith.addf %73, %78 : vector<1x128xf32>
    %80 = vector.extract_strided_slice %48 {offsets = [5, 0], sizes = [1, 512], strides = [1, 1]} : vector<16x512xf32> to vector<1x512xf32>
    %81 = arith.truncf %80 : vector<1x512xf32> to vector<1x512xbf16>
    %c5 = arith.constant 5 : index
    %c0_68 = arith.constant 0 : index
    %c0_69 = arith.constant 0 : index
    %82 = vector.load %arg6[%c5, %c0_68, %c0_69] : memref<16x512x128xbf16, #tpu.memory_space<vmem>>, vector<1x512x128xbf16>
    %83 = vector.shape_cast %82 : vector<1x512x128xbf16> to vector<512x128xbf16>
    %cst_70 = arith.constant dense<0.000000e+00> : vector<1x128xf32>
    %84 = tpu.matmul %81, %83, %cst_70 {dimension_numbers = #tpu.dot_dimension_numbers<[1], [0], [0], [1], [0, 0, 1, 1], [], []>} : vector<1x512xbf16>, vector<512x128xbf16>, vector<1x128xf32> -> vector<1x128xf32>
    %85 = arith.addf %79, %84 : vector<1x128xf32>
    %86 = vector.extract_strided_slice %48 {offsets = [6, 0], sizes = [1, 512], strides = [1, 1]} : vector<16x512xf32> to vector<1x512xf32>
    %87 = arith.truncf %86 : vector<1x512xf32> to vector<1x512xbf16>
    %c6 = arith.constant 6 : index
    %c0_71 = arith.constant 0 : index
    %c0_72 = arith.constant 0 : index
    %88 = vector.load %arg6[%c6, %c0_71, %c0_72] : memref<16x512x128xbf16, #tpu.memory_space<vmem>>, vector<1x512x128xbf16>
    %89 = vector.shape_cast %88 : vector<1x512x128xbf16> to vector<512x128xbf16>
    %cst_73 = arith.constant dense<0.000000e+00> : vector<1x128xf32>
    %90 = tpu.matmul %87, %89, %cst_73 {dimension_numbers = #tpu.dot_dimension_numbers<[1], [0], [0], [1], [0, 0, 1, 1], [], []>} : vector<1x512xbf16>, vector<512x128xbf16>, vector<1x128xf32> -> vector<1x128xf32>
    %91 = arith.addf %85, %90 : vector<1x128xf32>
    %92 = vector.extract_strided_slice %48 {offsets = [7, 0], sizes = [1, 512], strides = [1, 1]} : vector<16x512xf32> to vector<1x512xf32>
    %93 = arith.truncf %92 : vector<1x512xf32> to vector<1x512xbf16>
    %c7 = arith.constant 7 : index
    %c0_74 = arith.constant 0 : index
    %c0_75 = arith.constant 0 : index
    %94 = vector.load %arg6[%c7, %c0_74, %c0_75] : memref<16x512x128xbf16, #tpu.memory_space<vmem>>, vector<1x512x128xbf16>
    %95 = vector.shape_cast %94 : vector<1x512x128xbf16> to vector<512x128xbf16>
    %cst_76 = arith.constant dense<0.000000e+00> : vector<1x128xf32>
    %96 = tpu.matmul %93, %95, %cst_76 {dimension_numbers = #tpu.dot_dimension_numbers<[1], [0], [0], [1], [0, 0, 1, 1], [], []>} : vector<1x512xbf16>, vector<512x128xbf16>, vector<1x128xf32> -> vector<1x128xf32>
    %97 = arith.addf %91, %96 : vector<1x128xf32>
    %98 = vector.extract_strided_slice %48 {offsets = [8, 0], sizes = [1, 512], strides = [1, 1]} : vector<16x512xf32> to vector<1x512xf32>
    %99 = arith.truncf %98 : vector<1x512xf32> to vector<1x512xbf16>
    %c8 = arith.constant 8 : index
    %c0_77 = arith.constant 0 : index
    %c0_78 = arith.constant 0 : index
    %100 = vector.load %arg6[%c8, %c0_77, %c0_78] : memref<16x512x128xbf16, #tpu.memory_space<vmem>>, vector<1x512x128xbf16>
    %101 = vector.shape_cast %100 : vector<1x512x128xbf16> to vector<512x128xbf16>
    %cst_79 = arith.constant dense<0.000000e+00> : vector<1x128xf32>
    %102 = tpu.matmul %99, %101, %cst_79 {dimension_numbers = #tpu.dot_dimension_numbers<[1], [0], [0], [1], [0, 0, 1, 1], [], []>} : vector<1x512xbf16>, vector<512x128xbf16>, vector<1x128xf32> -> vector<1x128xf32>
    %103 = arith.addf %97, %102 : vector<1x128xf32>
    %104 = vector.extract_strided_slice %48 {offsets = [9, 0], sizes = [1, 512], strides = [1, 1]} : vector<16x512xf32> to vector<1x512xf32>
    %105 = arith.truncf %104 : vector<1x512xf32> to vector<1x512xbf16>
    %c9 = arith.constant 9 : index
    %c0_80 = arith.constant 0 : index
    %c0_81 = arith.constant 0 : index
    %106 = vector.load %arg6[%c9, %c0_80, %c0_81] : memref<16x512x128xbf16, #tpu.memory_space<vmem>>, vector<1x512x128xbf16>
    %107 = vector.shape_cast %106 : vector<1x512x128xbf16> to vector<512x128xbf16>
    %cst_82 = arith.constant dense<0.000000e+00> : vector<1x128xf32>
    %108 = tpu.matmul %105, %107, %cst_82 {dimension_numbers = #tpu.dot_dimension_numbers<[1], [0], [0], [1], [0, 0, 1, 1], [], []>} : vector<1x512xbf16>, vector<512x128xbf16>, vector<1x128xf32> -> vector<1x128xf32>
    %109 = arith.addf %103, %108 : vector<1x128xf32>
    %110 = vector.extract_strided_slice %48 {offsets = [10, 0], sizes = [1, 512], strides = [1, 1]} : vector<16x512xf32> to vector<1x512xf32>
    %111 = arith.truncf %110 : vector<1x512xf32> to vector<1x512xbf16>
    %c10 = arith.constant 10 : index
    %c0_83 = arith.constant 0 : index
    %c0_84 = arith.constant 0 : index
    %112 = vector.load %arg6[%c10, %c0_83, %c0_84] : memref<16x512x128xbf16, #tpu.memory_space<vmem>>, vector<1x512x128xbf16>
    %113 = vector.shape_cast %112 : vector<1x512x128xbf16> to vector<512x128xbf16>
    %cst_85 = arith.constant dense<0.000000e+00> : vector<1x128xf32>
    %114 = tpu.matmul %111, %113, %cst_85 {dimension_numbers = #tpu.dot_dimension_numbers<[1], [0], [0], [1], [0, 0, 1, 1], [], []>} : vector<1x512xbf16>, vector<512x128xbf16>, vector<1x128xf32> -> vector<1x128xf32>
    %115 = arith.addf %109, %114 : vector<1x128xf32>
    %116 = vector.extract_strided_slice %48 {offsets = [11, 0], sizes = [1, 512], strides = [1, 1]} : vector<16x512xf32> to vector<1x512xf32>
    %117 = arith.truncf %116 : vector<1x512xf32> to vector<1x512xbf16>
    %c11 = arith.constant 11 : index
    %c0_86 = arith.constant 0 : index
    %c0_87 = arith.constant 0 : index
    %118 = vector.load %arg6[%c11, %c0_86, %c0_87] : memref<16x512x128xbf16, #tpu.memory_space<vmem>>, vector<1x512x128xbf16>
    %119 = vector.shape_cast %118 : vector<1x512x128xbf16> to vector<512x128xbf16>
    %cst_88 = arith.constant dense<0.000000e+00> : vector<1x128xf32>
    %120 = tpu.matmul %117, %119, %cst_88 {dimension_numbers = #tpu.dot_dimension_numbers<[1], [0], [0], [1], [0, 0, 1, 1], [], []>} : vector<1x512xbf16>, vector<512x128xbf16>, vector<1x128xf32> -> vector<1x128xf32>
    %121 = arith.addf %115, %120 : vector<1x128xf32>
    %122 = vector.extract_strided_slice %48 {offsets = [12, 0], sizes = [1, 512], strides = [1, 1]} : vector<16x512xf32> to vector<1x512xf32>
    %123 = arith.truncf %122 : vector<1x512xf32> to vector<1x512xbf16>
    %c12 = arith.constant 12 : index
    %c0_89 = arith.constant 0 : index
    %c0_90 = arith.constant 0 : index
    %124 = vector.load %arg6[%c12, %c0_89, %c0_90] : memref<16x512x128xbf16, #tpu.memory_space<vmem>>, vector<1x512x128xbf16>
    %125 = vector.shape_cast %124 : vector<1x512x128xbf16> to vector<512x128xbf16>
    %cst_91 = arith.constant dense<0.000000e+00> : vector<1x128xf32>
    %126 = tpu.matmul %123, %125, %cst_91 {dimension_numbers = #tpu.dot_dimension_numbers<[1], [0], [0], [1], [0, 0, 1, 1], [], []>} : vector<1x512xbf16>, vector<512x128xbf16>, vector<1x128xf32> -> vector<1x128xf32>
    %127 = arith.addf %121, %126 : vector<1x128xf32>
    %128 = vector.extract_strided_slice %48 {offsets = [13, 0], sizes = [1, 512], strides = [1, 1]} : vector<16x512xf32> to vector<1x512xf32>
    %129 = arith.truncf %128 : vector<1x512xf32> to vector<1x512xbf16>
    %c13 = arith.constant 13 : index
    %c0_92 = arith.constant 0 : index
    %c0_93 = arith.constant 0 : index
    %130 = vector.load %arg6[%c13, %c0_92, %c0_93] : memref<16x512x128xbf16, #tpu.memory_space<vmem>>, vector<1x512x128xbf16>
    %131 = vector.shape_cast %130 : vector<1x512x128xbf16> to vector<512x128xbf16>
    %cst_94 = arith.constant dense<0.000000e+00> : vector<1x128xf32>
    %132 = tpu.matmul %129, %131, %cst_94 {dimension_numbers = #tpu.dot_dimension_numbers<[1], [0], [0], [1], [0, 0, 1, 1], [], []>} : vector<1x512xbf16>, vector<512x128xbf16>, vector<1x128xf32> -> vector<1x128xf32>
    %133 = arith.addf %127, %132 : vector<1x128xf32>
    %134 = vector.extract_strided_slice %48 {offsets = [14, 0], sizes = [1, 512], strides = [1, 1]} : vector<16x512xf32> to vector<1x512xf32>
    %135 = arith.truncf %134 : vector<1x512xf32> to vector<1x512xbf16>
    %c14 = arith.constant 14 : index
    %c0_95 = arith.constant 0 : index
    %c0_96 = arith.constant 0 : index
    %136 = vector.load %arg6[%c14, %c0_95, %c0_96] : memref<16x512x128xbf16, #tpu.memory_space<vmem>>, vector<1x512x128xbf16>
    %137 = vector.shape_cast %136 : vector<1x512x128xbf16> to vector<512x128xbf16>
    %cst_97 = arith.constant dense<0.000000e+00> : vector<1x128xf32>
    %138 = tpu.matmul %135, %137, %cst_97 {dimension_numbers = #tpu.dot_dimension_numbers<[1], [0], [0], [1], [0, 0, 1, 1], [], []>} : vector<1x512xbf16>, vector<512x128xbf16>, vector<1x128xf32> -> vector<1x128xf32>
    %139 = arith.addf %133, %138 : vector<1x128xf32>
    %140 = vector.extract_strided_slice %48 {offsets = [15, 0], sizes = [1, 512], strides = [1, 1]} : vector<16x512xf32> to vector<1x512xf32>
    %141 = arith.truncf %140 : vector<1x512xf32> to vector<1x512xbf16>
    %c15 = arith.constant 15 : index
    %c0_98 = arith.constant 0 : index
    %c0_99 = arith.constant 0 : index
    %142 = vector.load %arg6[%c15, %c0_98, %c0_99] : memref<16x512x128xbf16, #tpu.memory_space<vmem>>, vector<1x512x128xbf16>
    %143 = vector.shape_cast %142 : vector<1x512x128xbf16> to vector<512x128xbf16>
    %cst_100 = arith.constant dense<0.000000e+00> : vector<1x128xf32>
    %144 = tpu.matmul %141, %143, %cst_100 {dimension_numbers = #tpu.dot_dimension_numbers<[1], [0], [0], [1], [0, 0, 1, 1], [], []>} : vector<1x512xbf16>, vector<512x128xbf16>, vector<1x128xf32> -> vector<1x128xf32>
    %145 = arith.addf %139, %144 : vector<1x128xf32>
    %cst_101 = arith.constant 0.000000e+00 : f32
    %146 = vector.broadcast %cst_101 : f32 to vector<1x128xf32>
    %147 = arith.maximumf %145, %146 : vector<1x128xf32>
    %c0_102 = arith.constant 0 : index
    %c0_103 = arith.constant 0 : index
    %c0_104 = arith.constant 0 : index
    %148 = vector.load %arg8[%c0_102, %c0_103, %c0_104] : memref<1x1x128xf32, #tpu.memory_space<vmem>>, vector<1x1x128xf32>
    %149 = vector.shape_cast %148 : vector<1x1x128xf32> to vector<1x128xf32>
    %150 = vector.shape_cast %147 : vector<1x128xf32> to vector<1x1x128xf32>
    tpu.vector_store %arg8[%c0_102, %c0_103, %c0_104], %150 {strides = array<i32>} : memref<1x1x128xf32, #tpu.memory_space<vmem>>, vector<1x1x128xf32>,
    return
  }
  func.func @transform_0(%arg0: i32) -> (i32, i32, i32) {
    %c0_i32 = arith.constant 0 : i32
    %c0_i32_0 = arith.constant 0 : i32
    %c0_i32_1 = arith.constant 0 : i32
    return %arg0, %c0_i32, %c0_i32_0 : i32, i32, i32
  }
  func.func @transform_1(%arg0: i32) -> (i32, i32, i32) {
    %c0_i32 = arith.constant 0 : i32
    %c0_i32_0 = arith.constant 0 : i32
    %c0_i32_1 = arith.constant 0 : i32
    %c0_i32_2 = arith.constant 0 : i32
    return %c0_i32, %c0_i32_0, %c0_i32_1 : i32, i32, i32
  }
  func.func @transform_2(%arg0: i32) -> (i32, i32) {
    %c0_i32 = arith.constant 0 : i32
    %c0_i32_0 = arith.constant 0 : i32
    %c0_i32_1 = arith.constant 0 : i32
    return %c0_i32, %c0_i32_0 : i32, i32
  }
  func.func @transform_3(%arg0: i32) -> (i32, i32, i32) {
    %c0_i32 = arith.constant 0 : i32
    %c0_i32_0 = arith.constant 0 : i32
    %c0_i32_1 = arith.constant 0 : i32
    %c0_i32_2 = arith.constant 0 : i32
    return %c0_i32, %c0_i32_0, %c0_i32_1 : i32, i32, i32
  }
  func.func @transform_4(%arg0: i32) -> (i32, i32) {
    %c0_i32 = arith.constant 0 : i32
    %c0_i32_0 = arith.constant 0 : i32
    %c0_i32_1 = arith.constant 0 : i32
    return %c0_i32, %c0_i32_0 : i32, i32
  }
  func.func @transform_5(%arg0: i32) -> (i32, i32, i32) {
    %c0_i32 = arith.constant 0 : i32
    %c0_i32_0 = arith.constant 0 : i32
    %c0_i32_1 = arith.constant 0 : i32
    %c0_i32_2 = arith.constant 0 : i32
    return %c0_i32, %c0_i32_0, %c0_i32_1 : i32, i32, i32
  }
  func.func @transform_6(%arg0: i32) -> (i32, i32) {
    %c0_i32 = arith.constant 0 : i32
    %c0_i32_0 = arith.constant 0 : i32
    %c0_i32_1 = arith.constant 0 : i32
    return %c0_i32, %c0_i32_0 : i32, i32
  }
  func.func @transform_7(%arg0: i32) -> (i32, i32, i32) {
    %c0_i32 = arith.constant 0 : i32
    %c0_i32_0 = arith.constant 0 : i32
    %c0_i32_1 = arith.constant 0 : i32
    return %arg0, %c0_i32, %c0_i32_0 : i32, i32, i32
  }
}

</mosaic_0001>

<bundles_post_ra>
// kernel: simple_cnn_forward.1
= control target key start
LH: loop header
LB: loop body
LE: loop exit
PB: predicated region body
PF: predicated region fallthrough
CT: control target
= control target key end

     0   :  { %12 = vsyncpa [#allocation4], 0  ;;  %s12069_s0 = inlined_call_operand.vmem [shape: bf16[2,18,72], index: 0, kind: input, shape index: {}]   ;;  %s12070_s1 = inlined_call_operand.hbm [shape: bf16[3,72,288], index: 1, kind: input, shape index: {}]   ;;  %s12071_s2 = inlined_call_operand.hbm [shape: f32[1,288], index: 2, kind: input, shape index: {}]   ;;  %s12072_s3 = inlined_call_operand.hbm [shape: bf16[3,288,512], index: 3, kind: input, shape index: {}]   ;;  %s12073_s4 = inlined_call_operand.hbm [shape: f32[1,512], index: 4, kind: input, shape index: {}]   ;;  %s12074_s5 = inlined_call_operand.hbm [shape: bf16[16,512,128], index: 5, kind: input, shape index: {}]   ;;  %s12075_s6 = inlined_call_operand.hbm [shape: f32[1,128], index: 6, kind: input, shape index: {}]   ;;  %s12076_s7 = inlined_call_operand.hbm [shape: f32[2,1,128], index: 7, kind: output, shape index: {}]  }
   0x1   :  { %13 = vsyncpa [#allocation7], 0 }
   0x2   :  { %14 = vsyncpa [#allocation10], 0 }
   0x3   :  { %15 = vsyncpa [#allocation13], 0 }
   0x4   :  { %16 = vsyncpa [#allocation5], 0 }
   0x5   :  { %18 = vsyncpa [#allocation5 + $0x1], 0  ;;  %s11543_s24 = smov 0   ;;  %s11545_s25 = smov 0  }
   0x6   :  { %s11547_s26 = smov 0   ;;  %s11549_s27 = smov 0  }
   0x7 LB: > { %s11564_s28 = sadd.s32 4294967295, %s11485_s27   ;;  %s8672_s29 = sadd.s32 4294967294, %s11485_s27   ;;  %s11485_s27 = sphi %s11549_s27, %s12099_s27   ;;  %s11481_s26 = sphi %s11547_s26, %s12098_s26   ;;  %s11477_s25 = sphi %s11545_s25, %s12097_s25   ;;  %s11473_s24 = sphi %s11543_s24, %s12096_s24  }
   0x8   : > { %s11568_s30 = sadd.s32 1, %s11485_s27   ;;  %s183_s8 = sadd.s32 1, %s11481_s26 }
   0x9   : > { %s180_s9 = ssub.s32 %s11485_s27, %s11568_s30  ;;  %p193_p0 = scmp.ne.s32.totalorder %s11481_s26, %s11477_s25 }
   0xa   : > { %p181_p1 = scmp.eq.s32.totalorder %s180_s9, 0  ;;  %p194_p2 = scmp.eq.s32.totalorder %s11564_s28, 1 }
   0xb   : > { %p199_p3 = scmp.ne.s32.totalorder %s11477_s25, %s11473_s24  ;;  %p200_p4 = scmp.eq.s32.totalorder %s8672_s29, 1 }
   0xc   : > { %s11579_s10 = scalar_select %p181_p1, %s11481_s26, %s183_s8  }
   0xd   : > { %p11581_p5 = por %p194_p2, %p193_p0  ;;  %p11585_p6 = por %p200_p4, %p199_p3 }
   0xe   : > { %p8673_p7 = scmp.ge.s32.totalorder %s11485_s27, 1  ;;  %p207_p8 = scmp.lt.s32.totalorder %s11485_s27, 3 }
   0xf   : > { %s12080_s11 = scalar_select %p11581_p5, 1, 0 }
  0x10   : > { %s12081_s12 = scalar_select %p11585_p6, 1, 0 }
  0x11   : > { %p12077_p9 = scmp.eq.s32.totalorder %s11564_s28, 0  ;;  %p11592_p10 = pnand %p8673_p7, %p207_p8 }
  0x12   : > { %s11487_s14 = smov [#allocation6]   ;;  %s11488_s16 = smov [#allocation9]  }
  0x13   : > { %s12082_s13 = scalar_select %p11592_p10, 1, 0 }
  0x14   : > { %s233_s15 = sshll.u32 %s11487_s14, 4  ;;  %p10274_p11 = pneg %p11592_p10  ;;  %s234_s15 = int_to_ptr.vmem [resolvable:$true] %s233_s15 }
  0x15   : > { %s257_s17 = sshll.u32 %s11488_s16, 4  ;;  %s11489_s19 = smov [#allocation3]   ;;  %s258_s17 = int_to_ptr.vmem [resolvable:$true] %s257_s17 }
  0x16   : > { %p11600_p12 = pnand %p12077_p9, %p10274_p11  ;;  %s219_s20 = sshll.u32 %s11489_s19, 4  ;;  %s11604_s20 = int_to_ptr.vmem [resolvable:$true] %s219_s20 }
  0x17   : > { %s11264_s22 = scalar_lea.vmem %s234_s15, 48  ;;  %s11271_s23 = scalar_lea.vmem %s234_s15, 64 }
  0x18   : > { %p11608_p13 = pneg %p11600_p12  ;;  %p11265_p0 = scmp.ne.s32.totalorder %s234_s15, %s11264_s22 }
  0x19   : > { %p11272_p3 = scmp.lt.s32.totalorder %s234_s15, %s234_s15  ;;  %p11273_p4 = scmp.lt.s32.totalorder %s11271_s23, %s11264_s22 }
  0x1a   : > { %p11267_p1 = pnand %p11265_p0, %p11608_p13 }
  0x1b   : > { %p11274_p7 = por %p11273_p4, %p11272_p3 }
  0x1c   : > { %p11268_p2 = pneg %p11267_p1 }
  0x1e   : > { %p11275_p8 = pnand %p11274_p7, %p11268_p2 }
  0x20   : > { %11278 = shalt.err (!%p11275_p8)
}
  0x21   : > { %10280 = dma.hbm_to_vmem [thread:$0]  (!%p11600_p12), %s12071_s2, 48, %s234_s15, [#allocation7]  }
  0x22   : > { %s11290_s9 = scalar_lea.vmem %s258_s17, 64  ;;  %p11298_p0 = scmp.lt.s32.totalorder %s258_s17, %s258_s17 }
  0x23   : > { %p11291_p11 = scmp.ne.s32.totalorder %s258_s17, %s11290_s9  ;;  %p11299_p1 = scmp.lt.s32.totalorder %s11290_s9, %s11290_s9 }
  0x25   : > { %p11293_p9 = pnand %p11291_p11, %p11608_p13  ;;  %p11300_p5 = por %p11299_p1, %p11298_p0 }
  0x27   : > { %p11294_p6 = pneg %p11293_p9 }
  0x29   : > { %p11301_p10 = pnand %p11300_p5, %p11294_p6 }
  0x2b   : > { %11304 = shalt.err (!%p11301_p10)
}
  0x2c   : > { %10286 = dma.hbm_to_vmem [thread:$0]  (!%p11600_p12), %s12073_s4, 64, %s258_s17, [#allocation10]  }
  0x2d   : > { %s11316_s15 = scalar_lea.vmem %s11604_s20, 5184  ;;  %p11324_p4 = scmp.lt.s32.totalorder %s11604_s20, %s11604_s20 }
  0x2e   : > { %p11317_p2 = scmp.ne.s32.totalorder %s11604_s20, %s11316_s15  ;;  %p11325_p7 = scmp.lt.s32.totalorder %s11316_s15, %s11316_s15 }
  0x30   : > { %p11319_p3 = pnand %p11317_p2, %p11608_p13  ;;  %p11326_p5 = por %p11325_p7, %p11324_p4 }
  0x32   : > { %p11320_p9 = pneg %p11319_p3 }
  0x34   : > { %p11327_p6 = pnand %p11326_p5, %p11320_p9 }
  0x36   : > { %11330 = shalt.err (!%p11327_p6)
}
  0x37   : > { %s11490_s19 = smov 192   ;;  %s11491_s22 = smov 12  }
  0x38   : > { %10277 = dma.hbm_to_vmem [thread:$0]  (!%p11600_p12), %s12070_s1, 5184, %s11604_s20, [#allocation4], %s11490_s19, %s11490_s19, %s11491_s22  }
  0x39   : > { %s11492_s17 = smov [#allocation8]  }
  0x3a   : > { %s243_s8 = sshll.u32 %s11492_s17, 4  ;;  %s244_s8 = int_to_ptr.vmem [resolvable:$true] %s243_s8 }
  0x3b   : > { %s11342_s9 = scalar_lea.vmem %s244_s8, 27648  ;;  %p11350_p0 = scmp.lt.s32.totalorder %s244_s8, %s244_s8 }
  0x3c   : > { %p11343_p10 = scmp.ne.s32.totalorder %s244_s8, %s11342_s9  ;;  %p11351_p1 = scmp.lt.s32.totalorder %s11342_s9, %s11342_s9 }
  0x3e   : > { %p11345_p8 = pnand %p11343_p10, %p11608_p13  ;;  %p11352_p2 = por %p11351_p1, %p11350_p0 }
  0x40   : > { %p11346_p11 = pneg %p11345_p8 }
  0x42   : > { %p11353_p3 = pnand %p11352_p2, %p11346_p11 }
  0x44   : > { %11356 = shalt.err (!%p11353_p3)
}
  0x45   : > { %s11493_s14 = smov 256   ;;  %s11494_s16 = smov 16  }
  0x46   : > { %10283 = dma.hbm_to_vmem [thread:$0]  (!%p11600_p12), %s12072_s3, 27648, %s244_s8, [#allocation7], %s11493_s14, %s11493_s14, %s11494_s16  }
  0x47   : > { %s11495_s19 = smov [#allocation11]  }
  0x48   : > { %s267_s22 = sshll.u32 %s11495_s19, 4  ;;  %s268_s22 = int_to_ptr.vmem [resolvable:$true] %s267_s22 }
  0x49   : > { %s11368_s23 = scalar_lea.vmem %s268_s22, 65536  ;;  %p11376_p5 = scmp.lt.s32.totalorder %s268_s22, %s268_s22 }
  0x4a   : > { %p11369_p9 = scmp.ne.s32.totalorder %s268_s22, %s11368_s23  ;;  %p11377_p6 = scmp.lt.s32.totalorder %s11368_s23, %s11368_s23 }
  0x4c   : > { %p11371_p4 = pnand %p11369_p9, %p11608_p13  ;;  %p11378_p10 = por %p11377_p6, %p11376_p5 }
  0x4e   : > { %p11372_p7 = pneg %p11371_p4 }
  0x50   : > { %p11379_p8 = pnand %p11378_p10, %p11372_p7 }
  0x52   : > { %11382 = shalt.err (!%p11379_p8)
}
  0x53   : > { %s11496_s29 = smov 64   ;;  %s11497_s17 = smov 4  }
  0x54   : > { %10289 = dma.hbm_to_vmem [thread:$0]  (!%p11600_p12), %s12074_s5, 65536, %s268_s22, [#allocation10], %s11496_s29, %s11496_s29, %s11497_s17  }
  0x55   : > { %s11498_s14 = smov [#allocation12]  }
  0x56   : > { %s281_s16 = sshll.u32 %s11498_s14, 4  ;;  %s282_s16 = int_to_ptr.vmem [resolvable:$true] %s281_s16 }
  0x57   : > { %s11394_s15 = scalar_lea.vmem %s282_s16, 16  ;;  %s11401_s20 = scalar_lea.vmem %s282_s16, 32 }
  0x58   : > { %p11395_p11 = scmp.ne.s32.totalorder %s282_s16, %s11394_s15  ;;  %p11402_p2 = scmp.lt.s32.totalorder %s282_s16, %s282_s16 }
  0x59   : > { %p11403_p3 = scmp.lt.s32.totalorder %s11401_s20, %s11394_s15 }
  0x5a   : > { %p11397_p0 = pnand %p11395_p11, %p11608_p13 }
  0x5b   : > { %p11404_p9 = por %p11403_p3, %p11402_p2 }
  0x5c   : > { %p11398_p1 = pneg %p11397_p0 }
  0x5e   : > { %p11405_p4 = pnand %p11404_p9, %p11398_p1 }
  0x60   : > { %11408 = shalt.err (!%p11405_p4)
}
  0x61   : > { %10292 = dma.hbm_to_vmem [thread:$0]  (!%p11600_p12), %s12075_s6, 16, %s282_s16, [#allocation13]  }
  0x62   : > { %p12085_p7 = scmp.ne.s32.totalorder %s12082_s13, 0 }
  0x63   : > { %p12086_p5 = scmp.eq.s32.totalorder (!%p12085_p7), %s11564_s28, 0 }
  0x64   : > { %302 = sbr.rel (%p12085_p7) target bundleno = 1510 (0x5e6), region = 48 }
  0x69   : > { %11452 = dma.done.wait (%p12086_p5), [#allocation4], 5184   ;;  %p12087_p13 = pmov %p12086_p5 }
  0x6a   : > { %p12088_p6 = pmov %p12086_p5 }
  0x6b   : > { %11454 = vsyncadd (%p12087_p13), [#allocation4], 4294962112 }
  0x6c   : > { %11456 = dma.done.wait (%p12088_p6), [#allocation7], 27696   ;;  %p12089_p10 = pmov %p12086_p5 }
  0x6d   : > { %p12090_p8 = pmov %p12086_p5 }
  0x6e   : > { %11458 = vsyncadd (%p12089_p10), [#allocation7], 4294939600 }
  0x6f   : > { %11460 = dma.done.wait (%p12090_p8), [#allocation10], 65600   ;;  %p12091_p12 = pmov %p12086_p5 }
  0x70   : > { %p12092_p11 = pmov %p12086_p5 }
  0x71   : > { %11462 = vsyncadd (%p12091_p12), [#allocation10], 4294901696 }
  0x72   : > { %11464 = dma.done.wait (%p12092_p11), [#allocation13], 16   ;;  %p12093_p0 = pmov %p12086_p5 }
  0x73   : > { %v11499_v0 = vmov 0.0   ;;  %vm11500_vm0 = vmmov 0   ;;  %p353_p1 = scmp.lt.s32.totalorder %s11564_s28, 1  ;;  %v11501_v1 = vmov 0   ;;  %vm496_vm1 = vcmask 1043456   ;;  %v397_v2 = vld [vmem:[#allocation3 + $0xcc] sm:$0xff] }
  0x74   : > { %11466 = vsyncadd (%p12093_p0), [#allocation13], 4294967280  ;;  %10205 = vmatprep.subr.bf16.mxu1 %v11499_v0  ;;  %10215 = vmatprep.mubr.msk.bf16.mxu1 %vm11500_vm0, %v11499_v0  ;;  %v10359_v3 = vld [vmem:[#allocation3 + $0xd4] ss:$0 sps:$4 sm:$0xff]   ;;  %v8704_v4 = vcombine.high %v397_v2, %v397_v2  ;;  %v8703_v5 = vcombine.low %v397_v2, %v397_v2  ;;  %v10360_v6 = vld [vmem:[#allocation3 + $0xb8] ss:$12 sps:$4 sm:$0xff]  }
  0x75   : > { %538 = vmatprep.mubr.bf16.mxu0 %v11501_v1  ;;  %s354_s13 = scalar_select %p353_p1, %s11564_s28, 1  ;;  %v504_v7 = vsel %vm496_vm1, %v10359_v3, 0  ;;  %v10363_v9 = vld [vmem:[#allocation3 + $0xbc] ss:$12 sps:$4 sm:$0xff]   ;;  %v10362_v10 = vld [vmem:[#allocation3 + $0xb4] ss:$12 sps:$4 sm:$0xff]  }
  0x76   : > { %8706 = vmatprep.subr.msk.bf16.mxu0 %vm496_vm1, %v8704_v4  ;;  %v498_v8 = vsel %vm496_vm1, %v8703_v5, 0  ;;  %10206 = vmatpush3.bf16.msra.mxu1 %v504_v7  ;;  %v10364_v11 = vld [vmem:[#allocation3 + $0xa0] ss:$12 sps:$4 sm:$0xff]   ;;  %v10367_v12 = vld [vmem:[#allocation3 + $0xa4] ss:$12 sps:$4 sm:$0xff]   ;;  %vm492_vm3 = vcmask 588800  }
  0x77   : > { %s10247_s18 = smul.u32 12, %s354_s13  ;;  %513 = vmatpush1.bf16.msra.mxu0 %v498_v8  ;;  %10207 = vmatprep.subr.bf16.mxu1 %v11499_v0  ;;  %v10366_v13 = vld [vmem:[#allocation3 + $0x9c] ss:$12 sps:$4 sm:$0xff]   ;;  %v10371_v15 = vld [vmem:[#allocation3 + $0x8c] ss:$12 sps:$4 sm:$0xff]   ;;  %v377_v26 = vld [vmem:[#allocation3 + $0x60] sm:$0xff] }
  0x78   : > { %514 = vmatprep.subr.bf16.mxu0 %v10360_v6  ;;  %v10368_v14 = vld [vmem:[#allocation3 + $0x88] ss:$12 sps:$4 sm:$0xff]   ;;  %v10370_v20 = vld [vmem:[#allocation3 + $0x84] ss:$12 sps:$4 sm:$0xff]   ;;  %v10374_v25 = vld [vmem:[#allocation3 + $0x6c] ss:$12 sps:$4 sm:$0xff]   ;;  %v8722_v32 = vcombine.high %v377_v26, %v377_v26  ;;  %v8721_v33 = vcombine.low %v377_v26, %v377_v26 }
  0x79   : > { %s11690_s29 = scalar_lea.vmem %s12069_s0, %s10247_s18  ;;  %v10372_v21 = vld [vmem:[#allocation3 + $0x70] ss:$12 sps:$4 sm:$0xff]   ;;  %v10375_v27 = vld [vmem:[#allocation3 + $0x74] ss:$12 sps:$4 sm:$0xff]   ;;  %vm407_vm2 = vsmask.f32 7424 }
  0x7a   : > { %10208 = vmatpush3.bf16.msra.mxu1 %v10363_v9  ;;  %v359_v16 = vld [vmem:[%s11690_s29] sm:$0xf]  ;;  %v11695_v17 = vld [vmem:[%s11690_s29 + $0x4] sm:$0xf]  ;;  %v10380_v30 = vld [vmem:[#allocation3 + $0x68] ss:$0 sps:$4 sm:$0xff]  }
  0x7b   : > { %515 = vmatpush1.bf16.msra.mxu0 %v10362_v10  ;;  %10209 = vmatprep.subr.bf16.mxu1 %v11499_v0  ;;  %v11698_v18 = vcombine.low %v359_v16, %v11695_v17  ;;  %v11701_v19 = vld [vmem:[%s11690_s29 + $0x8] ss:$0 sps:$4 sm:$0x11]   ;;  %v671_v35 = vsel %vm496_vm1, %v10380_v30, 0  ;;  %v665_v36 = vsel %vm496_vm1, %v8721_v33, 0  ;;  %v775_v48 = vld [vmem:[#allocation3 + $0x138] sm:$0xff]  ;;  %v960_v30 = vlaneseq }
  0x7c   : > { %516 = vmatprep.subr.bf16.mxu0 %v10364_v11  ;;  %v416_v24 = vshll.u32 %v11701_v19, 16  ;;  %v10383_v37 = vld [vmem:[#allocation3 + $0x4c] ss:$12 sps:$4 sm:$0xff]   ;;  %v10384_v38 = vld [vmem:[#allocation3 + $0x50] ss:$12 sps:$4 sm:$0xff]   ;;  %v8741_v51 = vcombine.high %v775_v48, %v775_v48  ;;  %v8740_v52 = vcombine.low %v775_v48, %v775_v48  ;;  %v782_v8 = vrot.slane %v11701_v19, 1 }
  0x7d   : > { %v409_v22 = vshrl.u32 %v11698_v18, 16  ;;  %v411_v23 = vshll.u32 %v11698_v18, 16  ;;  %v10381_v39 = vld [vmem:[#allocation3 + $0x48] ss:$12 sps:$4 sm:$0xff]   ;;  %v10388_v41 = vld [vmem:[#allocation3 + $0x38] ss:$12 sps:$4 sm:$0xff]  }
  0x7e   : > { %10210 = vmatpush3.bf16.msra.mxu1 %v10367_v12  ;;  %v418_v29 = vrot.slane %v416_v24, 1  ;;  %v10387_v40 = vld [vmem:[#allocation3 + $0x34] ss:$12 sps:$4 sm:$0xff]   ;;  %v10385_v42 = vld [vmem:[#allocation3 + $0x30] ss:$12 sps:$4 sm:$0xff]   ;;  %v860_v55 = vsel %vm496_vm1, %v8740_v52, 0 }
  0x7f   : > { %517 = vmatpush1.bf16.msra.mxu0 %v10366_v13  ;;  %10211 = vmatprep.subr.bf16.mxu1 %v11499_v0  ;;  %v413_v28 = vrot.slane %v411_v23, 1  ;;  %v10391_v43 = vld [vmem:[#allocation3 + $0x1c] ss:$12 sps:$4 sm:$0xff]   ;;  %v10389_v44 = vld [vmem:[#allocation3 + $0x18] ss:$12 sps:$4 sm:$0xff]   ;;  %vm780_vm4 = vcmask 1046528  }
  0x80   : > { %518 = vmatprep.subr.bf16.mxu0 %v10368_v14  ;;  %v10392_v45 = vld [vmem:[#allocation3 + $0x20] ss:$12 sps:$4 sm:$0xff]   ;;  %v10395_v46 = vld [vmem:[#allocation3 + $0x4] ss:$12 sps:$4 sm:$0xff]   ;;  %v10396_v47 = vld [vmem:[#allocation3 + $0x8] ss:$12 sps:$4 sm:$0xff]  }
  0x81   : > { %v414_v31 = vor.u32 %v413_v28, %v409_v22  ;;  %v10393_v49 = vld [vmem:[#allocation3] ss:$12 sps:$4 sm:$0xff]   ;;  %v10402_v53 = vld [vmem:[#allocation3 + $0x124] ss:$12 sps:$4 sm:$0xff]   ;;  %v10403_v56 = vld [vmem:[#allocation3 + $0x128] ss:$12 sps:$4 sm:$0xff]  }
  0x82   : > { %10212 = vmatpush3.bf16.msra.mxu1 %v10371_v15  ;;  %v10399_v50 = vld [vmem:[#allocation3 + $0x140] ss:$0 sps:$4 sm:$0xff]   ;;  %v10406_v58 = vld [vmem:[#allocation3 + $0x10c] ss:$12 sps:$4 sm:$0xff]   ;;  %v10407_v59 = vld [vmem:[#allocation3 + $0x110] ss:$12 sps:$4 sm:$0xff]  }
  0x83   : > { %519 = vmatpush1.bf16.msra.mxu0 %v10370_v20  ;;  %10213 = vmatprep.subr.bf16.mxu1 %v11499_v0  ;;  %v419_v34 = vsel %vm407_vm2, %v414_v31, %v418_v29  ;;  %v866_v54 = vsel %vm496_vm1, %v10399_v50, 0  ;;  %v10400_v57 = vld [vmem:[#allocation3 + $0x120] ss:$12 sps:$4 sm:$0xff]   ;;  %v10404_v60 = vld [vmem:[#allocation3 + $0x108] ss:$12 sps:$4 sm:$0xff]   ;;  %vm989_vm5 = vcmp.lt.s32.totalorder %v960_v30, 288 }
  0x84   : > { %520 = vmatprep.subr.bf16.mxu0 %v10372_v21  ;;  %v757_v61 = vld [vmem:[%s11690_s29] sm:$0xe]  ;;  %v10410_v62 = vld [vmem:[#allocation3 + $0xf4] ss:$12 sps:$4 sm:$0xff]   ;;  %v10408_v2 = vld [vmem:[#allocation3 + $0xf0] ss:$12 sps:$4 sm:$0xff]  }
  0x85   : > { %v10411_v63 = vld [vmem:[#allocation3 + $0xf8] ss:$12 sps:$4 sm:$0xff]   ;;  %v10414_v3 = vld [vmem:[#allocation3 + $0xdc] ss:$12 sps:$4 sm:$0xff]   ;;  %v8727_v4 = vcombine.low %v757_v61, %v11695_v17  ;;  %v10415_v5 = vld [vmem:[#allocation3 + $0xe0] ss:$12 sps:$4 sm:$0xff]  }
  0x86   : > { %10214 = vmatpush3.bf16.msra.mxu1 %v10375_v27  ;;  %v10412_v6 = vld [vmem:[#allocation3 + $0xd8] ss:$12 sps:$4 sm:$0xff]   ;;  %v10419_v10 = vld [vmem:[#allocation8 + $0x324] ss:$16 sps:$4 sm:$0xff]   ;;  %vm1023_vm6 = vcmask 261121   ;;  %vm1002_vm7 = vcmask 1040384  }
  0x87   : > { %521 = vmatpush1.bf16.msra.mxu0 %v10374_v25  ;;  %10219 = vmatprep.subr.bf16.mxu1 %v11499_v0  ;;  %v781_v7 = vrot.slane %v8727_v4, 1  ;;  %v10417_v11 = vld [vmem:[#allocation8 + $0x320] ss:$16 sps:$4 sm:$0xff]   ;;  %v10422_v12 = vld [vmem:[#allocation8 + $0x304] ss:$16 sps:$4 sm:$0xff]   ;;  %vm1031_vm8 = vcmask 253952  }
  0x88   : > { %8724 = vmatprep.subr.msk.bf16.mxu0 %vm496_vm1, %v8722_v32  ;;  %v10420_v13 = vld [vmem:[#allocation8 + $0x300] ss:$16 sps:$4 sm:$0xff]   ;;  %v10425_v14 = vld [vmem:[#allocation8 + $0x2e4] ss:$16 sps:$4 sm:$0xff]   ;;  %vm1027_vm9 = vcmask 261120   ;;  %s351_s17 = sand.u32 1, %s11477_s25  }
  0x89   : > { %10216 = vmatmul.mubr.msk.bf16.vlgmr.msra.gmra.mxu1 %vm492_vm3, %v419_v34  ;;  %v783_v9 = vsel %vm780_vm4, %v781_v7, %v782_v8  ;;  %v10423_v15 = vld [vmem:[#allocation8 + $0x2e0] ss:$16 sps:$4 sm:$0xff]   ;;  %v10428_v16 = vld [vmem:[#allocation8 + $0x2c4] ss:$16 sps:$4 sm:$0xff]   ;;  %s9480_s9 = sshll.u32 %s11564_s28, 4  ;;  %s352_s8 = scalar_lea.vmem [#allocation14], %s351_s17 }
  0x8a   : > { %8707 = vmatmul.mubr.msk.bf16.vlgmr.msra.gmra.mxu0 %vm492_vm3, %v419_v34  ;;  %10220 = vmatpush3.bf16.msra.mxu1 %v671_v35  ;;  %v10426_v17 = vld [vmem:[#allocation8 + $0x2c0] ss:$16 sps:$4 sm:$0xff]   ;;  %v10434_v20 = vld [vmem:[#allocation8 + $0x284] ss:$16 sps:$4 sm:$0xff]   ;;  %s8557_s14 = sshll.u32 %s352_s8, 4  ;;  %s8555_s20 = scalar_lea.hbm %s12076_s7, %s9480_s9  ;;  %s8558_s14 = int_to_ptr.vmem [resolvable:$true] %s8557_s14 }
  0x8b   : > { %680 = vmatpush1.bf16.msra.mxu0 %v665_v36  ;;  %10221 = vmatprep.subr.bf16.mxu1 %v11499_v0  ;;  %v10429_v19 = vld [vmem:[#allocation8 + $0x2a0] ss:$16 sps:$4 sm:$0xff]   ;;  %v10437_v22 = vld [vmem:[#allocation8 + $0x264] ss:$16 sps:$4 sm:$0xff]   ;;  %s8545_s19 = scalar_lea.sflag [#allocation5], %s351_s17  ;;  %s11409_s23 = scalar_lea.vmem %s8558_s14, 16 }
  0x8c   : > { %681 = vmatprep.subr.bf16.mxu0 %v10383_v37  ;;  %10229 = vmatprep.mubr.msk.bf16.mxu1 %vm11500_vm0, %v11499_v0  ;;  %v10432_v21 = vld [vmem:[#allocation8 + $0x280] ss:$16 sps:$4 sm:$0xff]   ;;  %v10440_v24 = vld [vmem:[#allocation8 + $0x244] ss:$16 sps:$4 sm:$0xff]   ;;  %p11410_p2 = scmp.ne.s32.totalorder %s8558_s14, %s11409_s23  ;;  %p12094_p3 = scmp.ne.s32.totalorder %s12080_s11, 0 }
  0x8d   : > { %705 = vmatprep.mubr.bf16.mxu0 %v11501_v1  ;;  %v10435_v23 = vld [vmem:[#allocation8 + $0x260] ss:$16 sps:$4 sm:$0xff]   ;;  %v10443_v26 = vld [vmem:[#allocation8 + $0x424] ss:$16 sps:$4 sm:$0xff]   ;;  %s11502_s13 = smov [#allocation14]  }
  0x8e   : > { %10222 = vmatpush3.bf16.msra.mxu1 %v10384_v38  ;;  %v10438_v25 = vld [vmem:[#allocation8 + $0x240] ss:$16 sps:$4 sm:$0xff]   ;;  %v10446_v28 = vld [vmem:[#allocation8 + $0x404] ss:$16 sps:$4 sm:$0xff]   ;;  %p11411_p9 = pnand %p11410_p2, %p12094_p3  ;;  %s11413_s18 = sshll.u32 %s11502_s13, 4  ;;  %s11414_s18 = int_to_ptr.vmem [resolvable:$false] %s11413_s18 }
  0x8f   : > { %682 = vmatpush1.bf16.msra.mxu0 %v10381_v39  ;;  %10223 = vmatprep.subr.bf16.mxu1 %v11499_v0  ;;  %v10441_v27 = vld [vmem:[#allocation8 + $0x420] ss:$16 sps:$4 sm:$0xff]   ;;  %v10449_v31 = vld [vmem:[#allocation8 + $0x3e4] ss:$16 sps:$4 sm:$0xff]   ;;  %s11415_s28 = scalar_lea.vmem %s11414_s18, 32  ;;  %p11416_p7 = scmp.lt.s32.totalorder %s8558_s14, %s11414_s18 }
  0x90   : > { %683 = vmatprep.subr.bf16.mxu0 %v10387_v40  ;;  %v10444_v29 = vld [vmem:[#allocation8 + $0x400] ss:$16 sps:$4 sm:$0xff]   ;;  %991 = vst.msk [vmem:[#allocation2] ss:$8 sm:$0x7] %vm989_vm5, %v11499_v0  ;;  %p11412_p4 = pneg %p11411_p9  ;;  %p11417_p5 = scmp.lt.s32.totalorder %s11415_s28, %s11409_s23 }
  0x91   : > { %v10447_v32 = vld [vmem:[#allocation8 + $0x3e0] ss:$16 sps:$4 sm:$0xff]   ;;  %994 = vst.msk [vmem:[#allocation2 + $0x31] ss:$8 sm:$0x7] %vm989_vm5, %v11499_v0 }
  0x92   : > { %10224 = vmatpush3.bf16.msra.mxu1 %v10388_v41  ;;  %v10452_v33 = vld [vmem:[#allocation8 + $0x3c4] ss:$16 sps:$4 sm:$0xff]   ;;  %v10450_v34 = vld [vmem:[#allocation8 + $0x3c0] ss:$16 sps:$4 sm:$0xff]   ;;  %p11418_p13 = por %p11417_p5, %p11416_p7 }
  0x93   : > { %684 = vmatpush1.bf16.msra.mxu0 %v10385_v42  ;;  %10225 = vmatprep.subr.bf16.mxu1 %v11499_v0  ;;  %v10455_v35 = vld [vmem:[#allocation8 + $0x3a4] ss:$16 sps:$4 sm:$0xff]   ;;  %v10453_v36 = vld [vmem:[#allocation8 + $0x3a0] ss:$16 sps:$4 sm:$0xff]  }
  0x94   : > { %685 = vmatprep.subr.bf16.mxu0 %v10391_v43  ;;  %v10456_v37 = vld [vmem:[#allocation8 + $0x380] ss:$16 sps:$4 sm:$0xff]   ;;  %v10458_v38 = vld [vmem:[#allocation8 + $0x384] ss:$16 sps:$4 sm:$0xff]   ;;  %p11419_p6 = pnand %p11418_p13, %p11412_p4 }
  0x95   : > { %v10459_v39 = vld [vmem:[#allocation8 + $0x460] ss:$16 sps:$4 sm:$0xff]   ;;  %v10461_v40 = vld [vmem:[#allocation8 + $0x464] ss:$16 sps:$4 sm:$0xff]  }
  0x96   : > { %10226 = vmatpush3.bf16.msra.mxu1 %v10392_v45  ;;  %v10464_v41 = vld [vmem:[#allocation8 + $0x364] ss:$16 sps:$4 sm:$0xff]   ;;  %v10462_v42 = vld [vmem:[#allocation8 + $0x360] ss:$16 sps:$4 sm:$0xff]   ;;  %v10473_v45 = vld [vmem:[#allocation8 + $0x32c] ss:$16 sps:$4 sm:$0xff]  }
  0x97   : > { %686 = vmatpush1.bf16.msra.mxu0 %v10389_v44  ;;  %10227 = vmatprep.subr.bf16.mxu1 %v11499_v0  ;;  %v10467_v43 = vld [vmem:[#allocation8 + $0x444] ss:$16 sps:$4 sm:$0xff]  }
  0x98   : > { %687 = vmatprep.subr.bf16.mxu0 %v10395_v46  ;;  %v10470_v44 = vld [vmem:[#allocation8 + $0x344] ss:$16 sps:$4 sm:$0xff]   ;;  %v10468_v46 = vld [vmem:[#allocation8 + $0x340] ss:$16 sps:$4 sm:$0xff]  }
  0x9a   : > { %10228 = vmatpush3.bf16.msra.mxu1 %v10396_v47  ;;  %v10476_v47 = vld [vmem:[#allocation8 + $0x46c] ss:$16 sps:$4 sm:$0xff]  }
  0x9b   : > { %688 = vmatpush1.bf16.msra.mxu0 %v10393_v49  ;;  %10233 = vmatprep.subr.bf16.mxu1 %v11499_v0 }
  0x9c   : > { %8743 = vmatprep.subr.msk.bf16.mxu0 %vm496_vm1, %v8741_v51 }
  0x9d   : > { %10230 = vmatmul.mubr.msk.bf16.vlgmr.msra.gmra.mxu1 %vm492_vm3, %v11698_v18 }
  0x9e   : > { %8725 = vmatmul.mubr.msk.bf16.vlgmr.msra.gmra.mxu0 %vm492_vm3, %v11698_v18  ;;  %10234 = vmatpush3.bf16.msra.mxu1 %v866_v54  ;;  %v10431_v18 = vld [vmem:[#allocation8 + $0x2a4] ss:$16 sps:$4 sm:$0xff]  }
  0x9f   : > { %875 = vmatpush1.bf16.msra.mxu0 %v860_v55  ;;  %10235 = vmatprep.subr.bf16.mxu1 %v11499_v0 }
  0xa0   : > { %876 = vmatprep.subr.bf16.mxu0 %v10402_v53  ;;  %900 = vmatprep.mubr.bf16.mxu0 %v11501_v1 }
  0xa1   : > { %10243 = vmatprep.mubr.msk.bf16.mxu1 %vm11500_vm0, %v11499_v0 }
  0xa2   : > { %10236 = vmatpush3.bf16.msra.mxu1 %v10403_v56 }
  0xa3   : > { %877 = vmatpush1.bf16.msra.mxu0 %v10400_v57  ;;  %10237 = vmatprep.subr.bf16.mxu1 %v11499_v0 }
  0xa4   : > { %878 = vmatprep.subr.bf16.mxu0 %v10406_v58 }
  0xa6   : > { %10238 = vmatpush3.bf16.msra.mxu1 %v10407_v59 }
  0xa7   : > { %879 = vmatpush1.bf16.msra.mxu0 %v10404_v60  ;;  %10239 = vmatprep.subr.bf16.mxu1 %v11499_v0 }
  0xa8   : > { %880 = vmatprep.subr.bf16.mxu0 %v10410_v62  ;;  %v11746_v62 = vshrl.u32 %v960_v30, 7 }
  0xaa   : > { %10240 = vmatpush3.bf16.msra.mxu1 %v10411_v63  ;;  %v962_v4 = vsub.s32 0, %v11746_v62 }
  0xab   : > { %881 = vmatpush1.bf16.msra.mxu0 %v10408_v2  ;;  %10241 = vmatprep.subr.bf16.mxu1 %v11499_v0  ;;  %v10465_v0 = vld [vmem:[#allocation8 + $0x440] ss:$16 sps:$4 sm:$0xff]   ;;  %v970_v2 = vsub.s32 2, %v11746_v62 }
  0xac   : > { %882 = vmatprep.subr.bf16.mxu0 %v10414_v3  ;;  %v958_v3 = vld [vmem:[#allocation6] sm:$0x7] }
  0xae   : > { %10242 = vmatpush3.bf16.msra.mxu1 %v10415_v5  ;;  %v966_v5 = vsub.s32 1, %v11746_v62 }
  0xaf   : > { %883 = vmatpush1.bf16.msra.mxu0 %v10412_v6  ;;  %1655 = vmatprep.subr.bf16.mxu1 %v10461_v40 }
  0xb0   : > { %1600 = vmatprep.subr.bf16.mxu0 %v10419_v10 }
  0xb1   : > { %10244 = vmatmul.mubr.msk.bf16.vlgmr.msra.gmra.mxu1 %vm492_vm3, %v783_v9 }
  0xb2   : > { %8744 = vmatmul.mubr.msk.bf16.vlgmr.msra.gmra.mxu0 %vm492_vm3, %v783_v9  ;;  %1675 = vmatprep.mubr.bf16.mxu1 %v11501_v1  ;;  %v971_v9 = vrot.slane %v958_v3, %v970_v2 }
  0xb3   : > { %1601 = vmatpush1.bf16.msra.mxu0 %v10417_v11  ;;  %1656 = vmatpush1.bf16.msra.mxu1 %v10459_v39  ;;  %v963_v11 = vrot.slane %v958_v3, %v962_v4 }
  0xb4   : > { %1602 = vmatprep.subr.bf16.mxu0 %v10422_v12  ;;  %1657 = vmatprep.subr.bf16.mxu1 %v10467_v43 }
  0xb7   : > { %1603 = vmatpush1.bf16.msra.mxu0 %v10420_v13  ;;  %1658 = vmatpush1.bf16.msra.mxu1 %v10465_v0 }
  0xb8   : > { %1604 = vmatprep.subr.bf16.mxu0 %v10425_v14  ;;  %1686 = vmatprep.subr.bf16.mxu1 %v10473_v45 }
  0xbb   : > { %1605 = vmatpush1.bf16.msra.mxu0 %v10423_v15 }
  0xbc   : > { %1606 = vmatprep.subr.bf16.mxu0 %v10428_v16 }
  0xbf   : > { %1607 = vmatpush1.bf16.msra.mxu0 %v10426_v17  ;;  %v967_v17 = vrot.slane %v958_v3, %v966_v5 }
  0xc0   : > { %1608 = vmatprep.subr.bf16.mxu0 %v10431_v18 }
  0xc3   : > { %1609 = vmatpush1.bf16.msra.mxu0 %v10429_v19 }
  0xc4   : > { %1610 = vmatprep.subr.bf16.mxu0 %v10434_v20 }
  0xc7   : > { %1611 = vmatpush1.bf16.msra.mxu0 %v10432_v21 }
  0xc8   : > { %1612 = vmatprep.subr.bf16.mxu0 %v10437_v22 }
  0xcb   : > { %1613 = vmatpush1.bf16.msra.mxu0 %v10435_v23 }
  0xcc   : > { %1614 = vmatprep.subr.bf16.mxu0 %v10440_v24 }
  0xcf   : > { %1615 = vmatpush1.bf16.msra.mxu0 %v10438_v25 }
  0xd0   : > { %1616 = vmatprep.subr.bf16.mxu0 %v10443_v26 }
  0xd3   : > { %1617 = vmatpush2.bf16.msra.mxu0 %v10441_v27 }
  0xd4   : > { %1618 = vmatprep.subr.bf16.mxu0 %v10446_v28 }
  0xd7   : > { %1619 = vmatpush2.bf16.msra.mxu0 %v10444_v29 }
  0xd8   : > { %1620 = vmatprep.subr.bf16.mxu0 %v10449_v31 }
  0xdb   : > { %1621 = vmatpush2.bf16.msra.mxu0 %v10447_v32 }
  0xdc   : > { %1622 = vmatprep.subr.bf16.mxu0 %v10452_v33 }
  0xdf   : > { %1623 = vmatpush2.bf16.msra.mxu0 %v10450_v34 }
  0xe0   : > { %1624 = vmatprep.subr.bf16.mxu0 %v10455_v35 }
  0xe3   : > { %1625 = vmatpush2.bf16.msra.mxu0 %v10453_v36 }
  0xe4   : > { %1626 = vmatprep.subr.bf16.mxu0 %v10458_v38 }
  0xe7   : > { %1627 = vmatpush2.bf16.msra.mxu0 %v10456_v37 }
  0xe8   : > { %1628 = vmatprep.subr.bf16.mxu0 %v10464_v41 }
  0xeb   : > { %1629 = vmatpush2.bf16.msra.mxu0 %v10462_v42 }
  0xec   : > { %1630 = vmatprep.subr.bf16.mxu0 %v10470_v44 }
  0xef   : > { %1631 = vmatpush2.bf16.msra.mxu0 %v10468_v46 }
  0xf0   : > { %1741 = vmatprep.subr.bf16.mxu0 %v10476_v47 }
 0x149   : > { %v583_v48 = vpop.f32.mrf.mxu1 }
 0x14a   : > { %v540_v52 = vpop.f32.mrf.mxu0 }
 0x14b   : > { %v10217_v49 = vpop.f32.mrf.mxu1 }
 0x14c   : > { %v542_v53 = vpop.f32.mrf.mxu0 }
 0x14d   : > { %v586_v50 = vpop.f32.mrf.mxu1 }
 0x14e   : > { %v544_v54 = vpop.f32.mrf.mxu0 }
 0x14f   : > { %v10218_v51 = vpop.f32.mrf.mxu1 }
 0x150   : > { %v546_v56 = vpop.f32.mrf.mxu0 }
 0x15d   : > { %v750_v55 = vpop.f32.mrf.mxu1 }
 0x15e   : > { %v707_v59 = vpop.f32.mrf.mxu0  ;;  %v751_v8 = vadd.f32 %v750_v55, %v583_v48 }
 0x15f   : > { %v10231_v57 = vpop.f32.mrf.mxu1  ;;  %v708_v7 = vadd.f32 %v707_v59, %v540_v52 }
 0x160   : > { %v709_v61 = vpop.f32.mrf.mxu0 }
 0x161   : > { %v753_v58 = vpop.f32.mrf.mxu1  ;;  %v710_v10 = vadd.f32 %v709_v61, %v542_v53 }
 0x162   : > { %v711_v63 = vpop.f32.mrf.mxu0  ;;  %v754_v19 = vadd.f32 %v753_v58, %v586_v50 }
 0x163   : > { %v10232_v60 = vpop.f32.mrf.mxu1  ;;  %v712_v15 = vadd.f32 %v711_v63, %v544_v54 }
 0x164   : > { %v713_v6 = vpop.f32.mrf.mxu0 }
 0x165   : > { %v714_v22 = vadd.f32 %v713_v6, %v546_v56 }
 0x171   : > { %v945_v12 = vpop.f32.mrf.mxu1 }
 0x172   : > { %v902_v13 = vpop.f32.mrf.mxu0  ;;  %v954_v14 = vadd.f32 %v945_v12, %v751_v8 }
 0x173   : > { %v952_v16 = vadd.f32 %v902_v13, %v708_v7  ;;  %v10245_v18 = vpop.f32.mrf.mxu1 }
 0x174   : > { %v977_v20 = vadd.f32 %v971_v9, %v954_v14  ;;  %v904_v21 = vpop.f32.mrf.mxu0 }
 0x175   : > { %v975_v23 = vadd.f32 %v963_v11, %v952_v16  ;;  %v953_v24 = vadd.f32 %v904_v21, %v710_v10  ;;  %v948_v25 = vpop.f32.mrf.mxu1 }
 0x176   : > { %v983_v26 = vmax.f32 %v977_v20, 0.0  ;;  %v906_v27 = vpop.f32.mrf.mxu0  ;;  %v957_v28 = vadd.f32 %v948_v25, %v754_v19  ;;  %v10471_v20 = vld [vmem:[#allocation8 + $0x328] ss:$16 sps:$4 sm:$0xff]  }
 0x177   : > { %v981_v29 = vmax.f32 %v975_v23, 0.0  ;;  %v976_v30 = vadd.f32 %v967_v17, %v953_v24  ;;  %v955_v31 = vadd.f32 %v906_v27, %v712_v15  ;;  %v10246_v32 = vpop.f32.mrf.mxu1  ;;  %v10474_v24 = vld [vmem:[#allocation8 + $0x468] ss:$16 sps:$4 sm:$0xff]  }
 0x178   : > { %v1005_v33 = vrot.slane %v983_v26, 7  ;;  %v980_v34 = vadd.f32 %v971_v9, %v957_v28  ;;  %v908_v35 = vpop.f32.mrf.mxu0  ;;  %v10479_v26 = vld [vmem:[#allocation8 + $0x30c] ss:$16 sps:$4 sm:$0xff]  }
 0x179   : > { %v1003_v36 = vrot.slane %v981_v29, 7  ;;  %v982_v37 = vmax.f32 %v976_v30, 0.0  ;;  %v978_v38 = vadd.f32 %v963_v11, %v955_v31  ;;  %v956_v39 = vadd.f32 %v908_v35, %v714_v22  ;;  %v10482_v29 = vld [vmem:[#allocation8 + $0x44c] ss:$16 sps:$4 sm:$0xff]   ;;  %v10477_v30 = vld [vmem:[#allocation8 + $0x308] ss:$16 sps:$4 sm:$0xff]  }
 0x17a   : > { %1024 = vst.msk [vmem:[#allocation2 + $0x10] sm:$0xfe] %vm1023_vm6, %v1005_v33  ;;  %v986_v40 = vmax.f32 %v980_v34, 0.0  ;;  %v10480_v31 = vld [vmem:[#allocation8 + $0x448] ss:$16 sps:$4 sm:$0xff]  }
 0x17b   : > { %1021 = vst [vmem:[#allocation2] sm:$0xfe] %v1003_v36  ;;  %v1004_v41 = vrot.slane %v982_v37, 7  ;;  %v984_v42 = vmax.f32 %v978_v38, 0.0  ;;  %v979_v43 = vadd.f32 %v967_v17, %v956_v39  ;;  %v10485_v32 = vld [vmem:[#allocation8 + $0x2ec] ss:$16 sps:$4 sm:$0xff]  }
 0x17c   : > { %v1010_v0 = vrot.slane %v986_v40, 7  ;;  %v10483_v34 = vld [vmem:[#allocation8 + $0x2e8] ss:$16 sps:$4 sm:$0xff]   ;;  %v10486_v35 = vld [vmem:[#allocation8 + $0xe0] ss:$16 sps:$4 sm:$0xff]  }
 0x17d   : > { %1022 = vst [vmem:[#allocation2 + $0x8] sm:$0xfe] %v1004_v41  ;;  %v1006_v44 = vrot.slane %v984_v42, 7  ;;  %v985_v45 = vmax.f32 %v979_v43, 0.0  ;;  %v10494_v38 = vld [vmem:[#allocation8 + $0xc4] ss:$16 sps:$4 sm:$0xff]  }
 0x17e   : > { %v1011_v46 = vsel %vm1002_vm7, %v1005_v33, %v1010_v0  ;;  %1032 = vst.msk [vmem:[#allocation2 + $0x40] sm:$0x1] %vm1031_vm8, %v1010_v0  ;;  %v10488_v33 = vld [vmem:[#allocation8 + $0xe4] ss:$16 sps:$4 sm:$0xff]   ;;  %v10489_v39 = vld [vmem:[#allocation8 + $0x2c8] ss:$16 sps:$4 sm:$0xff]  }
 0x17f   : > { %v11759_v47 = vsel %vm1002_vm7, %v1003_v36, %v1006_v44  ;;  %1029 = vst [vmem:[#allocation2 + $0x30] sm:$0x1] %v1006_v44  ;;  %1028 = vst.msk [vmem:[#allocation2 + $0x28] sm:$0xff] %vm1027_vm9, %v1011_v46  ;;  %v1008_v48 = vrot.slane %v985_v45, 7  ;;  %v10491_v36 = vld [vmem:[#allocation8 + $0x2cc] ss:$16 sps:$4 sm:$0xff]  }
 0x180   : > { %v10492_v40 = vld [vmem:[#allocation8 + $0xc0] ss:$16 sps:$4 sm:$0xff]   ;;  %v10497_v42 = vld [vmem:[#allocation8 + $0x2ac] ss:$16 sps:$4 sm:$0xff]   ;;  %v10495_v43 = vld [vmem:[#allocation8 + $0x2a8] ss:$16 sps:$4 sm:$0xff]  }
 0x181   : > { %v11763_v49 = vsel %vm1002_vm7, %v1004_v41, %v1008_v48  ;;  %1030 = vst [vmem:[#allocation2 + $0x38] sm:$0x1] %v1008_v48  ;;  %v1116_v57 = vld [vmem:[#allocation2 + $0x10] sm:$0xfe]  ;;  %v10503_v45 = vld [vmem:[#allocation8 + $0x28c] ss:$16 sps:$4 sm:$0xff]  }
 0x182   : > { %v1114_v50 = vld [vmem:[#allocation2] sm:$0xfe]  ;;  %v10501_v48 = vld [vmem:[#allocation8 + $0x288] ss:$16 sps:$4 sm:$0xff]  }
 0x183   : > { %v1120_v51 = vpack.c.bf16 %v11759_v47, %v1114_v50  ;;  %v10500_v0 = vld [vmem:[#allocation8 + $0xa4] ss:$16 sps:$4 sm:$0xff]   ;;  %v10498_v44 = vld [vmem:[#allocation8 + $0xa0] ss:$16 sps:$4 sm:$0xff]  }
 0x184   : > { %v1115_v52 = vld [vmem:[#allocation2 + $0x8] sm:$0xfe]  ;;  %v10506_v46 = vld [vmem:[#allocation8 + $0x84] ss:$16 sps:$4 sm:$0xff]   ;;  %v10504_v50 = vld [vmem:[#allocation8 + $0x80] ss:$16 sps:$4 sm:$0xff]  }
 0x185   : > { %v1119_v53 = vld [vmem:[#allocation2 + $0x40] sm:$0x1]  ;;  %v1121_v54 = vpack.c.bf16 %v11763_v49, %v1115_v52  ;;  %v1202_v55 = vshll.u32 %v1120_v51, 16  ;;  %v1200_v60 = vshrl.u32 %v1120_v51, 16  ;;  %v1034_v37 = vld [vmem:[#allocation2 + $0x8] sm:$0xff] }
 0x186   : > { %v11767_v56 = vld [vmem:[#allocation2 + $0x28] sm:$0xff]  ;;  %v1125_v58 = vpack.c.bf16 %v1119_v53, %v1119_v53  ;;  %v1117_v59 = vld [vmem:[#allocation2 + $0x30] sm:$0x1]  ;;  %v11780_v41 = vpack.c.bf16 %v11763_v49, %v1034_v37  ;;  %v10512_v52 = vld [vmem:[#allocation8 + $0x64] ss:$16 sps:$4 sm:$0xff]  }
 0x187   : > { %v1122_v61 = vpack.c.bf16 %v11767_v56, %v1116_v57  ;;  %v1212_v63 = vshrl.u32 %v1121_v54, 16  ;;  %v1214_v3 = vshll.u32 %v1121_v54, 16  ;;  %v1123_v6 = vpack.c.bf16 %v1117_v59, %v1117_v59  ;;  %v10509_v51 = vld [vmem:[#allocation8 + $0x26c] ss:$16 sps:$4 sm:$0xff]   ;;  %v10507_v53 = vld [vmem:[#allocation8 + $0x268] ss:$16 sps:$4 sm:$0xff]  }
 0x188   : > { %v1118_v7 = vld [vmem:[#allocation2 + $0x38] sm:$0x1]  ;;  %v1204_v8 = vrot.slane %v1202_v55, 1  ;;  %v1231_v10 = vshll.u32 %v1125_v58, 16  ;;  %v10510_v54 = vld [vmem:[#allocation8 + $0x60] ss:$16 sps:$4 sm:$0xff]  }
 0x189   : > { %v1226_v9 = vshll.u32 %v1122_v61, 16  ;;  %v1124_v11 = vpack.c.bf16 %v1118_v7, %v1118_v7  ;;  %v1216_v12 = vrot.slane %v1214_v3, 1  ;;  %v1207_v14 = vshll.u32 %v1123_v6, 16  ;;  %v10515_v55 = vld [vmem:[#allocation8 + $0x24c] ss:$16 sps:$4 sm:$0xff]  }
 0x18a   : > { %v1205_v13 = vor.u32 %v1204_v8, %v1200_v60  ;;  %v1224_v15 = vshrl.u32 %v1122_v61, 16  ;;  %v1233_v22 = vrot.slane %v1231_v10, 1  ;;  %v10518_v57 = vld [vmem:[#allocation8 + $0x44] ss:$16 sps:$4 sm:$0xff]   ;;  %v10513_v58 = vld [vmem:[#allocation8 + $0x248] ss:$16 sps:$4 sm:$0xff]  }
 0x18b   : > { %v1228_v16 = vrot.slane %v1226_v9, 1  ;;  %v1217_v17 = vor.u32 %v1216_v12, %v1212_v63  ;;  %v1219_v18 = vshll.u32 %v1124_v11, 16  ;;  %v1209_v19 = vrot.slane %v1207_v14, 1  ;;  %v10516_v59 = vld [vmem:[#allocation8 + $0x40] ss:$16 sps:$4 sm:$0xff]  }
 0x18c   : > { %v10521_v60 = vld [vmem:[#allocation8 + $0x42c] ss:$16 sps:$4 sm:$0xff]   ;;  %v10524_v61 = vld [vmem:[#allocation8 + $0x24] ss:$16 sps:$4 sm:$0xff]   ;;  %v10519_v63 = vld [vmem:[#allocation8 + $0x428] ss:$16 sps:$4 sm:$0xff]  }
 0x18d   : > { %v1229_v21 = vor.u32 %v1228_v16, %v1224_v15  ;;  %v1221_v23 = vrot.slane %v1219_v18, 1  ;;  %v11771_v25 = vsel %vm407_vm2, %v1205_v13, %v1209_v19  ;;  %v10522_v3 = vld [vmem:[#allocation8 + $0x20] ss:$16 sps:$4 sm:$0xff]   ;;  %v10527_v6 = vld [vmem:[#allocation8 + $0x40c] ss:$16 sps:$4 sm:$0xff]  }
 0x18e   : > { %v10530_v7 = vld [vmem:[#allocation8 + $0x4] ss:$16 sps:$4 sm:$0xff]   ;;  %v10525_v8 = vld [vmem:[#allocation8 + $0x408] ss:$16 sps:$4 sm:$0xff]   ;;  %v10528_v9 = vld [vmem:[#allocation8] ss:$16 sps:$4 sm:$0xff]  }
 0x18f   : > { %v1234_v27 = vsel %vm407_vm2, %v1229_v21, %v1233_v22  ;;  %v1222_v28 = vsel %vm407_vm2, %v1217_v17, %v1221_v23  ;;  %v10533_v10 = vld [vmem:[#allocation8 + $0x3ec] ss:$16 sps:$4 sm:$0xff]   ;;  %v10536_v11 = vld [vmem:[#allocation8 + $0x1e4] ss:$16 sps:$4 sm:$0xff]   ;;  %v10531_v12 = vld [vmem:[#allocation8 + $0x3e8] ss:$16 sps:$4 sm:$0xff]  }
 0x190   : > { %8818 = vmatmul.mubr.msk.bf16.vlgmr.msra.gmra.mxu1 %vm1027_vm9, %v1234_v27  ;;  %1632 = vmatprep.mubr.bf16.mxu0 %v1222_v28  ;;  %v10534_v13 = vld [vmem:[#allocation8 + $0x1e0] ss:$16 sps:$4 sm:$0xff]   ;;  %v10539_v14 = vld [vmem:[#allocation8 + $0x3cc] ss:$16 sps:$4 sm:$0xff]   ;;  %v10542_v15 = vld [vmem:[#allocation8 + $0x1c4] ss:$16 sps:$4 sm:$0xff]  }
 0x191   : > { %1687 = vmatpush1.bf16.msra.mxu1 %v10471_v20  ;;  %1633 = vmatmul.mubr.bf16.vlgmr.msra.gmra.mxu0 %v11771_v25  ;;  %v10537_v16 = vld [vmem:[#allocation8 + $0x3c8] ss:$16 sps:$4 sm:$0xff]   ;;  %v10540_v17 = vld [vmem:[#allocation8 + $0x1c0] ss:$16 sps:$4 sm:$0xff]   ;;  %v10545_v18 = vld [vmem:[#allocation8 + $0x3ac] ss:$16 sps:$4 sm:$0xff]  }
 0x192   : > { %1688 = vmatprep.subr.bf16.mxu1 %v10479_v26  ;;  %1742 = vmatpush1.bf16.msra.mxu0 %v10474_v24  ;;  %v10548_v19 = vld [vmem:[#allocation8 + $0x1a4] ss:$16 sps:$4 sm:$0xff]   ;;  %v10543_v20 = vld [vmem:[#allocation8 + $0x3a8] ss:$16 sps:$4 sm:$0xff]   ;;  %v10546_v21 = vld [vmem:[#allocation8 + $0x1a0] ss:$16 sps:$4 sm:$0xff]  }
 0x193   : > { %1743 = vmatprep.subr.bf16.mxu0 %v10482_v29  ;;  %1718 = vmatprep.mubr.bf16.mxu1 %v1222_v28  ;;  %v10551_v22 = vld [vmem:[#allocation8 + $0x38c] ss:$16 sps:$4 sm:$0xff]   ;;  %v10554_v23 = vld [vmem:[#allocation8 + $0x184] ss:$16 sps:$4 sm:$0xff]   ;;  %v10549_v24 = vld [vmem:[#allocation8 + $0x388] ss:$16 sps:$4 sm:$0xff]  }
 0x194   : > { %1761 = vmatprep.mubr.bf16.mxu0 %v11501_v1  ;;  %v10552_v26 = vld [vmem:[#allocation8 + $0x180] ss:$16 sps:$4 sm:$0xff]   ;;  %v10560_v28 = vld [vmem:[#allocation8 + $0x164] ss:$16 sps:$4 sm:$0xff]   ;;  %v10555_v29 = vld [vmem:[#allocation8 + $0x368] ss:$16 sps:$4 sm:$0xff]  }
 0x195   : > { %1689 = vmatpush1.bf16.msra.mxu1 %v10477_v30  ;;  %v10558_v30 = vld [vmem:[#allocation8 + $0x160] ss:$16 sps:$4 sm:$0xff]  }
 0x196   : > { %1690 = vmatprep.subr.bf16.mxu1 %v10485_v32  ;;  %1744 = vmatpush1.bf16.msra.mxu0 %v10480_v31  ;;  %v10563_v31 = vld [vmem:[#allocation8 + $0x34c] ss:$16 sps:$4 sm:$0xff]   ;;  %v10566_v32 = vld [vmem:[#allocation8 + $0x144] ss:$16 sps:$4 sm:$0xff]   ;;  %v10567_v37 = vld [vmem:[#allocation8 + $0x220] ss:$16 sps:$4 sm:$0xff]  }
 0x197   : > { %2135 = vmatprep.subr.bf16.mxu0 %v10488_v33  ;;  %v10561_v33 = vld [vmem:[#allocation8 + $0x348] ss:$16 sps:$4 sm:$0xff]  }
 0x199   : > { %1691 = vmatpush1.bf16.msra.mxu1 %v10483_v34  ;;  %8819 = vmatmul.mubr.msk.bf16.vlgmr.msra.gmra.mxu0 %vm1027_vm9, %v1234_v27  ;;  %v10557_v27 = vld [vmem:[#allocation8 + $0x36c] ss:$16 sps:$4 sm:$0xff]   ;;  %v10564_v34 = vld [vmem:[#allocation8 + $0x140] ss:$16 sps:$4 sm:$0xff]  }
 0x19a   : > { %1692 = vmatprep.subr.bf16.mxu1 %v10491_v36  ;;  %2136 = vmatpush1.bf16.msra.mxu0 %v10486_v35  ;;  %v10569_v35 = vld [vmem:[#allocation8 + $0x224] ss:$16 sps:$4 sm:$0xff]  }
 0x19b   : > { %2167 = vmatprep.mubr.bf16.mxu0 %v11780_v41  ;;  %2137 = vmatprep.subr.bf16.mxu0 %v10494_v38  ;;  %v10572_v36 = vld [vmem:[#allocation8 + $0x124] ss:$16 sps:$4 sm:$0xff]   ;;  %v10570_v38 = vld [vmem:[#allocation8 + $0x120] ss:$16 sps:$4 sm:$0xff]  }
 0x19d   : > { %1693 = vmatpush1.bf16.msra.mxu1 %v10489_v39  ;;  %v10575_v39 = vld [vmem:[#allocation8 + $0x204] ss:$16 sps:$4 sm:$0xff]  }
 0x19e   : > { %1694 = vmatprep.subr.bf16.mxu1 %v10497_v42  ;;  %2138 = vmatpush1.bf16.msra.mxu0 %v10492_v40  ;;  %v10578_v40 = vld [vmem:[#allocation8 + $0x104] ss:$16 sps:$4 sm:$0xff]   ;;  %v2308_v42 = vld [vmem:[#allocation2 + $0x8] sm:$0xfc] }
 0x19f   : > { %2139 = vmatprep.subr.bf16.mxu0 %v10500_v0  ;;  %v10573_v0 = vld [vmem:[#allocation8 + $0x200] ss:$16 sps:$4 sm:$0xff]  }
 0x1a1   : > { %1695 = vmatpush1.bf16.msra.mxu1 %v10495_v43  ;;  %v2307_v43 = vld [vmem:[#allocation2] sm:$0xfc] }
 0x1a2   : > { %1696 = vmatprep.subr.bf16.mxu1 %v10503_v45  ;;  %2140 = vmatpush1.bf16.msra.mxu0 %v10498_v44  ;;  %v10576_v44 = vld [vmem:[#allocation8 + $0x100] ss:$16 sps:$4 sm:$0xff]   ;;  %v10581_v45 = vld [vmem:[#allocation8 + $0xec] ss:$16 sps:$4 sm:$0xff]  }
 0x1a3   : > { %2141 = vmatprep.subr.bf16.mxu0 %v10506_v46  ;;  %v2311_v46 = vld [vmem:[#allocation2 + $0x38] sm:$0x3] }
 0x1a5   : > { %1697 = vmatpush1.bf16.msra.mxu1 %v10501_v48  ;;  %v10584_v48 = vld [vmem:[#allocation8 + $0x22c] ss:$16 sps:$4 sm:$0xff]  }
 0x1a6   : > { %1698 = vmatprep.subr.bf16.mxu1 %v10509_v51  ;;  %2142 = vmatpush1.bf16.msra.mxu0 %v10504_v50  ;;  %v2314_v50 = vpack.c.bf16 %v11763_v49, %v2308_v42  ;;  %v2309_v51 = vld [vmem:[#allocation2 + $0x10] sm:$0xfc]  ;;  %v10627_v42 = vld [vmem:[#allocation8 + $0x1e8] ss:$16 sps:$4 sm:$0xff]  }
 0x1a7   : > { %2143 = vmatprep.subr.bf16.mxu0 %v10512_v52  ;;  %v2312_v52 = vld [vmem:[#allocation2 + $0x40] sm:$0x3] }
 0x1a9   : > { %1699 = vmatpush1.bf16.msra.mxu1 %v10507_v53  ;;  %v2310_v53 = vld [vmem:[#allocation2 + $0x30] sm:$0x3] }
 0x1aa   : > { %1700 = vmatprep.subr.bf16.mxu1 %v10515_v55  ;;  %2144 = vmatpush1.bf16.msra.mxu0 %v10510_v54  ;;  %v2313_v54 = vpack.c.bf16 %v11759_v47, %v2307_v43  ;;  %v1035_v55 = vld [vmem:[#allocation2 + $0x10] sm:$0xff]  ;;  %v10635_v43 = vld [vmem:[#allocation8 + $0x1cc] ss:$16 sps:$4 sm:$0xff]  }
 0x1ab   : > { %2145 = vmatprep.subr.bf16.mxu0 %v10518_v57  ;;  %v10579_v57 = vld [vmem:[#allocation8 + $0xe8] ss:$16 sps:$4 sm:$0xff]   ;;  %v1041_v49 = vpack.c.bf16 %v11767_v56, %v1035_v55 }
 0x1ac   : > { %v10645_v55 = vld [vmem:[#allocation8 + $0x188] ss:$16 sps:$4 sm:$0xff]  }
 0x1ad   : > { %1701 = vmatpush1.bf16.msra.mxu1 %v10513_v58  ;;  %v10587_v58 = vld [vmem:[#allocation8 + $0xcc] ss:$16 sps:$4 sm:$0xff]  }
 0x1ae   : > { %1702 = vmatprep.subr.bf16.mxu1 %v10521_v60  ;;  %2146 = vmatpush1.bf16.msra.mxu0 %v10516_v59  ;;  %v10582_v59 = vld [vmem:[#allocation8 + $0x228] ss:$16 sps:$4 sm:$0xff]   ;;  %v2317_v60 = vpack.c.bf16 %v2311_v46, %v2311_v46  ;;  %v10641_v46 = vld [vmem:[#allocation8 + $0x1ac] ss:$16 sps:$4 sm:$0xff]  }
 0x1af   : > { %2147 = vmatprep.subr.bf16.mxu0 %v10524_v61  ;;  %v2315_v61 = vpack.c.bf16 %v11767_v56, %v2309_v51  ;;  %v10639_v51 = vld [vmem:[#allocation8 + $0x1a8] ss:$16 sps:$4 sm:$0xff]  }
 0x1b1   : > { %1703 = vmatpush2.bf16.msra.mxu1 %v10519_v63  ;;  %v2318_v63 = vpack.c.bf16 %v2312_v52, %v2312_v52  ;;  %v10647_v52 = vld [vmem:[#allocation8 + $0x18c] ss:$16 sps:$4 sm:$0xff]  }
 0x1b2   : > { %1704 = vmatprep.subr.bf16.mxu1 %v10527_v6  ;;  %2148 = vmatpush1.bf16.msra.mxu0 %v10522_v3  ;;  %v2316_v3 = vpack.c.bf16 %v2310_v53, %v2310_v53  ;;  %v10590_v6 = vld [vmem:[#allocation8 + $0x20c] ss:$16 sps:$4 sm:$0xff]   ;;  %v10642_v53 = vld [vmem:[#allocation8 + $0x660] ss:$16 sps:$4 sm:$0xff]  }
 0x1b3   : > { %2149 = vmatprep.subr.bf16.mxu0 %v10530_v7  ;;  %v2401_v7 = vrot.slane %v2314_v50, 1  ;;  %v11798_v56 = vrot.slane %v2318_v63, 1  ;;  %v10644_v50 = vld [vmem:[#allocation8 + $0x664] ss:$16 sps:$4 sm:$0xff]  }
 0x1b4   : > { %v10662_v63 = vld [vmem:[#allocation8 + $0x604] ss:$16 sps:$4 sm:$0xff]  }
 0x1b5   : > { %1705 = vmatpush2.bf16.msra.mxu1 %v10525_v8  ;;  %v11789_v8 = vrot.slane %v2313_v54, 1  ;;  %v10650_v54 = vld [vmem:[#allocation8 + $0x644] ss:$16 sps:$4 sm:$0xff]  }
 0x1b6   : > { %1706 = vmatprep.subr.bf16.mxu1 %v10533_v10  ;;  %2150 = vmatpush1.bf16.msra.mxu0 %v10528_v9  ;;  %v10585_v9 = vld [vmem:[#allocation8 + $0xc8] ss:$16 sps:$4 sm:$0xff]  }
 0x1b7   : > { %2151 = vmatprep.subr.bf16.mxu0 %v10536_v11  ;;  %v10593_v11 = vld [vmem:[#allocation8 + $0xac] ss:$16 sps:$4 sm:$0xff]  }
 0x1b9   : > { %1707 = vmatpush2.bf16.msra.mxu1 %v10531_v12  ;;  %v10588_v12 = vld [vmem:[#allocation8 + $0x208] ss:$16 sps:$4 sm:$0xff]  }
 0x1ba   : > { %1708 = vmatprep.subr.bf16.mxu1 %v10539_v14  ;;  %2152 = vmatpush2.bf16.msra.mxu0 %v10534_v13  ;;  %v2402_v13 = vrot.slane %v2317_v60, 1  ;;  %v11796_v14 = vrot.slane %v2315_v61, 1  ;;  %v10659_v60 = vld [vmem:[#allocation8 + $0x14c] ss:$16 sps:$4 sm:$0xff]   ;;  %v10654_v61 = vld [vmem:[#allocation8 + $0x620] ss:$16 sps:$4 sm:$0xff]  }
 0x1bb   : > { %2153 = vmatprep.subr.bf16.mxu0 %v10542_v15  ;;  %v11800_v15 = vrot.slane %v2316_v3, 1  ;;  %v10657_v3 = vld [vmem:[#allocation8 + $0x148] ss:$16 sps:$4 sm:$0xff]  }
 0x1bd   : > { %1709 = vmatpush2.bf16.msra.mxu1 %v10537_v16  ;;  %v10596_v16 = vld [vmem:[#allocation8 + $0x564] ss:$16 sps:$4 sm:$0xff]  }
 0x1be   : > { %1710 = vmatprep.subr.bf16.mxu1 %v10545_v18  ;;  %2154 = vmatpush2.bf16.msra.mxu0 %v10540_v17  ;;  %v10591_v17 = vld [vmem:[#allocation8 + $0xa8] ss:$16 sps:$4 sm:$0xff]   ;;  %v10602_v18 = vld [vmem:[#allocation8 + $0x544] ss:$16 sps:$4 sm:$0xff]  }
 0x1bf   : > { %2155 = vmatprep.subr.bf16.mxu0 %v10548_v19  ;;  %v10597_v19 = vld [vmem:[#allocation8 + $0x88] ss:$16 sps:$4 sm:$0xff]  }
 0x1c1   : > { %1711 = vmatpush2.bf16.msra.mxu1 %v10543_v20  ;;  %v10605_v20 = vld [vmem:[#allocation8 + $0x6c] ss:$16 sps:$4 sm:$0xff]  }
 0x1c2   : > { %1712 = vmatprep.subr.bf16.mxu1 %v10551_v22  ;;  %2156 = vmatpush2.bf16.msra.mxu0 %v10546_v21  ;;  %v10600_v21 = vld [vmem:[#allocation8 + $0x540] ss:$16 sps:$4 sm:$0xff]   ;;  %v11806_v22 = vsel %vm780_vm4, %v2401_v7, %v2402_v13  ;;  %v10668_v7 = vld [vmem:[#allocation8 + $0x5e4] ss:$16 sps:$4 sm:$0xff]  }
 0x1c3   : > { %2157 = vmatprep.subr.bf16.mxu0 %v10554_v23  ;;  %v10608_v23 = vld [vmem:[#allocation8 + $0x524] ss:$16 sps:$4 sm:$0xff]  }
 0x1c4   : > { %v10674_v13 = vld [vmem:[#allocation8 + $0x5c4] ss:$16 sps:$4 sm:$0xff]  }
 0x1c5   : > { %1713 = vmatpush2.bf16.msra.mxu1 %v10549_v24  ;;  %v10603_v24 = vld [vmem:[#allocation8 + $0x68] ss:$16 sps:$4 sm:$0xff]  }
 0x1c6   : > { %1714 = vmatprep.subr.bf16.mxu1 %v10557_v27  ;;  %2158 = vmatpush2.bf16.msra.mxu0 %v10552_v26  ;;  %v10611_v26 = vld [vmem:[#allocation8 + $0x4c] ss:$16 sps:$4 sm:$0xff]   ;;  %v10606_v27 = vld [vmem:[#allocation8 + $0x520] ss:$16 sps:$4 sm:$0xff]  }
 0x1c7   : > { %2159 = vmatprep.subr.bf16.mxu0 %v10560_v28  ;;  %v10614_v28 = vld [vmem:[#allocation8 + $0x504] ss:$16 sps:$4 sm:$0xff]  }
 0x1c9   : > { %1715 = vmatpush2.bf16.msra.mxu1 %v10555_v29  ;;  %v10609_v29 = vld [vmem:[#allocation8 + $0x48] ss:$16 sps:$4 sm:$0xff]  }
 0x1ca   : > { %1716 = vmatprep.subr.bf16.mxu1 %v10563_v31  ;;  %2160 = vmatpush2.bf16.msra.mxu0 %v10558_v30  ;;  %v10617_v30 = vld [vmem:[#allocation8 + $0x2c] ss:$16 sps:$4 sm:$0xff]   ;;  %v10612_v31 = vld [vmem:[#allocation8 + $0x500] ss:$16 sps:$4 sm:$0xff]  }
 0x1cb   : > { %2161 = vmatprep.subr.bf16.mxu0 %v10566_v32  ;;  %v10620_v32 = vld [vmem:[#allocation8 + $0x4e4] ss:$16 sps:$4 sm:$0xff]  }
 0x1cd   : > { %1717 = vmatpush2.bf16.msra.mxu1 %v10561_v33  ;;  %v10615_v33 = vld [vmem:[#allocation8 + $0x28] ss:$16 sps:$4 sm:$0xff]  }
 0x1ce   : > { %2162 = vmatpush2.bf16.msra.mxu0 %v10564_v34  ;;  %2190 = vmatprep.subr.bf16.mxu1 %v10569_v35  ;;  %v10623_v34 = vld [vmem:[#allocation8 + $0xc] ss:$16 sps:$4 sm:$0xff]   ;;  %v10618_v35 = vld [vmem:[#allocation8 + $0x4e0] ss:$16 sps:$4 sm:$0xff]  }
 0x1cf   : > { %2163 = vmatprep.subr.bf16.mxu0 %v10572_v36  ;;  %v10626_v36 = vld [vmem:[#allocation8 + $0x4c4] ss:$16 sps:$4 sm:$0xff]  }
 0x1d0   : > { %1719 = vmatmul.mubr.bf16.vlgmr.msra.gmra.mxu1 %v11771_v25  ;;  %v1033_v25 = vld [vmem:[#allocation2] sm:$0xff] }
 0x1d1   : > { %2191 = vmatpush1.bf16.msra.mxu1 %v10567_v37  ;;  %2210 = vmatprep.mubr.bf16.mxu1 %v11501_v1  ;;  %v11793_v10 = vpack.c.bf16 %v11759_v47, %v1033_v25  ;;  %v10599_v47 = vld [vmem:[#allocation8 + $0x8c] ss:$16 sps:$4 sm:$0xff]   ;;  %v10621_v37 = vld [vmem:[#allocation8 + $0x8] ss:$16 sps:$4 sm:$0xff]   ;;  %v10648_v25 = vld [vmem:[#allocation8 + $0x640] ss:$16 sps:$4 sm:$0xff]  }
 0x1d2   : > { %2164 = vmatpush2.bf16.msra.mxu0 %v10570_v38  ;;  %2192 = vmatprep.subr.bf16.mxu1 %v10575_v39  ;;  %v10629_v38 = vld [vmem:[#allocation8 + $0x1ec] ss:$16 sps:$4 sm:$0xff]   ;;  %v10624_v39 = vld [vmem:[#allocation8 + $0x4c0] ss:$16 sps:$4 sm:$0xff]  }
 0x1d3   : > { %2165 = vmatprep.subr.bf16.mxu0 %v10578_v40  ;;  %v10632_v40 = vld [vmem:[#allocation8 + $0x4a4] ss:$16 sps:$4 sm:$0xff]  }
 0x1d5   : > { %2193 = vmatpush1.bf16.msra.mxu1 %v10573_v0  ;;  %v10630_v0 = vld [vmem:[#allocation8 + $0x4a0] ss:$16 sps:$4 sm:$0xff]  }
 0x1d6   : > { %2166 = vmatpush2.bf16.msra.mxu0 %v10576_v44  ;;  %2221 = vmatprep.subr.bf16.mxu1 %v10581_v45  ;;  %v10638_v44 = vld [vmem:[#allocation8 + $0x484] ss:$16 sps:$4 sm:$0xff]   ;;  %v10633_v45 = vld [vmem:[#allocation8 + $0x1c8] ss:$16 sps:$4 sm:$0xff]  }
 0x1d7   : > { %2276 = vmatprep.subr.bf16.mxu0 %v10584_v48  ;;  %v10636_v48 = vld [vmem:[#allocation8 + $0x480] ss:$16 sps:$4 sm:$0xff]  }
 0x1d8   : > { %8892 = vmatmul.mubr.msk.bf16.vlgmr.msra.gmra.mxu1 %vm1027_vm9, %v1041_v49 }
 0x1d9   : > { %2222 = vmatpush1.bf16.msra.mxu1 %v10579_v57  ;;  %2253 = vmatprep.mubr.bf16.mxu1 %v11780_v41  ;;  %v10594_v41 = vld [vmem:[#allocation8 + $0x560] ss:$16 sps:$4 sm:$0xff]   ;;  %v10653_v57 = vld [vmem:[#allocation8 + $0x16c] ss:$16 sps:$4 sm:$0xff]  }
 0x1da   : > { %2168 = vmatmul.mubr.bf16.vlgmr.msra.gmra.mxu0 %v11793_v10  ;;  %2223 = vmatprep.subr.bf16.mxu1 %v10587_v58  ;;  %v10656_v58 = vld [vmem:[#allocation8 + $0x624] ss:$16 sps:$4 sm:$0xff]  }
 0x1db   : > { %2277 = vmatpush1.bf16.msra.mxu0 %v10582_v59  ;;  %2296 = vmatprep.mubr.bf16.mxu0 %v11501_v1  ;;  %v10651_v59 = vld [vmem:[#allocation8 + $0x168] ss:$16 sps:$4 sm:$0xff]  }
 0x1dc   : > { %2278 = vmatprep.subr.bf16.mxu0 %v10590_v6  ;;  %v10660_v6 = vld [vmem:[#allocation8 + $0x600] ss:$16 sps:$4 sm:$0xff]  }
 0x1dd   : > { %2224 = vmatpush1.bf16.msra.mxu1 %v10585_v9  ;;  %v10663_v9 = vld [vmem:[#allocation8 + $0x128] ss:$16 sps:$4 sm:$0xff]  }
 0x1de   : > { %2225 = vmatprep.subr.bf16.mxu1 %v10593_v11  ;;  %v10671_v11 = vld [vmem:[#allocation8 + $0x10c] ss:$16 sps:$4 sm:$0xff]  }
 0x1df   : > { %2279 = vmatpush1.bf16.msra.mxu0 %v10588_v12  ;;  %v10666_v12 = vld [vmem:[#allocation8 + $0x5e0] ss:$16 sps:$4 sm:$0xff]  }
 0x1e0   : > { %2772 = vmatprep.subr.bf16.mxu0 %v10596_v16  ;;  %v10669_v16 = vld [vmem:[#allocation8 + $0x108] ss:$16 sps:$4 sm:$0xff]  }
 0x1e1   : > { %2226 = vmatpush1.bf16.msra.mxu1 %v10591_v17  ;;  %v10677_v17 = vld [vmem:[#allocation8 + $0x6a4] ss:$16 sps:$4 sm:$0xff]  }
 0x1e2   : > { %8893 = vmatmul.mubr.msk.bf16.vlgmr.msra.gmra.mxu0 %vm1027_vm9, %v1041_v49  ;;  %2227 = vmatprep.subr.bf16.mxu1 %v10599_v47  ;;  %v10665_v49 = vld [vmem:[#allocation8 + $0x12c] ss:$16 sps:$4 sm:$0xff]   ;;  %v10672_v47 = vld [vmem:[#allocation8 + $0x5c0] ss:$16 sps:$4 sm:$0xff]  }
 0x1e3   : > { %2773 = vmatpush1.bf16.msra.mxu0 %v10594_v41  ;;  %2804 = vmatprep.mubr.bf16.mxu0 %v11806_v22  ;;  %v10680_v41 = vld [vmem:[#allocation8 + $0x5a4] ss:$16 sps:$4 sm:$0xff]  }
 0x1e4   : > { %2774 = vmatprep.subr.bf16.mxu0 %v10602_v18  ;;  %v10675_v18 = vld [vmem:[#allocation8 + $0x6a0] ss:$16 sps:$4 sm:$0xff]  }
 0x1e5   : > { %2228 = vmatpush1.bf16.msra.mxu1 %v10597_v19  ;;  %v10683_v19 = vld [vmem:[#allocation8 + $0x684] ss:$16 sps:$4 sm:$0xff]  }
 0x1e6   : > { %2229 = vmatprep.subr.bf16.mxu1 %v10605_v20  ;;  %v10678_v20 = vld [vmem:[#allocation8 + $0x5a0] ss:$16 sps:$4 sm:$0xff]  }
 0x1e7   : > { %2775 = vmatpush1.bf16.msra.mxu0 %v10600_v21  ;;  %v10686_v21 = vld [vmem:[#allocation8 + $0x584] ss:$16 sps:$4 sm:$0xff]  }
 0x1e8   : > { %2776 = vmatprep.subr.bf16.mxu0 %v10608_v23  ;;  %v10681_v23 = vld [vmem:[#allocation8 + $0x680] ss:$16 sps:$4 sm:$0xff]  }
 0x1e9   : > { %2230 = vmatpush1.bf16.msra.mxu1 %v10603_v24  ;;  %v10689_v24 = vld [vmem:[#allocation8 + $0x56c] ss:$16 sps:$4 sm:$0xff]  }
 0x1ea   : > { %2231 = vmatprep.subr.bf16.mxu1 %v10611_v26  ;;  %v10684_v26 = vld [vmem:[#allocation8 + $0x580] ss:$16 sps:$4 sm:$0xff]  }
 0x1eb   : > { %2777 = vmatpush1.bf16.msra.mxu0 %v10606_v27  ;;  %v10692_v27 = vld [vmem:[#allocation8 + $0x6ac] ss:$16 sps:$4 sm:$0xff]  }
 0x1ec   : > { %2778 = vmatprep.subr.bf16.mxu0 %v10614_v28  ;;  %v10687_v28 = vld [vmem:[#allocation8 + $0x568] ss:$16 sps:$4 sm:$0xff]  }
 0x1ed   : > { %2232 = vmatpush1.bf16.msra.mxu1 %v10609_v29  ;;  %v10695_v29 = vld [vmem:[#allocation8 + $0x54c] ss:$16 sps:$4 sm:$0xff]  }
 0x1ee   : > { %2233 = vmatprep.subr.bf16.mxu1 %v10617_v30  ;;  %v10690_v30 = vld [vmem:[#allocation8 + $0x6a8] ss:$16 sps:$4 sm:$0xff]  }
 0x1ef   : > { %2779 = vmatpush1.bf16.msra.mxu0 %v10612_v31  ;;  %v10698_v31 = vld [vmem:[#allocation8 + $0x68c] ss:$16 sps:$4 sm:$0xff]  }
 0x1f0   : > { %2780 = vmatprep.subr.bf16.mxu0 %v10620_v32  ;;  %v10693_v32 = vld [vmem:[#allocation8 + $0x548] ss:$16 sps:$4 sm:$0xff]  }
 0x1f1   : > { %2234 = vmatpush1.bf16.msra.mxu1 %v10615_v33  ;;  %v10701_v33 = vld [vmem:[#allocation8 + $0x52c] ss:$16 sps:$4 sm:$0xff]  }
 0x1f2   : > { %2235 = vmatprep.subr.bf16.mxu1 %v10623_v34  ;;  %v11819_v34 = vsel %vm780_vm4, %v11789_v8, %v11800_v15  ;;  %v10743_v8 = vld [vmem:[#allocation11 + $0x70] sm:$0xff]  }
 0x1f3   : > { %2781 = vmatpush1.bf16.msra.mxu0 %v10618_v35  ;;  %v10696_v35 = vld [vmem:[#allocation8 + $0x688] ss:$16 sps:$4 sm:$0xff]  }
 0x1f4   : > { %2782 = vmatprep.subr.bf16.mxu0 %v10626_v36  ;;  %v10699_v36 = vld [vmem:[#allocation8 + $0x528] ss:$16 sps:$4 sm:$0xff]  }
 0x1f5   : > { %2236 = vmatpush1.bf16.msra.mxu1 %v10621_v37  ;;  %v10741_v37 = vld [vmem:[#allocation11 + $0x78] sm:$0xff]   ;;  %v10744_v15 = vld [vmem:[#allocation11 + $0x30] sm:$0xff]  }
 0x1f6   : > { %2237 = vmatprep.subr.bf16.mxu1 %v10629_v38  ;;  %v10742_v38 = vld [vmem:[#allocation11 + $0x38] sm:$0xff]  }
 0x1f7   : > { %2783 = vmatpush1.bf16.msra.mxu0 %v10624_v39  ;;  %v10705_v39 = vld [vmem:[#allocation8 + $0x4e8] ss:$16 sps:$4 sm:$0xff]  }
 0x1f8   : > { %2784 = vmatprep.subr.bf16.mxu0 %v10632_v40  ;;  %v10710_v40 = vld [vmem:[#allocation8 + $0x4cc] ss:$16 sps:$4 sm:$0xff]  }
 0x1f9   : > { %2238 = vmatpush2.bf16.msra.mxu1 %v10627_v42  ;;  %v10713_v42 = vld [vmem:[#allocation8 + $0x4ac] ss:$16 sps:$4 sm:$0xff]  }
 0x1fa   : > { %2239 = vmatprep.subr.bf16.mxu1 %v10635_v43  ;;  %v10711_v43 = vld [vmem:[#allocation8 + $0x4a8] ss:$16 sps:$4 sm:$0xff]  }
 0x1fb   : > { %2785 = vmatpush1.bf16.msra.mxu0 %v10630_v0  ;;  %v10716_v0 = vld [vmem:[#allocation8 + $0x48c] ss:$16 sps:$4 sm:$0xff]  }
 0x1fc   : > { %2786 = vmatprep.subr.bf16.mxu0 %v10638_v44  ;;  %v10714_v44 = vld [vmem:[#allocation8 + $0x488] ss:$16 sps:$4 sm:$0xff]  }
 0x1fd   : > { %2240 = vmatpush2.bf16.msra.mxu1 %v10633_v45  ;;  %v10719_v45 = vld [vmem:[#allocation8 + $0x66c] ss:$16 sps:$4 sm:$0xff]  }
 0x1fe   : > { %2241 = vmatprep.subr.bf16.mxu1 %v10641_v46  ;;  %v10717_v46 = vld [vmem:[#allocation8 + $0x668] ss:$16 sps:$4 sm:$0xff]  }
 0x1ff   : > { %2787 = vmatpush1.bf16.msra.mxu0 %v10636_v48  ;;  %v10722_v48 = vld [vmem:[#allocation8 + $0x64c] ss:$16 sps:$4 sm:$0xff]  }
 0x200   : > { %2788 = vmatprep.subr.bf16.mxu0 %v10644_v50  ;;  %v10720_v50 = vld [vmem:[#allocation8 + $0x648] ss:$16 sps:$4 sm:$0xff]  }
 0x201   : > { %2242 = vmatpush2.bf16.msra.mxu1 %v10639_v51  ;;  %v10725_v51 = vld [vmem:[#allocation8 + $0x62c] ss:$16 sps:$4 sm:$0xff]  }
 0x202   : > { %2243 = vmatprep.subr.bf16.mxu1 %v10647_v52  ;;  %v10723_v52 = vld [vmem:[#allocation8 + $0x628] ss:$16 sps:$4 sm:$0xff]  }
 0x203   : > { %2789 = vmatpush2.bf16.msra.mxu0 %v10642_v53  ;;  %v10728_v53 = vld [vmem:[#allocation8 + $0x60c] ss:$16 sps:$4 sm:$0xff]  }
 0x204   : > { %2790 = vmatprep.subr.bf16.mxu0 %v10650_v54  ;;  %v10726_v54 = vld [vmem:[#allocation8 + $0x608] ss:$16 sps:$4 sm:$0xff]  }
 0x205   : > { %2244 = vmatpush2.bf16.msra.mxu1 %v10645_v55  ;;  %v10731_v55 = vld [vmem:[#allocation8 + $0x5ec] ss:$16 sps:$4 sm:$0xff]  }
 0x206   : > { %2245 = vmatprep.subr.bf16.mxu1 %v10653_v57  ;;  %v10729_v57 = vld [vmem:[#allocation8 + $0x5e8] ss:$16 sps:$4 sm:$0xff]  }
 0x207   : > { %2791 = vmatpush2.bf16.msra.mxu0 %v10648_v25  ;;  %v10734_v25 = vld [vmem:[#allocation8 + $0x5cc] ss:$16 sps:$4 sm:$0xff]  }
 0x208   : > { %2792 = vmatprep.subr.bf16.mxu0 %v10656_v58  ;;  %v10732_v58 = vld [vmem:[#allocation8 + $0x5c8] ss:$16 sps:$4 sm:$0xff]  }
 0x209   : > { %2246 = vmatpush2.bf16.msra.mxu1 %v10651_v59 }
 0x20a   : > { %2247 = vmatprep.subr.bf16.mxu1 %v10659_v60  ;;  %v10737_v60 = vld [vmem:[#allocation8 + $0x5ac] ss:$16 sps:$4 sm:$0xff]  }
 0x20b   : > { %2793 = vmatpush2.bf16.msra.mxu0 %v10654_v61 }
 0x20c   : > { %2794 = vmatprep.subr.bf16.mxu0 %v10662_v63 }
 0x20d   : > { %2248 = vmatpush2.bf16.msra.mxu1 %v10657_v3 }
 0x20e   : > { %2249 = vmatprep.subr.bf16.mxu1 %v10665_v49  ;;  %v10735_v49 = vld [vmem:[#allocation8 + $0x5a8] ss:$16 sps:$4 sm:$0xff]  }
 0x20f   : > { %2795 = vmatpush2.bf16.msra.mxu0 %v10660_v6 }
 0x210   : > { %2796 = vmatprep.subr.bf16.mxu0 %v10668_v7  ;;  %v10740_v7 = vld [vmem:[#allocation8 + $0x58c] ss:$16 sps:$4 sm:$0xff]  }
 0x211   : > { %2250 = vmatpush2.bf16.msra.mxu1 %v10663_v9 }
 0x212   : > { %2251 = vmatprep.subr.bf16.mxu1 %v10671_v11 }
 0x213   : > { %2797 = vmatpush2.bf16.msra.mxu0 %v10666_v12 }
 0x214   : > { %2798 = vmatprep.subr.bf16.mxu0 %v10674_v13 }
 0x215   : > { %2252 = vmatpush2.bf16.msra.mxu1 %v10669_v16  ;;  %v10738_v16 = vld [vmem:[#allocation8 + $0x588] ss:$16 sps:$4 sm:$0xff]  }
 0x216   : > { %2827 = vmatprep.subr.bf16.mxu1 %v10677_v17 }
 0x217   : > { %2799 = vmatpush2.bf16.msra.mxu0 %v10672_v47  ;;  %v10745_v47 = vld [vmem:[#allocation11 + $0x68] sm:$0xff]  }
 0x218   : > { %2254 = vmatmul.mubr.bf16.vlgmr.msra.gmra.mxu1 %v11793_v10  ;;  %2800 = vmatprep.subr.bf16.mxu0 %v10680_v41  ;;  %v2406_v10 = vsel %vm780_vm4, %v11796_v14, %v11798_v56  ;;  %v10704_v14 = vld [vmem:[#allocation8 + $0x50c] ss:$16 sps:$4 sm:$0xff]   ;;  %v10702_v56 = vld [vmem:[#allocation8 + $0x508] ss:$16 sps:$4 sm:$0xff]  }
 0x219   : > { %2828 = vmatpush1.bf16.msra.mxu1 %v10675_v18  ;;  %2847 = vmatprep.mubr.bf16.mxu1 %v11501_v1  ;;  %v10746_v41 = vld [vmem:[#allocation11 + $0x28] sm:$0xff]   ;;  %v10747_v18 = vld [vmem:[#allocation11 + $0x60] sm:$0xff]  }
 0x21a   : > { %2829 = vmatprep.subr.bf16.mxu1 %v10683_v19  ;;  %v10748_v19 = vld [vmem:[#allocation11 + $0x20] sm:$0xff]  }
 0x21b   : > { %2801 = vmatpush2.bf16.msra.mxu0 %v10678_v20  ;;  %v10749_v20 = vld [vmem:[#allocation11 + $0x58] sm:$0xff]  }
 0x21c   : > { %2802 = vmatprep.subr.bf16.mxu0 %v10686_v21  ;;  %v10750_v21 = vld [vmem:[#allocation11 + $0x18] sm:$0xff]  }
 0x21d   : > { %2830 = vmatpush1.bf16.msra.mxu1 %v10681_v23  ;;  %v10751_v23 = vld [vmem:[#allocation11 + $0x50] sm:$0xff]  }
 0x21e   : > { %2858 = vmatprep.subr.bf16.mxu1 %v10689_v24  ;;  %v10752_v24 = vld [vmem:[#allocation11 + $0x10] sm:$0xff]  }
 0x21f   : > { %2803 = vmatpush2.bf16.msra.mxu0 %v10684_v26  ;;  %v10753_v26 = vld [vmem:[#allocation11 + $0x48] sm:$0xff]  }
 0x220   : > { %8966 = vmatmul.mubr.msk.bf16.vlgmr.msra.gmra.mxu1 %vm1027_vm9, %v2406_v10  ;;  %2913 = vmatprep.subr.bf16.mxu0 %v10692_v27  ;;  %v10754_v27 = vld [vmem:[#allocation11 + $0x8] sm:$0xff]  }
 0x221   : > { %2859 = vmatpush1.bf16.msra.mxu1 %v10687_v28  ;;  %2890 = vmatprep.mubr.bf16.mxu1 %v11806_v22  ;;  %v10707_v22 = vld [vmem:[#allocation8 + $0x4ec] ss:$16 sps:$4 sm:$0xff]   ;;  %v10755_v28 = vld [vmem:[#allocation11 + $0x40] sm:$0xff]  }
 0x222   : > { %2805 = vmatmul.mubr.bf16.vlgmr.msra.gmra.mxu0 %v11819_v34  ;;  %2860 = vmatprep.subr.bf16.mxu1 %v10695_v29  ;;  %v10756_v29 = vld [vmem:[#allocation11] sm:$0xff]  }
 0x223   : > { %2914 = vmatpush1.bf16.msra.mxu0 %v10690_v30  ;;  %2933 = vmatprep.mubr.bf16.mxu0 %v11501_v1  ;;  %v10708_v1 = vld [vmem:[#allocation8 + $0x4c8] ss:$16 sps:$4 sm:$0xff]   ;;  %v10757_v30 = vld [vmem:[#allocation11 + $0x178] sm:$0xff]  }
 0x224   : > { %2915 = vmatprep.subr.bf16.mxu0 %v10698_v31 }
 0x225   : > { %2861 = vmatpush1.bf16.msra.mxu1 %v10693_v32  ;;  %v10774_v32 = vld [vmem:[#allocation11 + $0xb8] sm:$0xff]  }
 0x226   : > { %2862 = vmatprep.subr.bf16.mxu1 %v10701_v33 }
 0x227   : > { %2916 = vmatpush1.bf16.msra.mxu0 %v10696_v35  ;;  %v10776_v35 = vld [vmem:[#allocation11 + $0xf0] sm:$0xff]  }
 0x228   : > { %9501 = vmatprep.subr.bf16.mxu0 %v10741_v37  ;;  %v10780_v37 = vld [vmem:[#allocation11 + $0xe8] sm:$0xff]  }
 0x229   : > { %2863 = vmatpush1.bf16.msra.mxu1 %v10699_v36 }
 0x22a   : > { %8967 = vmatmul.mubr.msk.bf16.vlgmr.msra.gmra.mxu0 %vm1027_vm9, %v2406_v10  ;;  %2864 = vmatprep.subr.bf16.mxu1 %v10704_v14  ;;  %v10772_v10 = vld [vmem:[#allocation11 + $0xf8] sm:$0xff]   ;;  %v10778_v14 = vld [vmem:[#allocation11 + $0xb0] sm:$0xff]  }
 0x22b   : > { %9502 = vmatpush3.bf16.msra.mxu0 %v10742_v38 }
 0x22c   : > { %9503 = vmatprep.subr.bf16.mxu0 %v10743_v8 }
 0x22d   : > { %2865 = vmatpush1.bf16.msra.mxu1 %v10702_v56 }
 0x22e   : > { %2866 = vmatprep.subr.bf16.mxu1 %v10707_v22 }
 0x22f   : > { %9504 = vmatpush3.bf16.msra.mxu0 %v10744_v15 }
 0x230   : > { %9505 = vmatprep.subr.bf16.mxu0 %v10745_v47 }
 0x231   : > { %2867 = vmatpush1.bf16.msra.mxu1 %v10705_v39  ;;  %v10782_v39 = vld [vmem:[#allocation11 + $0xa8] sm:$0xff]  }
 0x232   : > { %2868 = vmatprep.subr.bf16.mxu1 %v10710_v40 }
 0x233   : > { %9506 = vmatpush3.bf16.msra.mxu0 %v10746_v41 }
 0x234   : > { %9507 = vmatprep.subr.bf16.mxu0 %v10747_v18 }
 0x235   : > { %2869 = vmatpush1.bf16.msra.mxu1 %v10708_v1 }
 0x236   : > { %2870 = vmatprep.subr.bf16.mxu1 %v10713_v42  ;;  %v10784_v42 = vld [vmem:[#allocation11 + $0xe0] sm:$0xff]  }
 0x237   : > { %9508 = vmatpush3.bf16.msra.mxu0 %v10748_v19 }
 0x238   : > { %9509 = vmatprep.subr.bf16.mxu0 %v10749_v20 }
 0x239   : > { %2871 = vmatpush1.bf16.msra.mxu1 %v10711_v43 }
 0x23a   : > { %2872 = vmatprep.subr.bf16.mxu1 %v10716_v0 }
 0x23b   : > { %9510 = vmatpush3.bf16.msra.mxu0 %v10750_v21 }
 0x23c   : > { %9511 = vmatprep.subr.bf16.mxu0 %v10751_v23 }
 0x23d   : > { %2873 = vmatpush1.bf16.msra.mxu1 %v10714_v44  ;;  %v10786_v44 = vld [vmem:[#allocation11 + $0xa0] sm:$0xff]  }
 0x23e   : > { %2874 = vmatprep.subr.bf16.mxu1 %v10719_v45 }
 0x23f   : > { %9512 = vmatpush3.bf16.msra.mxu0 %v10752_v24 }
 0x240   : > { %9513 = vmatprep.subr.bf16.mxu0 %v10753_v26 }
 0x241   : > { %2875 = vmatpush2.bf16.msra.mxu1 %v10717_v46 }
 0x242   : > { %2876 = vmatprep.subr.bf16.mxu1 %v10722_v48  ;;  %v10788_v48 = vld [vmem:[#allocation11 + $0xd8] sm:$0xff]  }
 0x243   : > { %9514 = vmatpush3.bf16.msra.mxu0 %v10754_v27 }
 0x244   : > { %9515 = vmatprep.subr.bf16.mxu0 %v10755_v28 }
 0x245   : > { %2877 = vmatpush2.bf16.msra.mxu1 %v10720_v50 }
 0x246   : > { %2878 = vmatprep.subr.bf16.mxu1 %v10725_v51  ;;  %v10790_v51 = vld [vmem:[#allocation11 + $0x98] sm:$0xff]  }
 0x247   : > { %9516 = vmatpush3.bf16.msra.mxu0 %v10756_v29 }
 0x248   : > { %9545 = vmatprep.subr.bf16.mxu0 %v10757_v30 }
 0x249   : > { %2879 = vmatpush2.bf16.msra.mxu1 %v10723_v52 }
 0x24a   : > { %2880 = vmatprep.subr.bf16.mxu1 %v10728_v53 }
 0x24d   : > { %2881 = vmatpush2.bf16.msra.mxu1 %v10726_v54 }
 0x24e   : > { %2882 = vmatprep.subr.bf16.mxu1 %v10731_v55 }
 0x250   : > { %v11824_v59 = vpop.f32.mrf.mxu1 }
 0x251   : > { %2883 = vmatpush2.bf16.msra.mxu1 %v10729_v57  ;;  %v11826_v61 = vpop.f32.mrf.mxu0 }
 0x252   : > { %v11828_v63 = vpop.f32.mrf.mxu1  ;;  %2884 = vmatprep.subr.bf16.mxu1 %v10734_v25  ;;  %v1678_v24 = vadd.f32 %v11824_v59, %v11826_v61 }
 0x253   : > { %v11830_v3 = vpop.f32.mrf.mxu0 }
 0x254   : > { %v1681_v6 = vpop.f32.mrf.mxu1  ;;  %v1680_v29 = vadd.f32 %v11828_v63, %v11830_v3 }
 0x255   : > { %2885 = vmatpush2.bf16.msra.mxu1 %v10732_v58  ;;  %v1638_v9 = vpop.f32.mrf.mxu0 }
 0x256   : > { %v1683_v11 = vpop.f32.mrf.mxu1  ;;  %v11832_v12 = vadd.f32 %v1681_v6, %v1638_v9  ;;  %2886 = vmatprep.subr.bf16.mxu1 %v10737_v60  ;;  %v10794_v6 = vld [vmem:[#allocation11 + $0x90] sm:$0xff]   ;;  %v10798_v9 = vld [vmem:[#allocation11 + $0x88] sm:$0xff]  }
 0x257   : > { %v1640_v13 = vpop.f32.mrf.mxu0 }
 0x258   : > { %v11834_v17 = vadd.f32 %v1683_v11, %v1640_v13  ;;  %v10800_v11 = vld [vmem:[#allocation11 + $0xc0] sm:$0xff]  }
 0x259   : > { %2887 = vmatpush2.bf16.msra.mxu1 %v10735_v49  ;;  %v1763_v31 = vpop.f32.mrf.mxu0  ;;  %v10792_v49 = vld [vmem:[#allocation11 + $0xd0] sm:$0xff]   ;;  %v10802_v13 = vld [vmem:[#allocation11 + $0x80] sm:$0xff]  }
 0x25a   : > { %2888 = vmatprep.subr.bf16.mxu1 %v10740_v7  ;;  %v10796_v7 = vld [vmem:[#allocation11 + $0xc8] sm:$0xff]  }
 0x25b   : > { %v1765_v33 = vpop.f32.mrf.mxu0 }
 0x25d   : > { %2889 = vmatpush2.bf16.msra.mxu1 %v10738_v16  ;;  %v1767_v56 = vpop.f32.mrf.mxu0  ;;  %v10804_v16 = vld [vmem:[#allocation11 + $0x1f8] sm:$0xff]  }
 0x25e   : > { %9523 = vmatprep.subr.bf16.mxu1 %v10772_v10 }
 0x25f   : > { %v1769_v40 = vpop.f32.mrf.mxu0 }
 0x260   : > { %2891 = vmatmul.mubr.bf16.vlgmr.msra.gmra.mxu1 %v11819_v34 }
 0x261   : > { %9524 = vmatpush3.bf16.msra.mxu1 %v10774_v32 }
 0x262   : > { %9525 = vmatprep.subr.bf16.mxu1 %v10776_v35 }
 0x265   : > { %9526 = vmatpush3.bf16.msra.mxu1 %v10778_v14 }
 0x266   : > { %9527 = vmatprep.subr.bf16.mxu1 %v10780_v37 }
 0x269   : > { %9528 = vmatpush3.bf16.msra.mxu1 %v10782_v39 }
 0x26a   : > { %9529 = vmatprep.subr.bf16.mxu1 %v10784_v42 }
 0x26d   : > { %9530 = vmatpush3.bf16.msra.mxu1 %v10786_v44 }
 0x26e   : > { %9531 = vmatprep.subr.bf16.mxu1 %v10788_v48 }
 0x271   : > { %9532 = vmatpush3.bf16.msra.mxu1 %v10790_v51 }
 0x272   : > { %9533 = vmatprep.subr.bf16.mxu1 %v10792_v49  ;;  %v10763_v49 = vld [vmem:[#allocation11 + $0x160] sm:$0xff]  }
 0x275   : > { %9534 = vmatpush3.bf16.msra.mxu1 %v10794_v6  ;;  %v10764_v6 = vld [vmem:[#allocation11 + $0x120] sm:$0xff]  }
 0x276   : > { %9535 = vmatprep.subr.bf16.mxu1 %v10796_v7  ;;  %v10765_v7 = vld [vmem:[#allocation11 + $0x158] sm:$0xff]  }
 0x279   : > { %9536 = vmatpush3.bf16.msra.mxu1 %v10798_v9  ;;  %v10766_v9 = vld [vmem:[#allocation11 + $0x118] sm:$0xff]  }
 0x27a   : > { %9537 = vmatprep.subr.bf16.mxu1 %v10800_v11  ;;  %v10767_v11 = vld [vmem:[#allocation11 + $0x150] sm:$0xff]  }
 0x27d   : > { %9538 = vmatpush3.bf16.msra.mxu1 %v10802_v13  ;;  %v10768_v13 = vld [vmem:[#allocation11 + $0x110] sm:$0xff]  }
 0x27e   : > { %9567 = vmatprep.subr.bf16.mxu1 %v10804_v16  ;;  %v10769_v16 = vld [vmem:[#allocation11 + $0x148] sm:$0xff]  }
 0x290   : > { %v1720_v34 = vpop.f32.mrf.mxu1 }
 0x291   : > { %v1764_v36 = vadd.f32 %v1763_v31, %v1720_v34  ;;  %v11849_v34 = vld [vmem:[#allocation9] sm:$0xf] }
 0x292   : > { %v1722_v22 = vpop.f32.mrf.mxu1 }
 0x293   : > { %v1766_v38 = vadd.f32 %v1765_v33, %v1722_v22  ;;  %v2957_v22 = vrot.slane %v11849_v34, %v962_v4 }
 0x294   : > { %v1724_v8 = vpop.f32.mrf.mxu1 }
 0x295   : > { %v1768_v15 = vadd.f32 %v1767_v56, %v1724_v8 }
 0x296   : > { %v1726_v1 = vpop.f32.mrf.mxu1 }
 0x297   : > { %v1770_v43 = vadd.f32 %v1769_v40, %v1726_v1 }
 0x298   : > { %v2212_v0 = vpop.f32.mrf.mxu1 }
 0x29a   : > { %v2214_v45 = vpop.f32.mrf.mxu1  ;;  %v2169_v46 = vpop.f32.mrf.mxu0 }
 0x29b   : > { %v2170_v30 = vadd.f32 %v2169_v46, %v1678_v24  ;;  %v10781_v24 = vld [vmem:[#allocation11 + $0x230] sm:$0xff]  }
 0x29c   : > { %v2171_v50 = vpop.f32.mrf.mxu0  ;;  %v2216_v52 = vpop.f32.mrf.mxu1 }
 0x29d   : > { %v2172_v35 = vadd.f32 %v2171_v50, %v1680_v29  ;;  %v2213_v61 = vadd.f32 %v2212_v0, %v2170_v30  ;;  %v10787_v29 = vld [vmem:[#allocation11 + $0x260] sm:$0xff]  }
 0x29e   : > { %v2173_v53 = vpop.f32.mrf.mxu0  ;;  %v2218_v58 = vpop.f32.mrf.mxu1  ;;  %v10789_v30 = vld [vmem:[#allocation11 + $0x220] sm:$0xff]  }
 0x29f   : > { %v2174_v54 = vadd.f32 %v2173_v53, %v11832_v12  ;;  %v2215_v37 = vadd.f32 %v2214_v45, %v2172_v35 }
 0x2a0   : > { %v2175_v55 = vpop.f32.mrf.mxu0 }
 0x2a1   : > { %v2217_v57 = vadd.f32 %v2216_v52, %v2174_v54  ;;  %v2176_v25 = vadd.f32 %v2175_v55, %v11834_v17  ;;  %v10758_v54 = vld [vmem:[#allocation11 + $0x138] sm:$0xff]   ;;  %v10759_v55 = vld [vmem:[#allocation11 + $0x170] sm:$0xff]  }
 0x2a2   : > { %v2298_v12 = vpop.f32.mrf.mxu0 }
 0x2a3   : > { %v2219_v60 = vadd.f32 %v2218_v58, %v2176_v25  ;;  %v10761_v58 = vld [vmem:[#allocation11 + $0x168] sm:$0xff]  }
 0x2a4   : > { %v2300_v47 = vpop.f32.mrf.mxu0 }
 0x2a6   : > { %v2302_v21 = vpop.f32.mrf.mxu0 }
 0x2a8   : > { %v2304_v32 = vpop.f32.mrf.mxu0 }
 0x2d8   : > { %v2255_v41 = vpop.f32.mrf.mxu1 }
 0x2d9   : > { %v2256_v17 = vadd.f32 %v2255_v41, %v1764_v36  ;;  %v10773_v41 = vld [vmem:[#allocation11 + $0x100] sm:$0xff]  }
 0x2da   : > { %v2257_v18 = vpop.f32.mrf.mxu1 }
 0x2db   : > { %v11839_v19 = vadd.f32 %v2298_v12, %v2256_v17  ;;  %v2258_v20 = vadd.f32 %v2257_v18, %v1766_v38  ;;  %v10770_v12 = vld [vmem:[#allocation11 + $0x108] sm:$0xff]   ;;  %v10775_v17 = vld [vmem:[#allocation11 + $0x278] sm:$0xff]  }
 0x2dc   : > { %v2259_v23 = vpop.f32.mrf.mxu1  ;;  %v10777_v18 = vld [vmem:[#allocation11 + $0x238] sm:$0xff]  }
 0x2dd   : > { %v11843_v26 = vadd.f32 %v2300_v47, %v2258_v20  ;;  %v2260_v27 = vadd.f32 %v2259_v23, %v1768_v15  ;;  %v2961_v15 = vrot.slane %v11849_v34, %v966_v5  ;;  %v10771_v47 = vld [vmem:[#allocation11 + $0x140] sm:$0xff]  }
 0x2de   : > { %v2261_v28 = vpop.f32.mrf.mxu1 }
 0x2df   : > { %v11847_v31 = vadd.f32 %v2302_v21, %v2260_v27  ;;  %v2262_v10 = vadd.f32 %v2261_v28, %v1770_v43  ;;  %v10779_v21 = vld [vmem:[#allocation11 + $0x270] sm:$0xff]   ;;  %v10783_v27 = vld [vmem:[#allocation11 + $0x268] sm:$0xff]  }
 0x2e0   : > { %v2849_v33 = vpop.f32.mrf.mxu1  ;;  %v10785_v28 = vld [vmem:[#allocation11 + $0x228] sm:$0xff]  }
 0x2e1   : > { %v11851_v36 = vadd.f32 %v2304_v32, %v2262_v10  ;;  %v10791_v32 = vld [vmem:[#allocation11 + $0x258] sm:$0xff]  }
 0x2e2   : > { %v2851_v14 = vpop.f32.mrf.mxu1  ;;  %v2806_v59 = vpop.f32.mrf.mxu0 }
 0x2e3   : > { %v2850_v56 = vadd.f32 %v2849_v33, %v2806_v59  ;;  %v10793_v33 = vld [vmem:[#allocation11 + $0x218] sm:$0xff]   ;;  %v2968_v59 = vsub.s32 3, %v11746_v62  ;;  %v10801_v62 = vld [vmem:[#allocation11 + $0x208] sm:$0xff]  }
 0x2e4   : > { %v2853_v63 = vpop.f32.mrf.mxu1  ;;  %v2808_v3 = vpop.f32.mrf.mxu0 }
 0x2e5   : > { %v2944_v38 = vadd.f32 %v2850_v56, %v2213_v61  ;;  %v2852_v8 = vadd.f32 %v2851_v14, %v2808_v3  ;;  %v10795_v14 = vld [vmem:[#allocation11 + $0x250] sm:$0xff]  }
 0x2e6   : > { %v2855_v39 = vpop.f32.mrf.mxu1  ;;  %v2810_v40 = vpop.f32.mrf.mxu0 }
 0x2e7   : > { %v2974_v1 = vadd.f32 %v2957_v22, %v2944_v38  ;;  %v2945_v42 = vadd.f32 %v2852_v8, %v2215_v37  ;;  %v2854_v43 = vadd.f32 %v2853_v63, %v2810_v40  ;;  %v10797_v63 = vld [vmem:[#allocation11 + $0x210] sm:$0xff]   ;;  %v10799_v38 = vld [vmem:[#allocation11 + $0x248] sm:$0xff]  }
 0x2e8   : > { %v2812_v0 = vpop.f32.mrf.mxu0 }
 0x2e9   : > { %v2975_v44 = vadd.f32 %v2961_v15, %v2945_v42  ;;  %v2948_v46 = vadd.f32 %v2854_v43, %v2217_v57  ;;  %v2856_v48 = vadd.f32 %v2855_v39, %v2812_v0  ;;  %v2982_v50 = vmax.f32 %v2974_v1, 0.0  ;;  %v10760_v57 = vld [vmem:[#allocation11 + $0x130] sm:$0xff]  }
 0x2ea   : > { %v2935_v10 = vpop.f32.mrf.mxu0  ;;  %v2969_v39 = vrot.slane %v11849_v34, %v2968_v59  ;;  %v10830_v59 = vld [vmem:[#allocation11 + $0x188] sm:$0xff]  }
 0x2eb   : > { %v2983_v4 = vmax.f32 %v2975_v44, 0.0  ;;  %v11859_v51 = vadd.f32 %v2957_v22, %v2948_v46  ;;  %v2949_v45 = vadd.f32 %v2856_v48, %v2219_v60  ;;  %v11865_v5 = vpack.c.bf16 %v2982_v50, %v2982_v50  ;;  %v10762_v60 = vld [vmem:[#allocation11 + $0x128] sm:$0xff]   ;;  %v10803_v44 = vld [vmem:[#allocation11 + $0x240] sm:$0xff]  }
 0x2ec   : > { %v2937_v35 = vpop.f32.mrf.mxu0  ;;  %v2965_v22 = vrot.slane %v11849_v34, %v970_v2 }
 0x2ed   : > { %v11861_v52 = vpack.c.bf16 %v2983_v4, %v2983_v4  ;;  %v11863_v53 = vadd.f32 %v2961_v15, %v2949_v45  ;;  %v11874_v20 = vshrl.u32 %v11865_v5, 16 }
 0x2ee   : > { %v2939_v3 = vpop.f32.mrf.mxu0 }
 0x2ef   : > { %3283 = vmatprep.mubr.bf16.mxu0 %v11861_v52  ;;  %v11869_v25 = vshrl.u32 %v11861_v52, 16  ;;  %v3756_v23 = vrot.slane %v11861_v52, 1 }
 0x2f0   : > { %3284 = vmatmul.mubr.bf16.vlgmr.msra.gmra.mxu0 %v11865_v5  ;;  %v2941_v0 = vpop.f32.mrf.mxu0 }
 0x2f1   : > { %9546 = vmatpush3.bf16.msra.mxu0 %v10758_v54  ;;  %3637 = vmatprep.mubr.bf16.mxu0 %v11869_v25  ;;  %v10805_v54 = vld [vmem:[#allocation11 + $0x200] sm:$0xff]  }
 0x2f2   : > { %9547 = vmatprep.subr.bf16.mxu0 %v10759_v55 }
 0x2f5   : > { %9548 = vmatpush3.bf16.msra.mxu0 %v10760_v57 }
 0x2f6   : > { %9549 = vmatprep.subr.bf16.mxu0 %v10761_v58  ;;  %v10806_v58 = vld [vmem:[#allocation11 + $0x1b8] sm:$0xff]  }
 0x2f9   : > { %9550 = vmatpush3.bf16.msra.mxu0 %v10762_v60 }
 0x2fa   : > { %9551 = vmatprep.subr.bf16.mxu0 %v10763_v49  ;;  %v10808_v49 = vld [vmem:[#allocation11 + $0x1f0] sm:$0xff]  }
 0x2fd   : > { %9552 = vmatpush3.bf16.msra.mxu0 %v10764_v6  ;;  %v10809_v6 = vld [vmem:[#allocation11 + $0x338] sm:$0xff]  }
 0x2fe   : > { %9553 = vmatprep.subr.bf16.mxu0 %v10765_v7  ;;  %v10811_v7 = vld [vmem:[#allocation11 + $0x370] sm:$0xff]  }
 0x301   : > { %9554 = vmatpush3.bf16.msra.mxu0 %v10766_v9  ;;  %v4102_v9 = vrot.slane %v11869_v25, 1 }
 0x302   : > { %9555 = vmatprep.subr.bf16.mxu0 %v10767_v11  ;;  %v10810_v11 = vld [vmem:[#allocation11 + $0x1b0] sm:$0xff]  }
 0x305   : > { %9556 = vmatpush3.bf16.msra.mxu0 %v10768_v13  ;;  %v10812_v13 = vld [vmem:[#allocation11 + $0x1e8] sm:$0xff]  }
 0x306   : > { %9557 = vmatprep.subr.bf16.mxu0 %v10769_v16  ;;  %v10813_v16 = vld [vmem:[#allocation11 + $0x330] sm:$0xff]  }
 0x309   : > { %9558 = vmatpush3.bf16.msra.mxu0 %v10770_v12  ;;  %v10815_v12 = vld [vmem:[#allocation11 + $0x368] sm:$0xff]  }
 0x30a   : > { %9559 = vmatprep.subr.bf16.mxu0 %v10771_v47  ;;  %v10814_v47 = vld [vmem:[#allocation11 + $0x1a8] sm:$0xff]  }
 0x30d   : > { %9560 = vmatpush3.bf16.msra.mxu0 %v10773_v41  ;;  %v10816_v41 = vld [vmem:[#allocation11 + $0x1e0] sm:$0xff]  }
 0x30e   : > { %9589 = vmatprep.subr.bf16.mxu0 %v10775_v17  ;;  %v10817_v17 = vld [vmem:[#allocation11 + $0x328] sm:$0xff]  }
 0x310   : > { %3638 = vmatmul.mubr.bf16.vlgmr.msra.gmra.mxu0 %v11874_v20 }
 0x311   : > { %9590 = vmatpush3.bf16.msra.mxu0 %v10777_v18  ;;  %3987 = vmatprep.mubr.bf16.mxu0 %v3756_v23  ;;  %v10819_v18 = vld [vmem:[#allocation11 + $0x360] sm:$0xff]   ;;  %v10820_v23 = vld [vmem:[#allocation11 + $0x1d8] sm:$0xff]  }
 0x312   : > { %9591 = vmatprep.subr.bf16.mxu0 %v10779_v21  ;;  %v10818_v21 = vld [vmem:[#allocation11 + $0x1a0] sm:$0xff]  }
 0x315   : > { %9592 = vmatpush3.bf16.msra.mxu0 %v10781_v24  ;;  %v10821_v24 = vld [vmem:[#allocation11 + $0x320] sm:$0xff]  }
 0x316   : > { %9593 = vmatprep.subr.bf16.mxu0 %v10783_v27  ;;  %v10823_v27 = vld [vmem:[#allocation11 + $0x358] sm:$0xff]  }
 0x319   : > { %9594 = vmatpush3.bf16.msra.mxu0 %v10785_v28  ;;  %v10822_v28 = vld [vmem:[#allocation11 + $0x198] sm:$0xff]  }
 0x31a   : > { %9595 = vmatprep.subr.bf16.mxu0 %v10787_v29  ;;  %v10824_v29 = vld [vmem:[#allocation11 + $0x1d0] sm:$0xff]  }
 0x31d   : > { %9596 = vmatpush3.bf16.msra.mxu0 %v10789_v30  ;;  %v10825_v30 = vld [vmem:[#allocation11 + $0x318] sm:$0xff]  }
 0x31e   : > { %9597 = vmatprep.subr.bf16.mxu0 %v10791_v32  ;;  %v10826_v32 = vld [vmem:[#allocation11 + $0x190] sm:$0xff]  }
 0x320   : > { %v2892_v61 = vpop.f32.mrf.mxu1 }
 0x321   : > { %v2936_v56 = vadd.f32 %v2935_v10, %v2892_v61  ;;  %9598 = vmatpush3.bf16.msra.mxu0 %v10793_v33  ;;  %v10827_v10 = vld [vmem:[#allocation11 + $0x350] sm:$0xff]   ;;  %v10828_v33 = vld [vmem:[#allocation11 + $0x1c8] sm:$0xff]   ;;  %v10832_v61 = vld [vmem:[#allocation11 + $0x1c0] sm:$0xff]  }
 0x322   : > { %v2894_v37 = vpop.f32.mrf.mxu1  ;;  %9599 = vmatprep.subr.bf16.mxu0 %v10795_v14  ;;  %v10831_v14 = vld [vmem:[#allocation11 + $0x348] sm:$0xff]  }
 0x323   : > { %v2946_v8 = vadd.f32 %v2936_v56, %v11839_v19  ;;  %v2938_v15 = vadd.f32 %v2937_v35, %v2894_v37  ;;  %v10829_v35 = vld [vmem:[#allocation11 + $0x310] sm:$0xff]   ;;  %v10833_v56 = vld [vmem:[#allocation11 + $0x308] sm:$0xff]   ;;  %v10837_v37 = vld [vmem:[#allocation11 + $0x300] sm:$0xff]  }
 0x324   : > { %v2896_v40 = vpop.f32.mrf.mxu1 }
 0x325   : > { %v2976_v1 = vadd.f32 %v2965_v22, %v2946_v8  ;;  %v2947_v42 = vadd.f32 %v2938_v15, %v11843_v26  ;;  %v2940_v43 = vadd.f32 %v2939_v3, %v2896_v40  ;;  %9600 = vmatpush3.bf16.msra.mxu0 %v10797_v63  ;;  %v10807_v26 = vld [vmem:[#allocation11 + $0x378] sm:$0xff]   ;;  %v10834_v63 = vld [vmem:[#allocation11 + $0x180] sm:$0xff]  }
 0x326   : > { %v2898_v2 = vpop.f32.mrf.mxu1  ;;  %9601 = vmatprep.subr.bf16.mxu0 %v10799_v38  ;;  %v10836_v3 = vld [vmem:[#allocation11 + $0x2f8] sm:$0xff]  }
 0x327   : > { %v2977_v46 = vadd.f32 %v2969_v39, %v2947_v42  ;;  %v2950_v48 = vadd.f32 %v2940_v43, %v11847_v31  ;;  %v2942_v50 = vadd.f32 %v2941_v0, %v2898_v2  ;;  %v2984_v4 = vmax.f32 %v2976_v1, 0.0  ;;  %v10839_v38 = vld [vmem:[#allocation11 + $0x478] sm:$0xff]   ;;  %v10843_v43 = vld [vmem:[#allocation11 + $0x470] sm:$0xff]   ;;  %v10844_v2 = vld [vmem:[#allocation11 + $0x2e8] sm:$0xff]  }
 0x328   : > { %v10838_v8 = vld [vmem:[#allocation11 + $0x2b8] sm:$0xff]   ;;  %v4101_v42 = vrot.slane %v11874_v20, 1  ;;  %v10842_v0 = vld [vmem:[#allocation11 + $0x2b0] sm:$0xff]  }
 0x329   : > { %v2985_v19 = vmax.f32 %v2977_v46, 0.0  ;;  %v11886_v45 = vadd.f32 %v2965_v22, %v2950_v48  ;;  %v2951_v34 = vadd.f32 %v2942_v50, %v11851_v36  ;;  %9602 = vmatpush3.bf16.msra.mxu0 %v10801_v62  ;;  %v11893_v60 = vpack.c.bf16 %v2984_v4, %v2984_v4  ;;  %v10835_v22 = vld [vmem:[#allocation11 + $0x340] sm:$0xff]   ;;  %v10841_v1 = vld [vmem:[#allocation11 + $0x438] sm:$0xff]   ;;  %v10847_v46 = vld [vmem:[#allocation11 + $0x468] sm:$0xff]  }
 0x32a   : > { %9603 = vmatprep.subr.bf16.mxu0 %v10803_v44  ;;  %v3755_v36 = vrot.slane %v11865_v5, 1  ;;  %v4448_v62 = vrot.slane %v11861_v52, 2  ;;  %v10845_v44 = vld [vmem:[#allocation11 + $0x430] sm:$0xff]   ;;  %v10846_v48 = vld [vmem:[#allocation11 + $0x2a8] sm:$0xff]   ;;  %v10848_v50 = vld [vmem:[#allocation11 + $0x2e0] sm:$0xff]  }
 0x32b   : > { %v11889_v55 = vpack.c.bf16 %v2985_v19, %v2985_v19  ;;  %v11891_v57 = vadd.f32 %v2969_v39, %v2951_v34  ;;  %v11904_v15 = vshrl.u32 %v11893_v60, 16  ;;  %v10840_v39 = vld [vmem:[#allocation11 + $0x2f0] sm:$0xff]   ;;  %v10849_v4 = vld [vmem:[#allocation11 + $0x428] sm:$0xff]   ;;  %v10851_v19 = vld [vmem:[#allocation11 + $0x460] sm:$0xff]  }
 0x32c   : > { %v10850_v34 = vld [vmem:[#allocation11 + $0x2a0] sm:$0xff]  }
 0x32d   : > { %3323 = vmatprep.mubr.bf16.mxu1 %v11889_v55  ;;  %9604 = vmatpush3.bf16.msra.mxu0 %v10805_v54  ;;  %v11897_v31 = vshrl.u32 %v11889_v55, 16  ;;  %v3758_v40 = vrot.slane %v11889_v55, 1  ;;  %v10852_v54 = vld [vmem:[#allocation11 + $0x2d8] sm:$0xff]  }
 0x32e   : > { %3324 = vmatmul.mubr.bf16.vlgmr.msra.gmra.mxu1 %v11893_v60  ;;  %9633 = vmatprep.subr.bf16.mxu0 %v10807_v26  ;;  %v10853_v26 = vld [vmem:[#allocation11 + $0x420] sm:$0xff]  }
 0x32f   : > { %9568 = vmatpush3.bf16.msra.mxu1 %v10806_v58  ;;  %3677 = vmatprep.mubr.bf16.mxu1 %v11897_v31  ;;  %v10855_v58 = vld [vmem:[#allocation11 + $0x458] sm:$0xff]  }
 0x330   : > { %3988 = vmatmul.mubr.bf16.vlgmr.msra.gmra.mxu0 %v3755_v36  ;;  %9569 = vmatprep.subr.bf16.mxu1 %v10808_v49  ;;  %v10854_v49 = vld [vmem:[#allocation11 + $0x298] sm:$0xff]  }
 0x331   : > { %9634 = vmatpush3.bf16.msra.mxu0 %v10809_v6  ;;  %4333 = vmatprep.mubr.bf16.mxu0 %v4102_v9  ;;  %v10856_v6 = vld [vmem:[#allocation11 + $0x2d0] sm:$0xff]   ;;  %v10857_v36 = vld [vmem:[#allocation11 + $0x418] sm:$0xff]  }
 0x332   : > { %9635 = vmatprep.subr.bf16.mxu0 %v10811_v7  ;;  %v10859_v7 = vld [vmem:[#allocation11 + $0x450] sm:$0xff]  }
 0x333   : > { %9570 = vmatpush3.bf16.msra.mxu1 %v10810_v11  ;;  %v10858_v9 = vld [vmem:[#allocation11 + $0x290] sm:$0xff]   ;;  %v10860_v11 = vld [vmem:[#allocation11 + $0x2c8] sm:$0xff]  }
 0x334   : > { %9571 = vmatprep.subr.bf16.mxu1 %v10812_v13  ;;  %v10861_v13 = vld [vmem:[#allocation11 + $0x410] sm:$0xff]  }
 0x335   : > { %9636 = vmatpush3.bf16.msra.mxu0 %v10813_v16  ;;  %v10863_v16 = vld [vmem:[#allocation11 + $0x448] sm:$0xff]  }
 0x336   : > { %9637 = vmatprep.subr.bf16.mxu0 %v10815_v12  ;;  %v10862_v12 = vld [vmem:[#allocation11 + $0x288] sm:$0xff]  }
 0x337   : > { %9572 = vmatpush3.bf16.msra.mxu1 %v10814_v47  ;;  %v10864_v47 = vld [vmem:[#allocation11 + $0x2c0] sm:$0xff]  }
 0x338   : > { %9573 = vmatprep.subr.bf16.mxu1 %v10816_v41  ;;  %v10865_v41 = vld [vmem:[#allocation11 + $0x408] sm:$0xff]  }
 0x339   : > { %9638 = vmatpush3.bf16.msra.mxu0 %v10817_v17  ;;  %v10867_v17 = vld [vmem:[#allocation11 + $0x440] sm:$0xff]  }
 0x33a   : > { %9639 = vmatprep.subr.bf16.mxu0 %v10819_v18  ;;  %v10866_v18 = vld [vmem:[#allocation11 + $0x280] sm:$0xff]  }
 0x33b   : > { %9574 = vmatpush3.bf16.msra.mxu1 %v10818_v21  ;;  %v10868_v21 = vld [vmem:[#allocation11 + $0x3f8] sm:$0xff]  }
 0x33c   : > { %9575 = vmatprep.subr.bf16.mxu1 %v10820_v23  ;;  %v10869_v23 = vld [vmem:[#allocation11 + $0x400] sm:$0xff]  }
 0x33d   : > { %9640 = vmatpush3.bf16.msra.mxu0 %v10821_v24  ;;  %v10871_v24 = vld [vmem:[#allocation11 + $0x578] sm:$0xff]  }
 0x33e   : > { %9641 = vmatprep.subr.bf16.mxu0 %v10823_v27  ;;  %v10870_v27 = vld [vmem:[#allocation11 + $0x3b8] sm:$0xff]  }
 0x33f   : > { %9576 = vmatpush3.bf16.msra.mxu1 %v10822_v28  ;;  %v3757_v28 = vrot.slane %v11893_v60, 1 }
 0x340   : > { %9577 = vmatprep.subr.bf16.mxu1 %v10824_v29  ;;  %v10872_v29 = vld [vmem:[#allocation11 + $0x3f0] sm:$0xff]  }
 0x341   : > { %9642 = vmatpush3.bf16.msra.mxu0 %v10825_v30  ;;  %v4104_v30 = vrot.slane %v11897_v31, 1 }
 0x342   : > { %9643 = vmatprep.subr.bf16.mxu0 %v10827_v10  ;;  %v10873_v10 = vld [vmem:[#allocation11 + $0x538] sm:$0xff]  }
 0x343   : > { %9578 = vmatpush3.bf16.msra.mxu1 %v10826_v32  ;;  %v4447_v32 = vrot.slane %v11865_v5, 2 }
 0x344   : > { %9579 = vmatprep.subr.bf16.mxu1 %v10828_v33  ;;  %v10875_v33 = vld [vmem:[#allocation11 + $0x570] sm:$0xff]  }
 0x345   : > { %9644 = vmatpush3.bf16.msra.mxu0 %v10829_v35  ;;  %v4794_v35 = vrot.slane %v11869_v25, 2 }
 0x346   : > { %9645 = vmatprep.subr.bf16.mxu0 %v10831_v14  ;;  %v10874_v14 = vld [vmem:[#allocation11 + $0x3b0] sm:$0xff]  }
 0x347   : > { %9580 = vmatpush3.bf16.msra.mxu1 %v10830_v59  ;;  %v10876_v59 = vld [vmem:[#allocation11 + $0x3e8] sm:$0xff]  }
 0x348   : > { %9581 = vmatprep.subr.bf16.mxu1 %v10832_v61  ;;  %v10877_v61 = vld [vmem:[#allocation11 + $0x530] sm:$0xff]  }
 0x349   : > { %9646 = vmatpush3.bf16.msra.mxu0 %v10833_v56  ;;  %v10879_v56 = vld [vmem:[#allocation11 + $0x568] sm:$0xff]  }
 0x34a   : > { %9647 = vmatprep.subr.bf16.mxu0 %v10835_v22  ;;  %v10878_v22 = vld [vmem:[#allocation11 + $0x3a8] sm:$0xff]  }
 0x34b   : > { %9582 = vmatpush3.bf16.msra.mxu1 %v10834_v63  ;;  %v10880_v63 = vld [vmem:[#allocation11 + $0x3e0] sm:$0xff]  }
 0x34c   : > { %9611 = vmatprep.subr.bf16.mxu1 %v10836_v3  ;;  %v10881_v3 = vld [vmem:[#allocation11 + $0x528] sm:$0xff]  }
 0x34d   : > { %9648 = vmatpush3.bf16.msra.mxu0 %v10837_v37  ;;  %v10883_v37 = vld [vmem:[#allocation11 + $0x560] sm:$0xff]  }
 0x34e   : > { %3678 = vmatmul.mubr.bf16.vlgmr.msra.gmra.mxu1 %v11904_v15  ;;  %9677 = vmatprep.subr.bf16.mxu0 %v10839_v38  ;;  %v10882_v38 = vld [vmem:[#allocation11 + $0x3a0] sm:$0xff]  }
 0x34f   : > { %9612 = vmatpush3.bf16.msra.mxu1 %v10838_v8  ;;  %4027 = vmatprep.mubr.bf16.mxu1 %v3758_v40  ;;  %v10884_v8 = vld [vmem:[#allocation11 + $0x3d8] sm:$0xff]  }
 0x350   : > { %4334 = vmatmul.mubr.bf16.vlgmr.msra.gmra.mxu0 %v4101_v42  ;;  %9613 = vmatprep.subr.bf16.mxu1 %v10840_v39  ;;  %v10885_v39 = vld [vmem:[#allocation11 + $0x520] sm:$0xff]   ;;  %v10887_v40 = vld [vmem:[#allocation11 + $0x558] sm:$0xff]   ;;  %v10888_v42 = vld [vmem:[#allocation11 + $0x3d0] sm:$0xff]  }
 0x351   : > { %9678 = vmatpush3.bf16.msra.mxu0 %v10841_v1  ;;  %4679 = vmatprep.mubr.bf16.mxu0 %v4448_v62  ;;  %v10886_v1 = vld [vmem:[#allocation11 + $0x398] sm:$0xff]   ;;  %v10891_v62 = vld [vmem:[#allocation11 + $0x550] sm:$0xff]  }
 0x352   : > { %9679 = vmatprep.subr.bf16.mxu0 %v10843_v43  ;;  %v10889_v43 = vld [vmem:[#allocation11 + $0x518] sm:$0xff]  }
 0x353   : > { %9614 = vmatpush3.bf16.msra.mxu1 %v10842_v0  ;;  %v10890_v0 = vld [vmem:[#allocation11 + $0x390] sm:$0xff]  }
 0x354   : > { %9615 = vmatprep.subr.bf16.mxu1 %v10844_v2  ;;  %v10892_v2 = vld [vmem:[#allocation11 + $0x3c8] sm:$0xff]  }
 0x355   : > { %9680 = vmatpush3.bf16.msra.mxu0 %v10845_v44  ;;  %v10893_v44 = vld [vmem:[#allocation11 + $0x510] sm:$0xff]  }
 0x356   : > { %9681 = vmatprep.subr.bf16.mxu0 %v10847_v46  ;;  %v10895_v46 = vld [vmem:[#allocation11 + $0x548] sm:$0xff]  }
 0x357   : > { %9616 = vmatpush3.bf16.msra.mxu1 %v10846_v48  ;;  %v10894_v48 = vld [vmem:[#allocation11 + $0x388] sm:$0xff]  }
 0x358   : > { %9617 = vmatprep.subr.bf16.mxu1 %v10848_v50  ;;  %v10896_v50 = vld [vmem:[#allocation11 + $0x3c0] sm:$0xff]  }
 0x359   : > { %9682 = vmatpush3.bf16.msra.mxu0 %v10849_v4  ;;  %v10897_v4 = vld [vmem:[#allocation11 + $0x508] sm:$0xff]  }
 0x35a   : > { %9683 = vmatprep.subr.bf16.mxu0 %v10851_v19  ;;  %v10899_v19 = vld [vmem:[#allocation11 + $0x540] sm:$0xff]  }
 0x35b   : > { %9618 = vmatpush3.bf16.msra.mxu1 %v10850_v34  ;;  %v10898_v34 = vld [vmem:[#allocation11 + $0x380] sm:$0xff]  }
 0x35c   : > { %9619 = vmatprep.subr.bf16.mxu1 %v10852_v54  ;;  %v10900_v54 = vld [vmem:[#allocation11 + $0x4f8] sm:$0xff]  }
 0x35d   : > { %9684 = vmatpush3.bf16.msra.mxu0 %v10853_v26  ;;  %v10901_v26 = vld [vmem:[#allocation11 + $0x500] sm:$0xff]  }
 0x35e   : > { %9685 = vmatprep.subr.bf16.mxu0 %v10855_v58  ;;  %v10903_v58 = vld [vmem:[#allocation11 + $0x678] sm:$0xff]  }
 0x35f   : > { %9620 = vmatpush3.bf16.msra.mxu1 %v10854_v49  ;;  %v10902_v49 = vld [vmem:[#allocation11 + $0x4b8] sm:$0xff]  }
 0x360   : > { %9621 = vmatprep.subr.bf16.mxu1 %v10856_v6  ;;  %v4103_v6 = vrot.slane %v11904_v15, 1 }
 0x361   : > { %9686 = vmatpush3.bf16.msra.mxu0 %v10857_v36  ;;  %v10904_v36 = vld [vmem:[#allocation11 + $0x4f0] sm:$0xff]  }
 0x362   : > { %9687 = vmatprep.subr.bf16.mxu0 %v10859_v7  ;;  %v4450_v7 = vrot.slane %v11889_v55, 2 }
 0x363   : > { %9622 = vmatpush3.bf16.msra.mxu1 %v10858_v9  ;;  %v10905_v9 = vld [vmem:[#allocation11 + $0x638] sm:$0xff]  }
 0x364   : > { %9623 = vmatprep.subr.bf16.mxu1 %v10860_v11  ;;  %v4793_v11 = vrot.slane %v11874_v20, 2 }
 0x365   : > { %9688 = vmatpush3.bf16.msra.mxu0 %v10861_v13  ;;  %v10907_v13 = vld [vmem:[#allocation11 + $0x670] sm:$0xff]  }
 0x366   : > { %9689 = vmatprep.subr.bf16.mxu0 %v10863_v16  ;;  %v5140_v16 = vrot.slane %v11861_v52, 3  ;;  %v10916_v52 = vld [vmem:[#allocation11 + $0x4d8] sm:$0xff]  }
 0x367   : > { %9624 = vmatpush3.bf16.msra.mxu1 %v10862_v12  ;;  %v10906_v12 = vld [vmem:[#allocation11 + $0x4b0] sm:$0xff]  }
 0x368   : > { %9625 = vmatprep.subr.bf16.mxu1 %v10864_v47  ;;  %v10908_v47 = vld [vmem:[#allocation11 + $0x4e8] sm:$0xff]  }
 0x369   : > { %9690 = vmatpush3.bf16.msra.mxu0 %v10865_v41  ;;  %v10909_v41 = vld [vmem:[#allocation11 + $0x630] sm:$0xff]  }
 0x36a   : > { %9691 = vmatprep.subr.bf16.mxu0 %v10867_v17  ;;  %v10911_v17 = vld [vmem:[#allocation11 + $0x668] sm:$0xff]  }
 0x36b   : > { %9626 = vmatpush3.bf16.msra.mxu1 %v10866_v18  ;;  %v10910_v18 = vld [vmem:[#allocation11 + $0x4a8] sm:$0xff]  }
 0x36c   : > { %9655 = vmatprep.subr.bf16.mxu1 %v10868_v21  ;;  %v10912_v21 = vld [vmem:[#allocation11 + $0x4e0] sm:$0xff]  }
 0x36d   : > { %9692 = vmatpush3.bf16.msra.mxu0 %v10869_v23  ;;  %v10913_v23 = vld [vmem:[#allocation11 + $0x628] sm:$0xff]  }
 0x36e   : > { %4028 = vmatmul.mubr.bf16.vlgmr.msra.gmra.mxu1 %v3757_v28  ;;  %9721 = vmatprep.subr.bf16.mxu0 %v10871_v24  ;;  %v10915_v24 = vld [vmem:[#allocation11 + $0x660] sm:$0xff]  }
 0x36f   : > { %9656 = vmatpush3.bf16.msra.mxu1 %v10870_v27  ;;  %4373 = vmatprep.mubr.bf16.mxu1 %v4104_v30  ;;  %v10914_v27 = vld [vmem:[#allocation11 + $0x4a0] sm:$0xff]   ;;  %v10918_v30 = vld [vmem:[#allocation11 + $0x498] sm:$0xff]  }
 0x370   : > { %4680 = vmatmul.mubr.bf16.vlgmr.msra.gmra.mxu0 %v4447_v32  ;;  %9657 = vmatprep.subr.bf16.mxu1 %v10872_v29  ;;  %v10917_v28 = vld [vmem:[#allocation11 + $0x620] sm:$0xff]   ;;  %v10919_v29 = vld [vmem:[#allocation11 + $0x658] sm:$0xff]  }
 0x371   : > { %9722 = vmatpush3.bf16.msra.mxu0 %v10873_v10  ;;  %5025 = vmatprep.mubr.bf16.mxu0 %v4794_v35  ;;  %v10920_v10 = vld [vmem:[#allocation11 + $0x4d0] sm:$0xff]   ;;  %v10921_v32 = vld [vmem:[#allocation11 + $0x618] sm:$0xff]  }
 0x372   : > { %9723 = vmatprep.subr.bf16.mxu0 %v10875_v33  ;;  %v10923_v33 = vld [vmem:[#allocation11 + $0x650] sm:$0xff]  }
 0x373   : > { %9658 = vmatpush3.bf16.msra.mxu1 %v10874_v14  ;;  %v10922_v35 = vld [vmem:[#allocation11 + $0x490] sm:$0xff]   ;;  %v10924_v14 = vld [vmem:[#allocation11 + $0x4c8] sm:$0xff]  }
 0x374   : > { %9659 = vmatprep.subr.bf16.mxu1 %v10876_v59  ;;  %v10925_v59 = vld [vmem:[#allocation11 + $0x610] sm:$0xff]  }
 0x375   : > { %9724 = vmatpush3.bf16.msra.mxu0 %v10877_v61  ;;  %v10927_v61 = vld [vmem:[#allocation11 + $0x648] sm:$0xff]  }
 0x376   : > { %9725 = vmatprep.subr.bf16.mxu0 %v10879_v56  ;;  %v10926_v56 = vld [vmem:[#allocation11 + $0x488] sm:$0xff]  }
 0x377   : > { %9660 = vmatpush3.bf16.msra.mxu1 %v10878_v22  ;;  %v10928_v22 = vld [vmem:[#allocation11 + $0x4c0] sm:$0xff]  }
 0x378   : > { %9661 = vmatprep.subr.bf16.mxu1 %v10880_v63  ;;  %v10929_v63 = vld [vmem:[#allocation11 + $0x608] sm:$0xff]  }
 0x379   : > { %9726 = vmatpush3.bf16.msra.mxu0 %v10881_v3  ;;  %v10931_v3 = vld [vmem:[#allocation11 + $0x640] sm:$0xff]  }
 0x37a   : > { %9727 = vmatprep.subr.bf16.mxu0 %v10883_v37  ;;  %v10930_v37 = vld [vmem:[#allocation11 + $0x480] sm:$0xff]  }
 0x37b   : > { %9662 = vmatpush3.bf16.msra.mxu1 %v10882_v38  ;;  %v10932_v38 = vld [vmem:[#allocation11 + $0x5f8] sm:$0xff]  }
 0x37c   : > { %9663 = vmatprep.subr.bf16.mxu1 %v10884_v8  ;;  %v10933_v8 = vld [vmem:[#allocation11 + $0x600] sm:$0xff]  }
 0x37d   : > { %9728 = vmatpush3.bf16.msra.mxu0 %v10885_v39  ;;  %v10935_v39 = vld [vmem:[#allocation11 + $0x778] sm:$0xff]  }
 0x37e   : > { %9729 = vmatprep.subr.bf16.mxu0 %v10887_v40  ;;  %v10934_v40 = vld [vmem:[#allocation11 + $0x5b8] sm:$0xff]  }
 0x37f   : > { %9664 = vmatpush3.bf16.msra.mxu1 %v10886_v1  ;;  %v4449_v1 = vrot.slane %v11893_v60, 2 }
 0x380   : > { %9665 = vmatprep.subr.bf16.mxu1 %v10888_v42  ;;  %v10936_v42 = vld [vmem:[#allocation11 + $0x5f0] sm:$0xff]  }
 0x381   : > { %9730 = vmatpush3.bf16.msra.mxu0 %v10889_v43  ;;  %v4796_v43 = vrot.slane %v11897_v31, 2 }
 0x382   : > { %9731 = vmatprep.subr.bf16.mxu0 %v10891_v62  ;;  %v10937_v62 = vld [vmem:[#allocation11 + $0x738] sm:$0xff]  }
 0x383   : > { %9666 = vmatpush3.bf16.msra.mxu1 %v10890_v0  ;;  %v5139_v0 = vrot.slane %v11865_v5, 3  ;;  %v10942_v5 = vld [vmem:[#allocation11 + $0x5a8] sm:$0xff]  }
 0x384   : > { %9667 = vmatprep.subr.bf16.mxu1 %v10892_v2  ;;  %v10939_v2 = vld [vmem:[#allocation11 + $0x770] sm:$0xff]  }
 0x385   : > { %9732 = vmatpush3.bf16.msra.mxu0 %v10893_v44  ;;  %v5486_v44 = vrot.slane %v11869_v25, 3  ;;  %v10945_v25 = vld [vmem:[#allocation11 + $0x728] sm:$0xff]  }
 0x386   : > { %9733 = vmatprep.subr.bf16.mxu0 %v10895_v46  ;;  %v10938_v46 = vld [vmem:[#allocation11 + $0x5b0] sm:$0xff]  }
 0x387   : > { %9668 = vmatpush3.bf16.msra.mxu1 %v10894_v48 }
 0x388   : > { %9669 = vmatprep.subr.bf16.mxu1 %v10896_v50  ;;  %v10940_v50 = vld [vmem:[#allocation11 + $0x5e8] sm:$0xff]  }
 0x389   : > { %9734 = vmatpush3.bf16.msra.mxu0 %v10897_v4  ;;  %v10941_v4 = vld [vmem:[#allocation11 + $0x730] sm:$0xff]  }
 0x38a   : > { %9735 = vmatprep.subr.bf16.mxu0 %v10899_v19 }
 0x38b   : > { %9670 = vmatpush3.bf16.msra.mxu1 %v10898_v34  ;;  %v10943_v34 = vld [vmem:[#allocation11 + $0x768] sm:$0xff]  }
 0x38c   : > { %9699 = vmatprep.subr.bf16.mxu1 %v10900_v54 }
 0x38d   : > { %9736 = vmatpush3.bf16.msra.mxu0 %v10901_v26 }
 0x38e   : > { %4374 = vmatmul.mubr.bf16.vlgmr.msra.gmra.mxu1 %v4103_v6  ;;  %9765 = vmatprep.subr.bf16.mxu0 %v10903_v58  ;;  %v10944_v58 = vld [vmem:[#allocation11 + $0x5e0] sm:$0xff]  }
 0x38f   : > { %9700 = vmatpush3.bf16.msra.mxu1 %v10902_v49  ;;  %4719 = vmatprep.mubr.bf16.mxu1 %v4450_v7  ;;  %v10947_v6 = vld [vmem:[#allocation11 + $0x760] sm:$0xff]   ;;  %v10948_v7 = vld [vmem:[#allocation11 + $0x5d8] sm:$0xff]  }
 0x390   : > { %5026 = vmatmul.mubr.bf16.vlgmr.msra.gmra.mxu0 %v4793_v11  ;;  %9701 = vmatprep.subr.bf16.mxu1 %v10904_v36  ;;  %v10946_v36 = vld [vmem:[#allocation11 + $0x5a0] sm:$0xff]   ;;  %v10951_v11 = vld [vmem:[#allocation11 + $0x758] sm:$0xff]  }
 0x391   : > { %9766 = vmatpush3.bf16.msra.mxu0 %v10905_v9  ;;  %5371 = vmatprep.mubr.bf16.mxu0 %v5140_v16  ;;  %v10949_v9 = vld [vmem:[#allocation11 + $0x720] sm:$0xff]   ;;  %v10952_v16 = vld [vmem:[#allocation11 + $0x5d0] sm:$0xff]  }
 0x392   : > { %9767 = vmatprep.subr.bf16.mxu0 %v10907_v13  ;;  %v10950_v13 = vld [vmem:[#allocation11 + $0x598] sm:$0xff]  }
 0x393   : > { %9702 = vmatpush3.bf16.msra.mxu1 %v10906_v12  ;;  %v10953_v12 = vld [vmem:[#allocation11 + $0x718] sm:$0xff]  }
 0x394   : > { %9703 = vmatprep.subr.bf16.mxu1 %v10908_v47  ;;  %v10955_v47 = vld [vmem:[#allocation11 + $0x750] sm:$0xff]  }
 0x395   : > { %9768 = vmatpush3.bf16.msra.mxu0 %v10909_v41  ;;  %v10954_v41 = vld [vmem:[#allocation11 + $0x590] sm:$0xff]  }
 0x396   : > { %9769 = vmatprep.subr.bf16.mxu0 %v10911_v17  ;;  %v10956_v17 = vld [vmem:[#allocation11 + $0x5c8] sm:$0xff]  }
 0x397   : > { %9704 = vmatpush3.bf16.msra.mxu1 %v10910_v18  ;;  %v10957_v18 = vld [vmem:[#allocation11 + $0x710] sm:$0xff]  }
 0x398   : > { %9705 = vmatprep.subr.bf16.mxu1 %v10912_v21  ;;  %v10959_v21 = vld [vmem:[#allocation11 + $0x748] sm:$0xff]  }
 0x399   : > { %9770 = vmatpush3.bf16.msra.mxu0 %v10913_v23  ;;  %v10958_v23 = vld [vmem:[#allocation11 + $0x588] sm:$0xff]  }
 0x39a   : > { %9771 = vmatprep.subr.bf16.mxu0 %v10915_v24  ;;  %v10960_v24 = vld [vmem:[#allocation11 + $0x5c0] sm:$0xff]  }
 0x39b   : > { %9706 = vmatpush3.bf16.msra.mxu1 %v10914_v27  ;;  %v10961_v27 = vld [vmem:[#allocation11 + $0x708] sm:$0xff]  }
 0x39c   : > { %9707 = vmatprep.subr.bf16.mxu1 %v10916_v52  ;;  %v10963_v52 = vld [vmem:[#allocation11 + $0x740] sm:$0xff]  }
 0x39d   : > { %9772 = vmatpush3.bf16.msra.mxu0 %v10917_v28  ;;  %v10962_v28 = vld [vmem:[#allocation11 + $0x580] sm:$0xff]  }
 0x39e   : > { %9773 = vmatprep.subr.bf16.mxu0 %v10919_v29  ;;  %v10964_v29 = vld [vmem:[#allocation11 + $0x6f8] sm:$0xff]  }
 0x39f   : > { %9708 = vmatpush3.bf16.msra.mxu1 %v10918_v30  ;;  %v10965_v30 = vld [vmem:[#allocation11 + $0x700] sm:$0xff]  }
 0x3a0   : > { %9709 = vmatprep.subr.bf16.mxu1 %v10920_v10  ;;  %v10967_v10 = vld [vmem:[#allocation11 + $0x878] sm:$0xff]  }
 0x3a1   : > { %9774 = vmatpush3.bf16.msra.mxu0 %v10921_v32  ;;  %v2987_v32 = vmax.f32 %v11863_v53, 0.0  ;;  %v10970_v53 = vld [vmem:[#allocation11 + $0x6b0] sm:$0xff]  }
 0x3a2   : > { %9775 = vmatprep.subr.bf16.mxu0 %v10923_v33  ;;  %v10966_v33 = vld [vmem:[#allocation11 + $0x6b8] sm:$0xff]  }
 0x3a3   : > { %9710 = vmatpush3.bf16.msra.mxu1 %v10922_v35  ;;  %v4795_v35 = vrot.slane %v11904_v15, 2 }
 0x3a4   : > { %9711 = vmatprep.subr.bf16.mxu1 %v10924_v14  ;;  %v10968_v14 = vld [vmem:[#allocation11 + $0x6f0] sm:$0xff]  }
 0x3a5   : > { %9776 = vmatpush3.bf16.msra.mxu0 %v10925_v59  ;;  %v5142_v59 = vrot.slane %v11889_v55, 3 }
 0x3a6   : > { %9777 = vmatprep.subr.bf16.mxu0 %v10927_v61  ;;  %v10969_v61 = vld [vmem:[#allocation11 + $0x838] sm:$0xff]  }
 0x3a7   : > { %9712 = vmatpush3.bf16.msra.mxu1 %v10926_v56  ;;  %v5485_v56 = vrot.slane %v11874_v20, 3  ;;  %v10974_v20 = vld [vmem:[#allocation11 + $0x6a8] sm:$0xff]  }
 0x3a8   : > { %9713 = vmatprep.subr.bf16.mxu1 %v10928_v22  ;;  %v10971_v22 = vld [vmem:[#allocation11 + $0x870] sm:$0xff]  }
 0x3a9   : > { %9778 = vmatpush3.bf16.msra.mxu0 %v10929_v63  ;;  %v11928_v63 = vpack.c.bf16 %v2987_v32, %v2987_v32  ;;  %v11007_v32 = vld [vmem:[#allocation11 + $0x968] sm:$0xff]  }
 0x3aa   : > { %9779 = vmatprep.subr.bf16.mxu0 %v10931_v3 }
 0x3ab   : > { %9714 = vmatpush3.bf16.msra.mxu1 %v10930_v37  ;;  %v10972_v37 = vld [vmem:[#allocation11 + $0x6e8] sm:$0xff]  }
 0x3ac   : > { %9743 = vmatprep.subr.bf16.mxu1 %v10932_v38  ;;  %v10973_v38 = vld [vmem:[#allocation11 + $0x830] sm:$0xff]  }
 0x3ad   : > { %9780 = vmatpush3.bf16.msra.mxu0 %v10933_v8  ;;  %v10975_v8 = vld [vmem:[#allocation11 + $0x868] sm:$0xff]  }
 0x3ae   : > { %4720 = vmatmul.mubr.bf16.vlgmr.msra.gmra.mxu1 %v4449_v1  ;;  %9809 = vmatprep.subr.bf16.mxu0 %v10935_v39  ;;  %v10976_v1 = vld [vmem:[#allocation11 + $0x6e0] sm:$0xff]  }
 0x3af   : > { %9744 = vmatpush3.bf16.msra.mxu1 %v10934_v40  ;;  %5065 = vmatprep.mubr.bf16.mxu1 %v4796_v43 }
 0x3b0   : > { %5372 = vmatmul.mubr.bf16.vlgmr.msra.gmra.mxu0 %v5139_v0  ;;  %v9517_v48 = vpop.f32.mrf.mxu0  ;;  %9745 = vmatprep.subr.bf16.mxu1 %v10936_v42  ;;  %v10977_v42 = vld [vmem:[#allocation11 + $0x828] sm:$0xff]   ;;  %v10978_v0 = vld [vmem:[#allocation11 + $0x6a0] sm:$0xff]  }
 0x3b1   : > { %9810 = vmatpush3.bf16.msra.mxu0 %v10937_v62  ;;  %5717 = vmatprep.mubr.bf16.mxu0 %v5486_v44  ;;  %v10979_v62 = vld [vmem:[#allocation11 + $0x860] sm:$0xff]  }
 0x3b2   : > { %v9518_v19 = vpop.f32.mrf.mxu0  ;;  %9811 = vmatprep.subr.bf16.mxu0 %v10939_v2  ;;  %v10980_v2 = vld [vmem:[#allocation11 + $0x6d8] sm:$0xff]   ;;  %v10981_v44 = vld [vmem:[#allocation11 + $0x820] sm:$0xff]  }
 0x3b3   : > { %9746 = vmatpush3.bf16.msra.mxu1 %v10938_v46  ;;  %v11922_v54 = vadd.f32 %v9518_v19, %v9517_v48  ;;  %v10983_v46 = vld [vmem:[#allocation11 + $0x858] sm:$0xff]   ;;  %v10987_v19 = vld [vmem:[#allocation11 + $0x850] sm:$0xff]  }
 0x3b4   : > { %v9520_v26 = vpop.f32.mrf.mxu0  ;;  %9747 = vmatprep.subr.bf16.mxu1 %v10940_v50  ;;  %v10982_v48 = vld [vmem:[#allocation11 + $0x698] sm:$0xff]   ;;  %v10984_v50 = vld [vmem:[#allocation11 + $0x6d0] sm:$0xff]  }
 0x3b5   : > { %9812 = vmatpush3.bf16.msra.mxu0 %v10941_v4  ;;  %v10985_v4 = vld [vmem:[#allocation11 + $0x818] sm:$0xff]   ;;  %v10989_v26 = vld [vmem:[#allocation11 + $0x810] sm:$0xff]  }
 0x3b6   : > { %v9521_v49 = vpop.f32.mrf.mxu0  ;;  %9813 = vmatprep.subr.bf16.mxu0 %v10943_v34  ;;  %v10986_v34 = vld [vmem:[#allocation11 + $0x690] sm:$0xff]  }
 0x3b7   : > { %9748 = vmatpush3.bf16.msra.mxu1 %v10942_v5  ;;  %v10988_v5 = vld [vmem:[#allocation11 + $0x6c8] sm:$0xff]   ;;  %v10992_v49 = vld [vmem:[#allocation11 + $0x6c0] sm:$0xff]  }
 0x3b8   : > { %9749 = vmatprep.subr.bf16.mxu1 %v10944_v58  ;;  %v10991_v58 = vld [vmem:[#allocation11 + $0x848] sm:$0xff]  }
 0x3b9   : > { %9814 = vmatpush3.bf16.msra.mxu0 %v10945_v25  ;;  %v10990_v25 = vld [vmem:[#allocation11 + $0x688] sm:$0xff]  }
 0x3ba   : > { %9815 = vmatprep.subr.bf16.mxu0 %v10947_v6  ;;  %v10993_v6 = vld [vmem:[#allocation11 + $0x808] sm:$0xff]  }
 0x3bb   : > { %9750 = vmatpush3.bf16.msra.mxu1 %v10946_v36  ;;  %v10995_v36 = vld [vmem:[#allocation11 + $0x840] sm:$0xff]  }
 0x3bc   : > { %9751 = vmatprep.subr.bf16.mxu1 %v10948_v7  ;;  %v10994_v7 = vld [vmem:[#allocation11 + $0x680] sm:$0xff]  }
 0x3bd   : > { %9816 = vmatpush3.bf16.msra.mxu0 %v10949_v9  ;;  %v10996_v9 = vld [vmem:[#allocation11 + $0x7f8] sm:$0xff]  }
 0x3be   : > { %9817 = vmatprep.subr.bf16.mxu0 %v10951_v11  ;;  %v10997_v11 = vld [vmem:[#allocation11 + $0x800] sm:$0xff]  }
 0x3bf   : > { %9752 = vmatpush3.bf16.msra.mxu1 %v10950_v13  ;;  %v2986_v13 = vmax.f32 %v11859_v51, 0.0  ;;  %v11939_v51 = vshrl.u32 %v11928_v63, 16 }
 0x3c0   : > { %9753 = vmatprep.subr.bf16.mxu1 %v10952_v16  ;;  %v10999_v16 = vld [vmem:[#allocation11 + $0x978] sm:$0xff]  }
 0x3c1   : > { %9818 = vmatpush3.bf16.msra.mxu0 %v10953_v12  ;;  %v10998_v12 = vld [vmem:[#allocation11 + $0x7b8] sm:$0xff]  }
 0x3c2   : > { %9819 = vmatprep.subr.bf16.mxu0 %v10955_v47  ;;  %v5141_v47 = vrot.slane %v11893_v60, 3 }
 0x3c3   : > { %9754 = vmatpush3.bf16.msra.mxu1 %v10954_v41  ;;  %v11000_v41 = vld [vmem:[#allocation11 + $0x7f0] sm:$0xff]  }
 0x3c4   : > { %9755 = vmatprep.subr.bf16.mxu1 %v10956_v17  ;;  %v5488_v17 = vrot.slane %v11897_v31, 3 }
 0x3c5   : > { %9820 = vmatpush3.bf16.msra.mxu0 %v10957_v18  ;;  %v11001_v18 = vld [vmem:[#allocation11 + $0x938] sm:$0xff]  }
 0x3c6   : > { %9821 = vmatprep.subr.bf16.mxu0 %v10959_v21  ;;  %v11936_v21 = vpack.c.bf16 %v2986_v13, %v2986_v13 }
 0x3c7   : > { %9756 = vmatpush3.bf16.msra.mxu1 %v10958_v23 }
 0x3c8   : > { %9757 = vmatprep.subr.bf16.mxu1 %v10960_v24  ;;  %v11003_v24 = vld [vmem:[#allocation11 + $0x970] sm:$0xff]  }
 0x3c9   : > { %9822 = vmatpush3.bf16.msra.mxu0 %v10961_v27  ;;  %v11002_v27 = vld [vmem:[#allocation11 + $0x7b0] sm:$0xff]  }
 0x3ca   : > { %9823 = vmatprep.subr.bf16.mxu0 %v10963_v52 }
 0x3cb   : > { %9758 = vmatpush3.bf16.msra.mxu1 %v10962_v28  ;;  %v11004_v28 = vld [vmem:[#allocation11 + $0x7e8] sm:$0xff]  }
 0x3cc   : > { %9787 = vmatprep.subr.bf16.mxu1 %v10964_v29  ;;  %v11005_v29 = vld [vmem:[#allocation11 + $0x930] sm:$0xff]  }
 0x3cd   : > { %9824 = vmatpush3.bf16.msra.mxu0 %v10965_v30 }
 0x3ce   : > { %5066 = vmatmul.mubr.bf16.vlgmr.msra.gmra.mxu1 %v4795_v35  ;;  %9853 = vmatprep.subr.bf16.mxu0 %v10967_v10 }
 0x3cf   : > { %9788 = vmatpush3.bf16.msra.mxu1 %v10966_v33  ;;  %5411 = vmatprep.mubr.bf16.mxu1 %v5142_v59 }
 0x3d0   : > { %v9561_v3 = vpop.f32.mrf.mxu0  ;;  %5718 = vmatmul.mubr.bf16.vlgmr.msra.gmra.mxu0 %v5485_v56  ;;  %9789 = vmatprep.subr.bf16.mxu1 %v10968_v14  ;;  %v11006_v14 = vld [vmem:[#allocation11 + $0x7a8] sm:$0xff]   ;;  %v11008_v56 = vld [vmem:[#allocation11 + $0x7e0] sm:$0xff]  }
 0x3d1   : > { %9854 = vmatpush3.bf16.msra.mxu0 %v10969_v61  ;;  %6059 = vmatprep.mubr.bf16.mxu0 %v11928_v63 }
 0x3d2   : > { %v9562_v55 = vpop.f32.mrf.mxu0  ;;  %9855 = vmatprep.subr.bf16.mxu0 %v10971_v22  ;;  %v11009_v22 = vld [vmem:[#allocation11 + $0x928] sm:$0xff]  }
 0x3d3   : > { %v11931_v39 = vadd.f32 %v9562_v55, %v9561_v3  ;;  %9790 = vmatpush3.bf16.msra.mxu1 %v10970_v53  ;;  %v11011_v3 = vld [vmem:[#allocation11 + $0x960] sm:$0xff]   ;;  %v11015_v55 = vld [vmem:[#allocation11 + $0x958] sm:$0xff]  }
 0x3d4   : > { %v9564_v40 = vpop.f32.mrf.mxu0  ;;  %9791 = vmatprep.subr.bf16.mxu1 %v10972_v37  ;;  %v11010_v37 = vld [vmem:[#allocation11 + $0x7a0] sm:$0xff]  }
 0x3d5   : > { %9856 = vmatpush3.bf16.msra.mxu0 %v10973_v38  ;;  %v11012_v38 = vld [vmem:[#allocation11 + $0x7d8] sm:$0xff]  }
 0x3d6   : > { %v9565_v43 = vpop.f32.mrf.mxu0  ;;  %9857 = vmatprep.subr.bf16.mxu0 %v10975_v8  ;;  %v11014_v8 = vld [vmem:[#allocation11 + $0x798] sm:$0xff]  }
 0x3d7   : > { %9792 = vmatpush3.bf16.msra.mxu1 %v10974_v20  ;;  %v11016_v20 = vld [vmem:[#allocation11 + $0x7d0] sm:$0xff]   ;;  %v11017_v40 = vld [vmem:[#allocation11 + $0x918] sm:$0xff]   ;;  %v11020_v43 = vld [vmem:[#allocation11 + $0x7c8] sm:$0xff]  }
 0x3d8   : > { %9793 = vmatprep.subr.bf16.mxu1 %v10976_v1  ;;  %v11019_v1 = vld [vmem:[#allocation11 + $0x950] sm:$0xff]  }
 0x3d9   : > { %9858 = vmatpush3.bf16.msra.mxu0 %v10977_v42  ;;  %v11018_v42 = vld [vmem:[#allocation11 + $0x790] sm:$0xff]  }
 0x3da   : > { %9859 = vmatprep.subr.bf16.mxu0 %v10979_v62  ;;  %v11021_v62 = vld [vmem:[#allocation11 + $0x910] sm:$0xff]  }
 0x3db   : > { %9794 = vmatpush3.bf16.msra.mxu1 %v10978_v0  ;;  %v11023_v0 = vld [vmem:[#allocation11 + $0x948] sm:$0xff]  }
 0x3dc   : > { %9795 = vmatprep.subr.bf16.mxu1 %v10980_v2  ;;  %v11022_v2 = vld [vmem:[#allocation11 + $0x788] sm:$0xff]  }
 0x3dd   : > { %9860 = vmatpush3.bf16.msra.mxu0 %v10981_v44  ;;  %v11024_v44 = vld [vmem:[#allocation11 + $0x7c0] sm:$0xff]  }
 0x3de   : > { %9861 = vmatprep.subr.bf16.mxu0 %v10983_v46  ;;  %v11025_v46 = vld [vmem:[#allocation11 + $0x908] sm:$0xff]  }
 0x3df   : > { %9796 = vmatpush3.bf16.msra.mxu1 %v10982_v48  ;;  %v11027_v48 = vld [vmem:[#allocation11 + $0x940] sm:$0xff]  }
 0x3e0   : > { %9797 = vmatprep.subr.bf16.mxu1 %v10984_v50  ;;  %v11026_v50 = vld [vmem:[#allocation11 + $0x780] sm:$0xff]  }
 0x3e1   : > { %9862 = vmatpush3.bf16.msra.mxu0 %v10985_v4  ;;  %v11028_v4 = vld [vmem:[#allocation11 + $0x8f8] sm:$0xff]  }
 0x3e2   : > { %9863 = vmatprep.subr.bf16.mxu0 %v10987_v19  ;;  %v2989_v19 = vmax.f32 %v11891_v57, 0.0  ;;  %v11035_v57 = vld [vmem:[#allocation11 + $0xa70] sm:$0xff]  }
 0x3e3   : > { %9798 = vmatpush3.bf16.msra.mxu1 %v10986_v34  ;;  %v11029_v34 = vld [vmem:[#allocation11 + $0x900] sm:$0xff]  }
 0x3e4   : > { %9799 = vmatprep.subr.bf16.mxu1 %v10988_v5  ;;  %v11031_v5 = vld [vmem:[#allocation11 + $0xa78] sm:$0xff]  }
 0x3e5   : > { %9864 = vmatpush3.bf16.msra.mxu0 %v10989_v26  ;;  %v11030_v26 = vld [vmem:[#allocation11 + $0x8b8] sm:$0xff]  }
 0x3e6   : > { %9865 = vmatprep.subr.bf16.mxu0 %v10991_v58  ;;  %v5487_v58 = vrot.slane %v11904_v15, 3  ;;  %v2990_v15 = vld [vmem:[#allocation12] sm:$0x1] }
 0x3e7   : > { %9800 = vmatpush3.bf16.msra.mxu1 %v10990_v25  ;;  %v11032_v25 = vld [vmem:[#allocation11 + $0x8f0] sm:$0xff]  }
 0x3e8   : > { %9801 = vmatprep.subr.bf16.mxu1 %v10992_v49  ;;  %v11950_v49 = vpack.c.bf16 %v2989_v19, %v2989_v19 }
 0x3e9   : > { %9866 = vmatpush3.bf16.msra.mxu0 %v10993_v6  ;;  %v11033_v6 = vld [vmem:[#allocation11 + $0xa38] sm:$0xff]  }
 0x3ea   : > { %9867 = vmatprep.subr.bf16.mxu0 %v10995_v36 }
 0x3eb   : > { %9802 = vmatpush3.bf16.msra.mxu1 %v10994_v7  ;;  %v11953_v7 = vshrl.u32 %v11936_v21, 16 }
 0x3ec   : > { %9831 = vmatprep.subr.bf16.mxu1 %v10996_v9  ;;  %v6532_v9 = vrot.slane %v11928_v63, 1 }
 0x3ed   : > { %9868 = vmatpush3.bf16.msra.mxu0 %v10997_v11  ;;  %v11034_v11 = vld [vmem:[#allocation11 + $0x8b0] sm:$0xff]  }
 0x3ee   : > { %5412 = vmatmul.mubr.bf16.vlgmr.msra.gmra.mxu1 %v5141_v47  ;;  %v9539_v23 = vpop.f32.mrf.mxu1  ;;  %9897 = vmatprep.subr.bf16.mxu0 %v10999_v16 }
 0x3ef   : > { %9832 = vmatpush3.bf16.msra.mxu1 %v10998_v12  ;;  %5757 = vmatprep.mubr.bf16.mxu1 %v5488_v17  ;;  %v11036_v12 = vld [vmem:[#allocation11 + $0x8e8] sm:$0xff]  }
 0x3f0   : > { %v9540_v52 = vpop.f32.mrf.mxu1  ;;  %v9605_v60 = vpop.f32.mrf.mxu0  ;;  %6060 = vmatmul.mubr.bf16.vlgmr.msra.gmra.mxu0 %v11936_v21  ;;  %9833 = vmatprep.subr.bf16.mxu1 %v11000_v41  ;;  %v11037_v41 = vld [vmem:[#allocation11 + $0xa30] sm:$0xff]  }
 0x3f1   : > { %v9541_v31 = vadd.f32 %v9540_v52, %v9539_v23  ;;  %9898 = vmatpush3.bf16.msra.mxu0 %v11001_v18  ;;  %6413 = vmatprep.mubr.bf16.mxu0 %v11939_v51  ;;  %v11039_v23 = vld [vmem:[#allocation11 + $0xa68] sm:$0xff]  }
 0x3f2   : > { %v9542_v30 = vpop.f32.mrf.mxu1  ;;  %v9606_v10 = vpop.f32.mrf.mxu0  ;;  %9899 = vmatprep.subr.bf16.mxu0 %v11003_v24 }
 0x3f3   : > { %v11944_v33 = vadd.f32 %v9541_v31, %v11922_v54  ;;  %v11946_v35 = vadd.f32 %v9606_v10, %v9605_v60  ;;  %9834 = vmatpush3.bf16.msra.mxu1 %v11002_v27  ;;  %v11013_v54 = vld [vmem:[#allocation11 + $0x920] sm:$0xff]   ;;  %v11038_v60 = vld [vmem:[#allocation11 + $0x8a8] sm:$0xff]  }
 0x3f4   : > { %v9543_v59 = vpop.f32.mrf.mxu1  ;;  %v9608_v61 = vpop.f32.mrf.mxu0  ;;  %9835 = vmatprep.subr.bf16.mxu1 %v11004_v28  ;;  %v11041_v10 = vld [vmem:[#allocation11 + $0xa28] sm:$0xff]  }
 0x3f5   : > { %9900 = vmatpush3.bf16.msra.mxu0 %v11005_v29  ;;  %v3331_v24 = vadd.f32 %v11944_v33, %v2990_v15  ;;  %v11040_v29 = vld [vmem:[#allocation11 + $0x8e0] sm:$0xff]   ;;  %v11044_v33 = vld [vmem:[#allocation11 + $0x8d8] sm:$0xff]   ;;  %v11071_v15 = vld [vmem:[#allocation11 + $0xb68] sm:$0xff]  }
 0x3f6   : > { %v9609_v53 = vpop.f32.mrf.mxu0  ;;  %9901 = vmatprep.subr.bf16.mxu0 %v11007_v32  ;;  %v11042_v59 = vld [vmem:[#allocation11 + $0x8a0] sm:$0xff]   ;;  %v11047_v61 = vld [vmem:[#allocation11 + $0xa58] sm:$0xff]  }
 0x3f7   : > { %9836 = vmatpush3.bf16.msra.mxu1 %v11006_v14  ;;  %v11043_v14 = vld [vmem:[#allocation11 + $0xa60] sm:$0xff]   ;;  %v11049_v53 = vld [vmem:[#allocation11 + $0xa18] sm:$0xff]  }
 0x3f8   : > { %9837 = vmatprep.subr.bf16.mxu1 %v11008_v56  ;;  %v11046_v56 = vld [vmem:[#allocation11 + $0x898] sm:$0xff]  }
 0x3f9   : > { %9902 = vmatpush3.bf16.msra.mxu0 %v11009_v22  ;;  %v11048_v22 = vld [vmem:[#allocation11 + $0x8d0] sm:$0xff]  }
 0x3fa   : > { %9903 = vmatprep.subr.bf16.mxu0 %v11011_v3  ;;  %v11051_v3 = vld [vmem:[#allocation11 + $0xa50] sm:$0xff]  }
 0x3fb   : > { %9838 = vmatpush3.bf16.msra.mxu1 %v11010_v37  ;;  %v11050_v37 = vld [vmem:[#allocation11 + $0x890] sm:$0xff]  }
 0x3fc   : > { %9839 = vmatprep.subr.bf16.mxu1 %v11012_v38  ;;  %v11052_v38 = vld [vmem:[#allocation11 + $0x8c8] sm:$0xff]  }
 0x3fd   : > { %9904 = vmatpush3.bf16.msra.mxu0 %v11013_v54  ;;  %v11053_v54 = vld [vmem:[#allocation11 + $0xa10] sm:$0xff]  }
 0x3fe   : > { %9905 = vmatprep.subr.bf16.mxu0 %v11015_v55  ;;  %v11055_v55 = vld [vmem:[#allocation11 + $0xa48] sm:$0xff]  }
 0x3ff   : > { %9840 = vmatpush3.bf16.msra.mxu1 %v11014_v8  ;;  %v11054_v8 = vld [vmem:[#allocation11 + $0x888] sm:$0xff]  }
 0x400   : > { %9841 = vmatprep.subr.bf16.mxu1 %v11016_v20  ;;  %v11056_v20 = vld [vmem:[#allocation11 + $0x8c0] sm:$0xff]  }
 0x401   : > { %9906 = vmatpush3.bf16.msra.mxu0 %v11017_v40  ;;  %v11057_v40 = vld [vmem:[#allocation11 + $0xa08] sm:$0xff]  }
 0x402   : > { %9907 = vmatprep.subr.bf16.mxu0 %v11019_v1  ;;  %v11059_v1 = vld [vmem:[#allocation11 + $0xa40] sm:$0xff]  }
 0x403   : > { %9842 = vmatpush3.bf16.msra.mxu1 %v11018_v42  ;;  %v11058_v42 = vld [vmem:[#allocation11 + $0x880] sm:$0xff]  }
 0x404   : > { %9843 = vmatprep.subr.bf16.mxu1 %v11020_v43  ;;  %v2988_v43 = vmax.f32 %v11886_v45, 0.0  ;;  %v6531_v45 = vrot.slane %v11936_v21, 1 }
 0x405   : > { %9908 = vmatpush3.bf16.msra.mxu0 %v11021_v62  ;;  %v11060_v62 = vld [vmem:[#allocation11 + $0x9f8] sm:$0xff]  }
 0x406   : > { %9909 = vmatprep.subr.bf16.mxu0 %v11023_v0  ;;  %v11061_v0 = vld [vmem:[#allocation11 + $0xa00] sm:$0xff]  }
 0x407   : > { %9844 = vmatpush3.bf16.msra.mxu1 %v11022_v2  ;;  %v11063_v2 = vld [vmem:[#allocation11 + $0xb78] sm:$0xff]  }
 0x408   : > { %9845 = vmatprep.subr.bf16.mxu1 %v11024_v44  ;;  %v11062_v44 = vld [vmem:[#allocation11 + $0x9b8] sm:$0xff]  }
 0x409   : > { %9910 = vmatpush3.bf16.msra.mxu0 %v11025_v46  ;;  %v11965_v46 = vpack.c.bf16 %v2988_v43, %v2988_v43  ;;  %v6877_v43 = vrot.slane %v11953_v7, 1 }
 0x40a   : > { %9911 = vmatprep.subr.bf16.mxu0 %v11027_v48  ;;  %v11064_v48 = vld [vmem:[#allocation11 + $0x9f0] sm:$0xff]  }
 0x40b   : > { %9846 = vmatpush3.bf16.msra.mxu1 %v11026_v50  ;;  %v11968_v50 = vshrl.u32 %v11950_v49, 16 }
 0x40c   : > { %9875 = vmatprep.subr.bf16.mxu1 %v11028_v4  ;;  %v11065_v4 = vld [vmem:[#allocation11 + $0xb38] sm:$0xff]  }
 0x40d   : > { %9912 = vmatpush3.bf16.msra.mxu0 %v11029_v34  ;;  %v11067_v34 = vld [vmem:[#allocation11 + $0xb70] sm:$0xff]  }
 0x40e   : > { %v9583_v36 = vpop.f32.mrf.mxu1  ;;  %5758 = vmatmul.mubr.bf16.vlgmr.msra.gmra.mxu1 %v5487_v58  ;;  %9941 = vmatprep.subr.bf16.mxu0 %v11031_v5  ;;  %v6878_v5 = vrot.slane %v11939_v51, 1 }
 0x40f   : > { %9876 = vmatpush3.bf16.msra.mxu1 %v11030_v26  ;;  %6099 = vmatprep.mubr.bf16.mxu1 %v11950_v49  ;;  %v11066_v26 = vld [vmem:[#allocation11 + $0x9b0] sm:$0xff]  }
 0x410   : > { %v9584_v13 = vpop.f32.mrf.mxu1  ;;  %v9649_v16 = vpop.f32.mrf.mxu0  ;;  %6414 = vmatmul.mubr.bf16.vlgmr.msra.gmra.mxu0 %v11953_v7  ;;  %9877 = vmatprep.subr.bf16.mxu1 %v11032_v25 }
 0x411   : > { %v9585_v47 = vadd.f32 %v9584_v13, %v9583_v36  ;;  %9942 = vmatpush3.bf16.msra.mxu0 %v11033_v6  ;;  %6763 = vmatprep.mubr.bf16.mxu0 %v6532_v9  ;;  %v11068_v6 = vld [vmem:[#allocation11 + $0x9e8] sm:$0xff]  }
 0x412   : > { %v9586_v17 = vpop.f32.mrf.mxu1  ;;  %v9650_v18 = vpop.f32.mrf.mxu0  ;;  %9943 = vmatprep.subr.bf16.mxu0 %v11035_v57  ;;  %v11069_v57 = vld [vmem:[#allocation11 + $0xb30] sm:$0xff]  }
 0x413   : > { %v3680_v27 = vadd.f32 %v9585_v47, %v11931_v39  ;;  %v11960_v52 = vadd.f32 %v9650_v18, %v9649_v16  ;;  %9878 = vmatpush3.bf16.msra.mxu1 %v11034_v11  ;;  %v11045_v39 = vld [vmem:[#allocation11 + $0xa20] sm:$0xff]  }
 0x414   : > { %v9587_v28 = vpop.f32.mrf.mxu1  ;;  %v9652_v31 = vpop.f32.mrf.mxu0  ;;  %9879 = vmatprep.subr.bf16.mxu1 %v11036_v12  ;;  %v11070_v12 = vld [vmem:[#allocation11 + $0x9a8] sm:$0xff]   ;;  %v11072_v17 = vld [vmem:[#allocation11 + $0x9e0] sm:$0xff]  }
 0x415   : > { %v11962_v30 = vadd.f32 %v3680_v27, %v3331_v24  ;;  %9944 = vmatpush3.bf16.msra.mxu0 %v11037_v41  ;;  %v11075_v27 = vld [vmem:[#allocation11 + $0xb60] sm:$0xff]   ;;  %v11079_v31 = vld [vmem:[#allocation11 + $0xb58] sm:$0xff]  }
 0x416   : > { %v9653_v32 = vpop.f32.mrf.mxu0  ;;  %9945 = vmatprep.subr.bf16.mxu0 %v11039_v23  ;;  %v11073_v23 = vld [vmem:[#allocation11 + $0xb28] sm:$0xff]   ;;  %v11077_v28 = vld [vmem:[#allocation11 + $0xb20] sm:$0xff]  }
 0x417   : > { %9880 = vmatpush3.bf16.msra.mxu1 %v11038_v60  ;;  %v11074_v60 = vld [vmem:[#allocation11 + $0x9a0] sm:$0xff]   ;;  %v11083_v32 = vld [vmem:[#allocation11 + $0xb50] sm:$0xff]  }
 0x418   : > { %9881 = vmatprep.subr.bf16.mxu1 %v11040_v29  ;;  %v11078_v29 = vld [vmem:[#allocation11 + $0x998] sm:$0xff]  }
 0x419   : > { %9946 = vmatpush3.bf16.msra.mxu0 %v11041_v10  ;;  %v11080_v10 = vld [vmem:[#allocation11 + $0x9d0] sm:$0xff]  }
 0x41a   : > { %9947 = vmatprep.subr.bf16.mxu0 %v11043_v14  ;;  %v11082_v14 = vld [vmem:[#allocation11 + $0x990] sm:$0xff]  }
 0x41b   : > { %9882 = vmatpush3.bf16.msra.mxu1 %v11042_v59  ;;  %v11084_v59 = vld [vmem:[#allocation11 + $0x9c8] sm:$0xff]  }
 0x41c   : > { %9883 = vmatprep.subr.bf16.mxu1 %v11044_v33  ;;  %v11085_v33 = vld [vmem:[#allocation11 + $0xb10] sm:$0xff]  }
 0x41d   : > { %9948 = vmatpush3.bf16.msra.mxu0 %v11045_v39  ;;  %v11087_v39 = vld [vmem:[#allocation11 + $0xb48] sm:$0xff]  }
 0x41e   : > { %9949 = vmatprep.subr.bf16.mxu0 %v11047_v61  ;;  %v11086_v61 = vld [vmem:[#allocation11 + $0x988] sm:$0xff]  }
 0x41f   : > { %9884 = vmatpush3.bf16.msra.mxu1 %v11046_v56  ;;  %v11088_v56 = vld [vmem:[#allocation11 + $0x9c0] sm:$0xff]  }
 0x420   : > { %9885 = vmatprep.subr.bf16.mxu1 %v11048_v22  ;;  %v11089_v22 = vld [vmem:[#allocation11 + $0xb08] sm:$0xff]  }
 0x421   : > { %9950 = vmatpush3.bf16.msra.mxu0 %v11049_v53  ;;  %v11091_v53 = vld [vmem:[#allocation11 + $0xb40] sm:$0xff]  }
 0x422   : > { %9951 = vmatprep.subr.bf16.mxu0 %v11051_v3  ;;  %v11090_v3 = vld [vmem:[#allocation11 + $0x980] sm:$0xff]  }
 0x423   : > { %9886 = vmatpush3.bf16.msra.mxu1 %v11050_v37  ;;  %v11092_v37 = vld [vmem:[#allocation11 + $0xaf8] sm:$0xff]  }
 0x424   : > { %9887 = vmatprep.subr.bf16.mxu1 %v11052_v38  ;;  %v11093_v38 = vld [vmem:[#allocation11 + $0xb00] sm:$0xff]  }
 0x425   : > { %9952 = vmatpush3.bf16.msra.mxu0 %v11053_v54  ;;  %v11095_v54 = vld [vmem:[#allocation11 + $0xc78] sm:$0xff]  }
 0x426   : > { %9953 = vmatprep.subr.bf16.mxu0 %v11055_v55  ;;  %v11094_v55 = vld [vmem:[#allocation11 + $0xab8] sm:$0xff]  }
 0x427   : > { %9888 = vmatpush3.bf16.msra.mxu1 %v11054_v8  ;;  %v11981_v8 = vshrl.u32 %v11965_v46, 16 }
 0x428   : > { %9889 = vmatprep.subr.bf16.mxu1 %v11056_v20  ;;  %v11096_v20 = vld [vmem:[#allocation11 + $0xaf0] sm:$0xff]  }
 0x429   : > { %9954 = vmatpush3.bf16.msra.mxu0 %v11057_v40  ;;  %v6534_v40 = vrot.slane %v11950_v49, 1 }
 0x42a   : > { %9955 = vmatprep.subr.bf16.mxu0 %v11059_v1  ;;  %v11097_v1 = vld [vmem:[#allocation11 + $0xc38] sm:$0xff]  }
 0x42b   : > { %9890 = vmatpush3.bf16.msra.mxu1 %v11058_v42 }
 0x42c   : > { %9919 = vmatprep.subr.bf16.mxu1 %v11060_v62  ;;  %v11099_v62 = vld [vmem:[#allocation11 + $0xc70] sm:$0xff]  }
 0x42d   : > { %9956 = vmatpush3.bf16.msra.mxu0 %v11061_v0  ;;  %v7224_v0 = vrot.slane %v11928_v63, 2 }
 0x42e   : > { %v9627_v19 = vpop.f32.mrf.mxu1  ;;  %6100 = vmatmul.mubr.bf16.vlgmr.msra.gmra.mxu1 %v11965_v46  ;;  %9985 = vmatprep.subr.bf16.mxu0 %v11063_v2  ;;  %v11098_v2 = vld [vmem:[#allocation11 + $0xab0] sm:$0xff]  }
 0x42f   : > { %9920 = vmatpush3.bf16.msra.mxu1 %v11062_v44  ;;  %6453 = vmatprep.mubr.bf16.mxu1 %v11968_v50 }
 0x430   : > { %v9628_v58 = vpop.f32.mrf.mxu1  ;;  %v9693_v25 = vpop.f32.mrf.mxu0  ;;  %6764 = vmatmul.mubr.bf16.vlgmr.msra.gmra.mxu0 %v6531_v45  ;;  %9921 = vmatprep.subr.bf16.mxu1 %v11064_v48  ;;  %v11101_v45 = vld [vmem:[#allocation11 + $0xc30] sm:$0xff]  }
 0x431   : > { %v9629_v36 = vadd.f32 %v9628_v58, %v9627_v19  ;;  %9986 = vmatpush3.bf16.msra.mxu0 %v11065_v4  ;;  %7109 = vmatprep.mubr.bf16.mxu0 %v6878_v5  ;;  %v11100_v4 = vld [vmem:[#allocation11 + $0xae8] sm:$0xff]  }
 0x432   : > { %v9630_v9 = vpop.f32.mrf.mxu1  ;;  %v9694_v11 = vpop.f32.mrf.mxu0  ;;  %9987 = vmatprep.subr.bf16.mxu0 %v11067_v34 }
 0x433   : > { %v4030_v13 = vadd.f32 %v9629_v36, %v11946_v35  ;;  %v11975_v16 = vadd.f32 %v9694_v11, %v9693_v25  ;;  %9922 = vmatpush3.bf16.msra.mxu1 %v11066_v26  ;;  %v11076_v35 = vld [vmem:[#allocation11 + $0x9d8] sm:$0xff]   ;;  %v11103_v26 = vld [vmem:[#allocation11 + $0xc68] sm:$0xff]   ;;  %v11104_v9 = vld [vmem:[#allocation11 + $0xae0] sm:$0xff]  }
 0x434   : > { %v9631_v47 = vpop.f32.mrf.mxu1  ;;  %v9696_v41 = vpop.f32.mrf.mxu0  ;;  %9923 = vmatprep.subr.bf16.mxu1 %v11068_v6  ;;  %v11102_v6 = vld [vmem:[#allocation11 + $0xaa8] sm:$0xff]  }
 0x435   : > { %v11978_v18 = vadd.f32 %v4030_v13, %v11962_v30  ;;  %9988 = vmatpush3.bf16.msra.mxu0 %v11069_v57  ;;  %v11081_v30 = vld [vmem:[#allocation11 + $0xb18] sm:$0xff]   ;;  %v11106_v47 = vld [vmem:[#allocation11 + $0xaa0] sm:$0xff]  }
 0x436   : > { %v9697_v24 = vpop.f32.mrf.mxu0  ;;  %9989 = vmatprep.subr.bf16.mxu0 %v11071_v15  ;;  %v11105_v15 = vld [vmem:[#allocation11 + $0xc28] sm:$0xff]   ;;  %v11109_v41 = vld [vmem:[#allocation11 + $0xc20] sm:$0xff]  }
 0x437   : > { %9924 = vmatpush3.bf16.msra.mxu1 %v11070_v12  ;;  %v11107_v12 = vld [vmem:[#allocation11 + $0xc60] sm:$0xff]   ;;  %v11112_v24 = vld [vmem:[#allocation11 + $0xad0] sm:$0xff]  }
 0x438   : > { %9925 = vmatprep.subr.bf16.mxu1 %v11072_v17  ;;  %v11111_v17 = vld [vmem:[#allocation11 + $0xc58] sm:$0xff]  }
 0x439   : > { %9990 = vmatpush3.bf16.msra.mxu0 %v11073_v23  ;;  %v11110_v23 = vld [vmem:[#allocation11 + $0xa98] sm:$0xff]  }
 0x43a   : > { %9991 = vmatprep.subr.bf16.mxu0 %v11075_v27  ;;  %v11115_v27 = vld [vmem:[#allocation11 + $0xc50] sm:$0xff]  }
 0x43b   : > { %9926 = vmatpush3.bf16.msra.mxu1 %v11074_v60  ;;  %v11114_v60 = vld [vmem:[#allocation11 + $0xa90] sm:$0xff]  }
 0x43c   : > { %9927 = vmatprep.subr.bf16.mxu1 %v11076_v35  ;;  %v11116_v35 = vld [vmem:[#allocation11 + $0xac8] sm:$0xff]  }
 0x43d   : > { %9992 = vmatpush3.bf16.msra.mxu0 %v11077_v28  ;;  %v11117_v28 = vld [vmem:[#allocation11 + $0xc10] sm:$0xff]  }
 0x43e   : > { %9993 = vmatprep.subr.bf16.mxu0 %v11079_v31  ;;  %v11119_v31 = vld [vmem:[#allocation11 + $0xc48] sm:$0xff]  }
 0x43f   : > { %9928 = vmatpush3.bf16.msra.mxu1 %v11078_v29  ;;  %v11118_v29 = vld [vmem:[#allocation11 + $0xa88] sm:$0xff]  }
 0x440   : > { %9929 = vmatprep.subr.bf16.mxu1 %v11080_v10  ;;  %v11120_v10 = vld [vmem:[#allocation11 + $0xac0] sm:$0xff]  }
 0x441   : > { %9994 = vmatpush3.bf16.msra.mxu0 %v11081_v30  ;;  %v11121_v30 = vld [vmem:[#allocation11 + $0xc08] sm:$0xff]  }
 0x442   : > { %9995 = vmatprep.subr.bf16.mxu0 %v11083_v32  ;;  %v11123_v32 = vld [vmem:[#allocation11 + $0xc40] sm:$0xff]  }
 0x443   : > { %9930 = vmatpush3.bf16.msra.mxu1 %v11082_v14  ;;  %v11122_v14 = vld [vmem:[#allocation11 + $0xa80] sm:$0xff]  }
 0x444   : > { %9931 = vmatprep.subr.bf16.mxu1 %v11084_v59  ;;  %v11124_v59 = vld [vmem:[#allocation11 + $0xbf8] sm:$0xff]  }
 0x445   : > { %9996 = vmatpush3.bf16.msra.mxu0 %v11085_v33  ;;  %v11125_v33 = vld [vmem:[#allocation11 + $0xc00] sm:$0xff]  }
 0x446   : > { %9997 = vmatprep.subr.bf16.mxu0 %v11087_v39  ;;  %v11127_v39 = vld [vmem:[#allocation11 + $0xd78] sm:$0xff]  }
 0x447   : > { %9932 = vmatpush3.bf16.msra.mxu1 %v11086_v61  ;;  %v11126_v61 = vld [vmem:[#allocation11 + $0xbb8] sm:$0xff]  }
 0x448   : > { %9933 = vmatprep.subr.bf16.mxu1 %v11088_v56  ;;  %v6533_v56 = vrot.slane %v11965_v46, 1 }
 0x449   : > { %9998 = vmatpush3.bf16.msra.mxu0 %v11089_v22  ;;  %v11128_v22 = vld [vmem:[#allocation11 + $0xbf0] sm:$0xff]  }
 0x44a   : > { %9999 = vmatprep.subr.bf16.mxu0 %v11091_v53  ;;  %v6880_v53 = vrot.slane %v11968_v50, 1 }
 0x44b   : > { %9934 = vmatpush3.bf16.msra.mxu1 %v11090_v3  ;;  %v11129_v3 = vld [vmem:[#allocation11 + $0xd38] sm:$0xff]  }
 0x44c   : > { %9963 = vmatprep.subr.bf16.mxu1 %v11092_v37 }
 0x44d   : > { %10000 = vmatpush3.bf16.msra.mxu0 %v11093_v38  ;;  %v7223_v38 = vrot.slane %v11936_v21, 2 }
 0x44e   : > { %v9671_v42 = vpop.f32.mrf.mxu1  ;;  %6454 = vmatmul.mubr.bf16.vlgmr.msra.gmra.mxu1 %v11981_v8  ;;  %10029 = vmatprep.subr.bf16.mxu0 %v11095_v54  ;;  %v11131_v54 = vld [vmem:[#allocation11 + $0xd70] sm:$0xff]  }
 0x44f   : > { %9964 = vmatpush3.bf16.msra.mxu1 %v11094_v55  ;;  %6803 = vmatprep.mubr.bf16.mxu1 %v6534_v40  ;;  %v7570_v55 = vrot.slane %v11939_v51, 2 }
 0x450   : > { %v9672_v44 = vpop.f32.mrf.mxu1  ;;  %v9737_v48 = vpop.f32.mrf.mxu0  ;;  %7110 = vmatmul.mubr.bf16.vlgmr.msra.gmra.mxu0 %v6877_v43  ;;  %9965 = vmatprep.subr.bf16.mxu1 %v11096_v20  ;;  %v11130_v20 = vld [vmem:[#allocation11 + $0xbb0] sm:$0xff]  }
 0x451   : > { %v9673_v19 = vadd.f32 %v9672_v44, %v9671_v42  ;;  %10030 = vmatpush3.bf16.msra.mxu0 %v11097_v1  ;;  %7455 = vmatprep.mubr.bf16.mxu0 %v7224_v0  ;;  %v11132_v42 = vld [vmem:[#allocation11 + $0xbe8] sm:$0xff]  }
 0x452   : > { %v9674_v34 = vpop.f32.mrf.mxu1  ;;  %v9738_v5 = vpop.f32.mrf.mxu0  ;;  %10031 = vmatprep.subr.bf16.mxu0 %v11099_v62  ;;  %v11133_v62 = vld [vmem:[#allocation11 + $0xd30] sm:$0xff]   ;;  %v11135_v44 = vld [vmem:[#allocation11 + $0xd68] sm:$0xff]  }
 0x453   : > { %v4376_v58 = vadd.f32 %v9673_v19, %v11960_v52  ;;  %v11988_v25 = vadd.f32 %v9738_v5, %v9737_v48  ;;  %9966 = vmatpush3.bf16.msra.mxu1 %v11098_v2  ;;  %v11108_v52 = vld [vmem:[#allocation11 + $0xad8] sm:$0xff]   ;;  %v11134_v19 = vld [vmem:[#allocation11 + $0xba8] sm:$0xff]   ;;  %v11136_v5 = vld [vmem:[#allocation11 + $0xbe0] sm:$0xff]  }
 0x454   : > { %v9675_v36 = vpop.f32.mrf.mxu1  ;;  %v9740_v57 = vpop.f32.mrf.mxu0  ;;  %9967 = vmatprep.subr.bf16.mxu1 %v11100_v4 }
 0x455   : > { %v11991_v11 = vadd.f32 %v4376_v58, %v11978_v18  ;;  %10032 = vmatpush3.bf16.msra.mxu0 %v11101_v45  ;;  %v11113_v18 = vld [vmem:[#allocation11 + $0xc18] sm:$0xff]   ;;  %v11137_v58 = vld [vmem:[#allocation11 + $0xd28] sm:$0xff]   ;;  %v11139_v36 = vld [vmem:[#allocation11 + $0xd60] sm:$0xff]  }
 0x456   : > { %v9741_v13 = vpop.f32.mrf.mxu0  ;;  %10033 = vmatprep.subr.bf16.mxu0 %v11103_v26  ;;  %v11138_v57 = vld [vmem:[#allocation11 + $0xba0] sm:$0xff]  }
 0x457   : > { %9968 = vmatpush3.bf16.msra.mxu1 %v11102_v6  ;;  %v11142_v13 = vld [vmem:[#allocation11 + $0xb98] sm:$0xff]  }
 0x458   : > { %9969 = vmatprep.subr.bf16.mxu1 %v11104_v9  ;;  %v11141_v9 = vld [vmem:[#allocation11 + $0xd20] sm:$0xff]  }
 0x459   : > { %10034 = vmatpush3.bf16.msra.mxu0 %v11105_v15  ;;  %v11143_v15 = vld [vmem:[#allocation11 + $0xd58] sm:$0xff]  }
 0x45a   : > { %10035 = vmatprep.subr.bf16.mxu0 %v11107_v12  ;;  %v11144_v12 = vld [vmem:[#allocation11 + $0xbd0] sm:$0xff]  }
 0x45b   : > { %9970 = vmatpush3.bf16.msra.mxu1 %v11106_v47  ;;  %v11147_v47 = vld [vmem:[#allocation11 + $0xd50] sm:$0xff]  }
 0x45c   : > { %9971 = vmatprep.subr.bf16.mxu1 %v11108_v52  ;;  %v11146_v52 = vld [vmem:[#allocation11 + $0xb90] sm:$0xff]  }
 0x45d   : > { %10036 = vmatpush3.bf16.msra.mxu0 %v11109_v41  ;;  %v11148_v41 = vld [vmem:[#allocation11 + $0xbc8] sm:$0xff]  }
 0x45e   : > { %10037 = vmatprep.subr.bf16.mxu0 %v11111_v17  ;;  %v11149_v17 = vld [vmem:[#allocation11 + $0xd10] sm:$0xff]  }
 0x45f   : > { %9972 = vmatpush3.bf16.msra.mxu1 %v11110_v23  ;;  %v11151_v23 = vld [vmem:[#allocation11 + $0xd48] sm:$0xff]  }
 0x460   : > { %9973 = vmatprep.subr.bf16.mxu1 %v11112_v24  ;;  %v11150_v24 = vld [vmem:[#allocation11 + $0xb88] sm:$0xff]  }
 0x461   : > { %10038 = vmatpush3.bf16.msra.mxu0 %v11113_v18  ;;  %v11152_v18 = vld [vmem:[#allocation11 + $0xbc0] sm:$0xff]  }
 0x462   : > { %10039 = vmatprep.subr.bf16.mxu0 %v11115_v27  ;;  %v11153_v27 = vld [vmem:[#allocation11 + $0xd08] sm:$0xff]  }
 0x463   : > { %9974 = vmatpush3.bf16.msra.mxu1 %v11114_v60  ;;  %v11155_v60 = vld [vmem:[#allocation11 + $0xd40] sm:$0xff]  }
 0x464   : > { %9975 = vmatprep.subr.bf16.mxu1 %v11116_v35  ;;  %v11154_v35 = vld [vmem:[#allocation11 + $0xb80] sm:$0xff]  }
 0x465   : > { %10040 = vmatpush3.bf16.msra.mxu0 %v11117_v28  ;;  %v11156_v28 = vld [vmem:[#allocation11 + $0xcf8] sm:$0xff]  }
 0x466   : > { %10041 = vmatprep.subr.bf16.mxu0 %v11119_v31  ;;  %v11157_v31 = vld [vmem:[#allocation11 + $0xd00] sm:$0xff]  }
 0x467   : > { %9976 = vmatpush3.bf16.msra.mxu1 %v11118_v29  ;;  %v11159_v29 = vld [vmem:[#allocation11 + $0xe78] sm:$0xff]  }
 0x468   : > { %9977 = vmatprep.subr.bf16.mxu1 %v11120_v10  ;;  %v11158_v10 = vld [vmem:[#allocation11 + $0xcb8] sm:$0xff]  }
 0x469   : > { %10042 = vmatpush3.bf16.msra.mxu0 %v11121_v30  ;;  %v6879_v30 = vrot.slane %v11981_v8, 1 }
 0x46a   : > { %10043 = vmatprep.subr.bf16.mxu0 %v11123_v32  ;;  %v11160_v32 = vld [vmem:[#allocation11 + $0xcf0] sm:$0xff]  }
 0x46b   : > { %9978 = vmatpush3.bf16.msra.mxu1 %v11122_v14  ;;  %v7226_v14 = vrot.slane %v11950_v49, 2 }
 0x46c   : > { %10007 = vmatprep.subr.bf16.mxu1 %v11124_v59  ;;  %v11161_v59 = vld [vmem:[#allocation11 + $0xe38] sm:$0xff]  }
 0x46d   : > { %10044 = vmatpush3.bf16.msra.mxu0 %v11125_v33 }
 0x46e   : > { %v9715_v37 = vpop.f32.mrf.mxu1  ;;  %6804 = vmatmul.mubr.bf16.vlgmr.msra.gmra.mxu1 %v6533_v56  ;;  %10073 = vmatprep.subr.bf16.mxu0 %v11127_v39  ;;  %v7569_v39 = vrot.slane %v11953_v7, 2  ;;  %v7916_v56 = vrot.slane %v11928_v63, 3  ;;  %v11166_v63 = vld [vmem:[#allocation11 + $0xca8] sm:$0xff]  }
 0x46f   : > { %10008 = vmatpush3.bf16.msra.mxu1 %v11126_v61  ;;  %7149 = vmatprep.mubr.bf16.mxu1 %v6880_v53  ;;  %v11163_v61 = vld [vmem:[#allocation11 + $0xe70] sm:$0xff]  }
 0x470   : > { %v9716_v40 = vpop.f32.mrf.mxu1  ;;  %v9781_v1 = vpop.f32.mrf.mxu0  ;;  %7456 = vmatmul.mubr.bf16.vlgmr.msra.gmra.mxu0 %v7223_v38  ;;  %10009 = vmatprep.subr.bf16.mxu1 %v11128_v22  ;;  %v11162_v22 = vld [vmem:[#allocation11 + $0xcb0] sm:$0xff]  }
 0x471   : > { %v9717_v43 = vadd.f32 %v9716_v40, %v9715_v37  ;;  %10074 = vmatpush3.bf16.msra.mxu0 %v11129_v3  ;;  %7801 = vmatprep.mubr.bf16.mxu0 %v7570_v55  ;;  %v11164_v37 = vld [vmem:[#allocation11 + $0xce8] sm:$0xff]  }
 0x472   : > { %v9718_v0 = vpop.f32.mrf.mxu1  ;;  %v9782_v2 = vpop.f32.mrf.mxu0  ;;  %10075 = vmatprep.subr.bf16.mxu0 %v11131_v54  ;;  %v11165_v54 = vld [vmem:[#allocation11 + $0xe30] sm:$0xff]   ;;  %v11167_v40 = vld [vmem:[#allocation11 + $0xe68] sm:$0xff]  }
 0x473   : > { %v4722_v48 = vadd.f32 %v9717_v43, %v11975_v16  ;;  %v11998_v4 = vadd.f32 %v9782_v2, %v9781_v1  ;;  %10010 = vmatpush3.bf16.msra.mxu1 %v11130_v20  ;;  %v11140_v16 = vld [vmem:[#allocation11 + $0xbd8] sm:$0xff]   ;;  %v11168_v0 = vld [vmem:[#allocation11 + $0xce0] sm:$0xff]  }
 0x474   : > { %v9719_v45 = vpop.f32.mrf.mxu1  ;;  %v9784_v34 = vpop.f32.mrf.mxu0  ;;  %10011 = vmatprep.subr.bf16.mxu1 %v11132_v42 }
 0x475   : > { %v12001_v26 = vadd.f32 %v4722_v48, %v11991_v11  ;;  %10076 = vmatpush3.bf16.msra.mxu0 %v11133_v62  ;;  %v11145_v11 = vld [vmem:[#allocation11 + $0xd18] sm:$0xff]   ;;  %v11170_v45 = vld [vmem:[#allocation11 + $0xca0] sm:$0xff]  }
 0x476   : > { %v9785_v6 = vpop.f32.mrf.mxu0  ;;  %10077 = vmatprep.subr.bf16.mxu0 %v11135_v44  ;;  %v11169_v44 = vld [vmem:[#allocation11 + $0xe28] sm:$0xff]   ;;  %v11173_v34 = vld [vmem:[#allocation11 + $0xe20] sm:$0xff]  }
 0x477   : > { %10012 = vmatpush3.bf16.msra.mxu1 %v11134_v19  ;;  %v11171_v19 = vld [vmem:[#allocation11 + $0xe60] sm:$0xff]   ;;  %v11176_v6 = vld [vmem:[#allocation11 + $0xcd0] sm:$0xff]  }
 0x478   : > { %10013 = vmatprep.subr.bf16.mxu1 %v11136_v5  ;;  %v11175_v5 = vld [vmem:[#allocation11 + $0xe58] sm:$0xff]  }
 0x479   : > { %10078 = vmatpush3.bf16.msra.mxu0 %v11137_v58  ;;  %v11174_v58 = vld [vmem:[#allocation11 + $0xc98] sm:$0xff]  }
 0x47a   : > { %10079 = vmatprep.subr.bf16.mxu0 %v11139_v36  ;;  %v11179_v36 = vld [vmem:[#allocation11 + $0xe50] sm:$0xff]  }
 0x47b   : > { %10014 = vmatpush3.bf16.msra.mxu1 %v11138_v57  ;;  %v11178_v57 = vld [vmem:[#allocation11 + $0xc90] sm:$0xff]  }
 0x47c   : > { %10015 = vmatprep.subr.bf16.mxu1 %v11140_v16  ;;  %v11180_v16 = vld [vmem:[#allocation11 + $0xcc8] sm:$0xff]  }
 0x47d   : > { %10080 = vmatpush3.bf16.msra.mxu0 %v11141_v9  ;;  %v11181_v9 = vld [vmem:[#allocation11 + $0xe10] sm:$0xff]  }
 0x47e   : > { %10081 = vmatprep.subr.bf16.mxu0 %v11143_v15  ;;  %v11183_v15 = vld [vmem:[#allocation11 + $0xe48] sm:$0xff]  }
 0x47f   : > { %10016 = vmatpush3.bf16.msra.mxu1 %v11142_v13  ;;  %v11182_v13 = vld [vmem:[#allocation11 + $0xc88] sm:$0xff]  }
 0x480   : > { %10017 = vmatprep.subr.bf16.mxu1 %v11144_v12  ;;  %v11184_v12 = vld [vmem:[#allocation11 + $0xcc0] sm:$0xff]  }
 0x481   : > { %10082 = vmatpush3.bf16.msra.mxu0 %v11145_v11  ;;  %v11185_v11 = vld [vmem:[#allocation11 + $0xe08] sm:$0xff]  }
 0x482   : > { %10083 = vmatprep.subr.bf16.mxu0 %v11147_v47  ;;  %v11187_v47 = vld [vmem:[#allocation11 + $0xe40] sm:$0xff]  }
 0x483   : > { %10018 = vmatpush3.bf16.msra.mxu1 %v11146_v52  ;;  %v11186_v52 = vld [vmem:[#allocation11 + $0xc80] sm:$0xff]  }
 0x484   : > { %10019 = vmatprep.subr.bf16.mxu1 %v11148_v41  ;;  %v11188_v41 = vld [vmem:[#allocation11 + $0xdf8] sm:$0xff]  }
 0x485   : > { %10084 = vmatpush3.bf16.msra.mxu0 %v11149_v17  ;;  %v11189_v17 = vld [vmem:[#allocation11 + $0xe00] sm:$0xff]  }
 0x486   : > { %10085 = vmatprep.subr.bf16.mxu0 %v11151_v23  ;;  %v11191_v23 = vld [vmem:[#allocation11 + $0xf78] sm:$0xff]  }
 0x487   : > { %10020 = vmatpush3.bf16.msra.mxu1 %v11150_v24  ;;  %v11190_v24 = vld [vmem:[#allocation11 + $0xdb8] sm:$0xff]  }
 0x488   : > { %10021 = vmatprep.subr.bf16.mxu1 %v11152_v18  ;;  %v7225_v18 = vrot.slane %v11965_v46, 2 }
 0x489   : > { %10086 = vmatpush3.bf16.msra.mxu0 %v11153_v27  ;;  %v11192_v27 = vld [vmem:[#allocation11 + $0xdf0] sm:$0xff]  }
 0x48a   : > { %10087 = vmatprep.subr.bf16.mxu0 %v11155_v60  ;;  %v7572_v60 = vrot.slane %v11968_v50, 2 }
 0x48b   : > { %10022 = vmatpush3.bf16.msra.mxu1 %v11154_v35  ;;  %v11193_v35 = vld [vmem:[#allocation11 + $0xf38] sm:$0xff]  }
 0x48c   : > { %10051 = vmatprep.subr.bf16.mxu1 %v11156_v28 }
 0x48d   : > { %10088 = vmatpush3.bf16.msra.mxu0 %v11157_v31  ;;  %v7915_v31 = vrot.slane %v11936_v21, 3  ;;  %v11199_v21 = vld [vmem:[#allocation11 + $0xf68] sm:$0xff]  }
 0x48e   : > { %v9759_v33 = vpop.f32.mrf.mxu1  ;;  %7150 = vmatmul.mubr.bf16.vlgmr.msra.gmra.mxu1 %v6879_v30  ;;  %10117 = vmatprep.subr.bf16.mxu0 %v11159_v29  ;;  %v11195_v29 = vld [vmem:[#allocation11 + $0xf70] sm:$0xff]  }
 0x48f   : > { %10052 = vmatpush3.bf16.msra.mxu1 %v11158_v10  ;;  %7495 = vmatprep.mubr.bf16.mxu1 %v7226_v14  ;;  %v8262_v10 = vrot.slane %v11939_v51, 3  ;;  %v11194_v30 = vld [vmem:[#allocation11 + $0xdb0] sm:$0xff]   ;;  %v11198_v51 = vld [vmem:[#allocation11 + $0xda8] sm:$0xff]  }
 0x490   : > { %v9760_v53 = vpop.f32.mrf.mxu1  ;;  %v9825_v3 = vpop.f32.mrf.mxu0  ;;  %7802 = vmatmul.mubr.bf16.vlgmr.msra.gmra.mxu0 %v7569_v39  ;;  %10053 = vmatprep.subr.bf16.mxu1 %v11160_v32  ;;  %v11197_v39 = vld [vmem:[#allocation11 + $0xf30] sm:$0xff]  }
 0x491   : > { %v9761_v38 = vadd.f32 %v9760_v53, %v9759_v33  ;;  %10118 = vmatpush3.bf16.msra.mxu0 %v11161_v59  ;;  %8147 = vmatprep.mubr.bf16.mxu0 %v7916_v56  ;;  %v11196_v59 = vld [vmem:[#allocation11 + $0xde8] sm:$0xff]  }
 0x492   : > { %v9762_v55 = vpop.f32.mrf.mxu1  ;;  %v9826_v20 = vpop.f32.mrf.mxu0  ;;  %10119 = vmatprep.subr.bf16.mxu0 %v11163_v61 }
 0x493   : > { %v5068_v1 = vadd.f32 %v9761_v38, %v11988_v25  ;;  %v12008_v42 = vadd.f32 %v9826_v20, %v9825_v3  ;;  %10054 = vmatpush3.bf16.msra.mxu1 %v11162_v22  ;;  %v11172_v25 = vld [vmem:[#allocation11 + $0xcd8] sm:$0xff]   ;;  %v11200_v38 = vld [vmem:[#allocation11 + $0xde0] sm:$0xff]   ;;  %v11201_v55 = vld [vmem:[#allocation11 + $0xf28] sm:$0xff]  }
 0x494   : > { %v9763_v43 = vpop.f32.mrf.mxu1  ;;  %v9828_v62 = vpop.f32.mrf.mxu0  ;;  %10055 = vmatprep.subr.bf16.mxu1 %v11164_v37 }
 0x495   : > { %v12011_v2 = vadd.f32 %v5068_v1, %v12001_v26  ;;  %10120 = vmatpush3.bf16.msra.mxu0 %v11165_v54  ;;  %v11177_v26 = vld [vmem:[#allocation11 + $0xe18] sm:$0xff]   ;;  %v11202_v1 = vld [vmem:[#allocation11 + $0xda0] sm:$0xff]  }
 0x496   : > { %v9829_v48 = vpop.f32.mrf.mxu0  ;;  %10121 = vmatprep.subr.bf16.mxu0 %v11167_v40  ;;  %v11203_v40 = vld [vmem:[#allocation11 + $0xf60] sm:$0xff]   ;;  %v11207_v43 = vld [vmem:[#allocation11 + $0xf58] sm:$0xff]  }
 0x497   : > { %10056 = vmatpush3.bf16.msra.mxu1 %v11166_v63  ;;  %v11205_v63 = vld [vmem:[#allocation11 + $0xf20] sm:$0xff]   ;;  %v11206_v62 = vld [vmem:[#allocation11 + $0xd98] sm:$0xff]   ;;  %v11210_v48 = vld [vmem:[#allocation11 + $0xd90] sm:$0xff]  }
 0x498   : > { %10057 = vmatprep.subr.bf16.mxu1 %v11168_v0  ;;  %v11208_v0 = vld [vmem:[#allocation11 + $0xdd0] sm:$0xff]  }
 0x499   : > { %10122 = vmatpush3.bf16.msra.mxu0 %v11169_v44  ;;  %v11211_v44 = vld [vmem:[#allocation11 + $0xf50] sm:$0xff]  }
 0x49a   : > { %10123 = vmatprep.subr.bf16.mxu0 %v11171_v19  ;;  %v11212_v19 = vld [vmem:[#allocation11 + $0xdc8] sm:$0xff]  }
 0x49b   : > { %10058 = vmatpush3.bf16.msra.mxu1 %v11170_v45  ;;  %v11213_v45 = vld [vmem:[#allocation11 + $0xf10] sm:$0xff]  }
 0x49c   : > { %10059 = vmatprep.subr.bf16.mxu1 %v11172_v25  ;;  %v11215_v25 = vld [vmem:[#allocation11 + $0xf48] sm:$0xff]  }
 0x49d   : > { %10124 = vmatpush3.bf16.msra.mxu0 %v11173_v34  ;;  %v11214_v34 = vld [vmem:[#allocation11 + $0xd88] sm:$0xff]  }
 0x49e   : > { %10125 = vmatprep.subr.bf16.mxu0 %v11175_v5  ;;  %v11216_v5 = vld [vmem:[#allocation11 + $0xdc0] sm:$0xff]  }
 0x49f   : > { %10060 = vmatpush3.bf16.msra.mxu1 %v11174_v58  ;;  %v11217_v58 = vld [vmem:[#allocation11 + $0xf08] sm:$0xff]  }
 0x4a0   : > { %10061 = vmatprep.subr.bf16.mxu1 %v11176_v6  ;;  %v11219_v6 = vld [vmem:[#allocation11 + $0xf40] sm:$0xff]  }
 0x4a1   : > { %10126 = vmatpush3.bf16.msra.mxu0 %v11177_v26  ;;  %v11218_v26 = vld [vmem:[#allocation11 + $0xd80] sm:$0xff]  }
 0x4a2   : > { %10127 = vmatprep.subr.bf16.mxu0 %v11179_v36  ;;  %v11220_v36 = vld [vmem:[#allocation11 + $0xef8] sm:$0xff]  }
 0x4a3   : > { %10062 = vmatpush3.bf16.msra.mxu1 %v11178_v57  ;;  %v11221_v57 = vld [vmem:[#allocation11 + $0xf00] sm:$0xff]  }
 0x4a4   : > { %10063 = vmatprep.subr.bf16.mxu1 %v11180_v16  ;;  %v11222_v16 = vld [vmem:[#allocation11 + $0xeb8] sm:$0xff]  }
 0x4a5   : > { %10128 = vmatpush3.bf16.msra.mxu0 %v11181_v9  ;;  %v7571_v9 = vrot.slane %v11981_v8, 2 }
 0x4a6   : > { %10129 = vmatprep.subr.bf16.mxu0 %v11183_v15  ;;  %v11223_v15 = vld [vmem:[#allocation11 + $0xef0] sm:$0xff]  }
 0x4a7   : > { %10064 = vmatpush3.bf16.msra.mxu1 %v11182_v13  ;;  %v7918_v13 = vrot.slane %v11950_v49, 3  ;;  %v11226_v49 = vld [vmem:[#allocation11 + $0xea8] sm:$0xff]  }
 0x4a8   : > { %10065 = vmatprep.subr.bf16.mxu1 %v11184_v12 }
 0x4a9   : > { %10130 = vmatpush3.bf16.msra.mxu0 %v11185_v11  ;;  %v8261_v11 = vrot.slane %v11953_v7, 3  ;;  %v11227_v7 = vld [vmem:[#allocation11 + $0xee0] sm:$0xff]  }
 0x4aa   : > { %10131 = vmatprep.subr.bf16.mxu0 %v11187_v47  ;;  %v11224_v47 = vld [vmem:[#allocation11 + $0xeb0] sm:$0xff]  }
 0x4ab   : > { %10066 = vmatpush3.bf16.msra.mxu1 %v11186_v52 }
 0x4ac   : > { %10095 = vmatprep.subr.bf16.mxu1 %v11188_v41 }
 0x4ad   : > { %10132 = vmatpush3.bf16.msra.mxu0 %v11189_v17  ;;  %v11225_v17 = vld [vmem:[#allocation11 + $0xee8] sm:$0xff]  }
 0x4ae   : > { %v9803_v28 = vpop.f32.mrf.mxu1  ;;  %7496 = vmatmul.mubr.bf16.vlgmr.msra.gmra.mxu1 %v7225_v18  ;;  %10161 = vmatprep.subr.bf16.mxu0 %v11191_v23 }
 0x4af   : > { %10096 = vmatpush3.bf16.msra.mxu1 %v11190_v24  ;;  %7841 = vmatprep.mubr.bf16.mxu1 %v7572_v60 }
 0x4b0   : > { %v9804_v32 = vpop.f32.mrf.mxu1  ;;  %v9869_v14 = vpop.f32.mrf.mxu0  ;;  %8148 = vmatmul.mubr.bf16.vlgmr.msra.gmra.mxu0 %v7915_v31  ;;  %10097 = vmatprep.subr.bf16.mxu1 %v11192_v27 }
 0x4b1   : > { %v9805_v33 = vadd.f32 %v9804_v32, %v9803_v28  ;;  %10162 = vmatpush3.bf16.msra.mxu0 %v11193_v35  ;;  %8493 = vmatprep.mubr.bf16.mxu0 %v8262_v10  ;;  %v11228_v10 = vld [vmem:[#allocation11 + $0xea0] sm:$0xff]   ;;  %v11230_v32 = vld [vmem:[#allocation11 + $0xe98] sm:$0xff]  }
 0x4b2   : > { %v9806_v61 = vpop.f32.mrf.mxu1  ;;  %v9870_v56 = vpop.f32.mrf.mxu0  ;;  %10163 = vmatprep.subr.bf16.mxu0 %v11195_v29 }
 0x4b3   : > { %v5414_v22 = vadd.f32 %v9805_v33, %v11998_v4  ;;  %v12018_v53 = vadd.f32 %v9870_v56, %v9869_v14  ;;  %10098 = vmatpush3.bf16.msra.mxu1 %v11194_v30  ;;  %v11204_v4 = vld [vmem:[#allocation11 + $0xdd8] sm:$0xff]   ;;  %v11231_v14 = vld [vmem:[#allocation11 + $0xed0] sm:$0xff]   ;;  %v11234_v33 = vld [vmem:[#allocation11 + $0xe88] sm:$0xff]  }
 0x4b4   : > { %v9807_v3 = vpop.f32.mrf.mxu1  ;;  %v9872_v37 = vpop.f32.mrf.mxu0  ;;  %10099 = vmatprep.subr.bf16.mxu1 %v11196_v59  ;;  %v11229_v30 = vld [vmem:[#allocation11 + $0xed8] sm:$0xff]   ;;  %v11233_v59 = vld [vmem:[#allocation11 + $0xec8] sm:$0xff]   ;;  %v11236_v61 = vld [vmem:[#allocation11 + $0xe80] sm:$0xff]  }
 0x4b5   : > { %v12021_v54 = vadd.f32 %v5414_v22, %v12011_v2  ;;  %10164 = vmatpush3.bf16.msra.mxu0 %v11197_v39  ;;  %v11209_v2 = vld [vmem:[#allocation11 + $0xf18] sm:$0xff]   ;;  %v11235_v39 = vld [vmem:[#allocation11 + $0xec0] sm:$0xff]   ;;  %v7917_v22 = vrot.slane %v11965_v46, 3  ;;  %v8264_v3 = vrot.slane %v11968_v50, 3  ;;  %v11242_v46 = vld [vmem:[#allocation11 + $0xfa8] sm:$0xff]  }
 0x4b6   : > { %v9873_v20 = vpop.f32.mrf.mxu0  ;;  %10165 = vmatprep.subr.bf16.mxu0 %v11199_v21  ;;  %v11237_v56 = vld [vmem:[#allocation11 + $0xff8] sm:$0xff]   ;;  %v11243_v50 = vld [vmem:[#allocation11 + $0xfe0] sm:$0xff]  }
 0x4b7   : > { %10100 = vmatpush3.bf16.msra.mxu1 %v11198_v51  ;;  %v11238_v21 = vld [vmem:[#allocation11 + $0xfb8] sm:$0xff]   ;;  %v11239_v51 = vld [vmem:[#allocation11 + $0xff0] sm:$0xff]   ;;  %v11241_v20 = vld [vmem:[#allocation11 + $0xfe8] sm:$0xff]  }
 0x4b8   : > { %10101 = vmatprep.subr.bf16.mxu1 %v11200_v38  ;;  %v11240_v38 = vld [vmem:[#allocation11 + $0xfb0] sm:$0xff]  }
 0x4b9   : > { %10166 = vmatpush3.bf16.msra.mxu0 %v11201_v55 }
 0x4ba   : > { %10167 = vmatprep.subr.bf16.mxu0 %v11203_v40 }
 0x4bb   : > { %10102 = vmatpush3.bf16.msra.mxu1 %v11202_v1 }
 0x4bc   : > { %10103 = vmatprep.subr.bf16.mxu1 %v11204_v4 }
 0x4bd   : > { %10168 = vmatpush3.bf16.msra.mxu0 %v11205_v63 }
 0x4be   : > { %10169 = vmatprep.subr.bf16.mxu0 %v11207_v43 }
 0x4bf   : > { %10104 = vmatpush3.bf16.msra.mxu1 %v11206_v62 }
 0x4c0   : > { %10105 = vmatprep.subr.bf16.mxu1 %v11208_v0 }
 0x4c1   : > { %10170 = vmatpush3.bf16.msra.mxu0 %v11209_v2 }
 0x4c2   : > { %10171 = vmatprep.subr.bf16.mxu0 %v11211_v44 }
 0x4c3   : > { %10106 = vmatpush3.bf16.msra.mxu1 %v11210_v48  ;;  %v11244_v48 = vld [vmem:[#allocation11 + $0xfa0] sm:$0xff]  }
 0x4c4   : > { %10107 = vmatprep.subr.bf16.mxu1 %v11212_v19  ;;  %v11245_v19 = vld [vmem:[#allocation11 + $0xfd8] sm:$0xff]  }
 0x4c5   : > { %10172 = vmatpush3.bf16.msra.mxu0 %v11213_v45  ;;  %v11246_v45 = vld [vmem:[#allocation11 + $0xf98] sm:$0xff]  }
 0x4c6   : > { %10173 = vmatprep.subr.bf16.mxu0 %v11215_v25  ;;  %v11247_v25 = vld [vmem:[#allocation11 + $0xfd0] sm:$0xff]  }
 0x4c7   : > { %10108 = vmatpush3.bf16.msra.mxu1 %v11214_v34  ;;  %v11248_v34 = vld [vmem:[#allocation11 + $0xf90] sm:$0xff]  }
 0x4c8   : > { %10109 = vmatprep.subr.bf16.mxu1 %v11216_v5  ;;  %v11250_v5 = vld [vmem:[#allocation11 + $0xf88] sm:$0xff]  }
 0x4c9   : > { %10174 = vmatpush3.bf16.msra.mxu0 %v11217_v58  ;;  %v11251_v58 = vld [vmem:[#allocation11 + $0xfc0] sm:$0xff]  }
 0x4ca   : > { %10175 = vmatprep.subr.bf16.mxu0 %v11219_v6  ;;  %v11252_v6 = vld [vmem:[#allocation11 + $0xf80] sm:$0xff]  }
 0x4cb   : > { %10110 = vmatpush3.bf16.msra.mxu1 %v11218_v26  ;;  %v8263_v26 = vrot.slane %v11981_v8, 3 }
 0x4cc   : > { %10139 = vmatprep.subr.bf16.mxu1 %v11220_v36 }
 0x4cd   : > { %10176 = vmatpush3.bf16.msra.mxu0 %v11221_v57 }
 0x4ce   : > { %v9847_v12 = vpop.f32.mrf.mxu1  ;;  %7842 = vmatmul.mubr.bf16.vlgmr.msra.gmra.mxu1 %v7571_v9 }
 0x4cf   : > { %10140 = vmatpush3.bf16.msra.mxu1 %v11222_v16  ;;  %8187 = vmatprep.mubr.bf16.mxu1 %v7918_v13 }
 0x4d0   : > { %v9848_v52 = vpop.f32.mrf.mxu1  ;;  %v9913_v41 = vpop.f32.mrf.mxu0  ;;  %8494 = vmatmul.mubr.bf16.vlgmr.msra.gmra.mxu0 %v8261_v11  ;;  %10141 = vmatprep.subr.bf16.mxu1 %v11223_v15 }
 0x4d1   : > { %v9849_v23 = vadd.f32 %v9848_v52, %v9847_v12 }
 0x4d2   : > { %v9850_v24 = vpop.f32.mrf.mxu1  ;;  %v9914_v18 = vpop.f32.mrf.mxu0 }
 0x4d3   : > { %v5760_v27 = vadd.f32 %v9849_v23, %v12008_v42  ;;  %v12027_v60 = vadd.f32 %v9914_v18, %v9913_v41  ;;  %10142 = vmatpush3.bf16.msra.mxu1 %v11224_v47  ;;  %v11232_v42 = vld [vmem:[#allocation11 + $0xe90] sm:$0xff]  }
 0x4d4   : > { %v9851_v35 = vpop.f32.mrf.mxu1  ;;  %v9916_v28 = vpop.f32.mrf.mxu0  ;;  %10143 = vmatprep.subr.bf16.mxu1 %v11225_v17 }
 0x4d5   : > { %v5765_v31 = vadd.f32 %v5760_v27, %v12021_v54 }
 0x4d6   : > { %v9917_v29 = vpop.f32.mrf.mxu0 }
 0x4d7   : > { %10144 = vmatpush3.bf16.msra.mxu1 %v11226_v49 }
 0x4d8   : > { %10145 = vmatprep.subr.bf16.mxu1 %v11227_v7 }
 0x4db   : > { %10146 = vmatpush3.bf16.msra.mxu1 %v11228_v10 }
 0x4dc   : > { %10147 = vmatprep.subr.bf16.mxu1 %v11229_v30 }
 0x4df   : > { %10148 = vmatpush3.bf16.msra.mxu1 %v11230_v32 }
 0x4e0   : > { %10149 = vmatprep.subr.bf16.mxu1 %v11231_v14 }
 0x4e3   : > { %10150 = vmatpush3.bf16.msra.mxu1 %v11232_v42 }
 0x4e4   : > { %10151 = vmatprep.subr.bf16.mxu1 %v11233_v59 }
 0x4e7   : > { %10152 = vmatpush3.bf16.msra.mxu1 %v11234_v33 }
 0x4e8   : > { %10153 = vmatprep.subr.bf16.mxu1 %v11235_v39 }
 0x4eb   : > { %10154 = vmatpush3.bf16.msra.mxu1 %v11236_v61 }
 0x4ec   : > { %10183 = vmatprep.subr.bf16.mxu1 %v11237_v56 }
 0x4ee   : > { %v9891_v37 = vpop.f32.mrf.mxu1  ;;  %8188 = vmatmul.mubr.bf16.vlgmr.msra.gmra.mxu1 %v7917_v22 }
 0x4ef   : > { %10184 = vmatpush3.bf16.msra.mxu1 %v11238_v21  ;;  %8533 = vmatprep.mubr.bf16.mxu1 %v8264_v3 }
 0x4f0   : > { %v9892_v54 = vpop.f32.mrf.mxu1  ;;  %v9957_v55 = vpop.f32.mrf.mxu0  ;;  %10185 = vmatprep.subr.bf16.mxu1 %v11239_v51 }
 0x4f1   : > { %v9893_v40 = vadd.f32 %v9892_v54, %v9891_v37 }
 0x4f2   : > { %v9894_v1 = vpop.f32.mrf.mxu1  ;;  %v9958_v4 = vpop.f32.mrf.mxu0 }
 0x4f3   : > { %v6102_v63 = vadd.f32 %v9893_v40, %v12018_v53  ;;  %v9959_v43 = vadd.f32 %v9958_v4, %v9957_v55  ;;  %10186 = vmatpush3.bf16.msra.mxu1 %v11240_v38  ;;  %v11249_v53 = vld [vmem:[#allocation11 + $0xfc8] sm:$0xff]  }
 0x4f4   : > { %v9895_v62 = vpop.f32.mrf.mxu1  ;;  %v9960_v0 = vpop.f32.mrf.mxu0  ;;  %10187 = vmatprep.subr.bf16.mxu1 %v11241_v20 }
 0x4f5   : > { %v6107_v2 = vadd.f32 %v6102_v63, %v5765_v31 }
 0x4f6   : > { %v9961_v44 = vpop.f32.mrf.mxu0 }
 0x4f7   : > { %10188 = vmatpush3.bf16.msra.mxu1 %v11242_v46 }
 0x4f8   : > { %10189 = vmatprep.subr.bf16.mxu1 %v11243_v50 }
 0x4fb   : > { %10190 = vmatpush3.bf16.msra.mxu1 %v11244_v48 }
 0x4fc   : > { %10191 = vmatprep.subr.bf16.mxu1 %v11245_v19 }
 0x4ff   : > { %10192 = vmatpush3.bf16.msra.mxu1 %v11246_v45 }
 0x500   : > { %10193 = vmatprep.subr.bf16.mxu1 %v11247_v25 }
 0x503   : > { %10194 = vmatpush3.bf16.msra.mxu1 %v11248_v34 }
 0x504   : > { %10195 = vmatprep.subr.bf16.mxu1 %v11249_v53 }
 0x507   : > { %10196 = vmatpush3.bf16.msra.mxu1 %v11250_v5 }
 0x508   : > { %10197 = vmatprep.subr.bf16.mxu1 %v11251_v58 }
 0x50b   : > { %10198 = vmatpush3.bf16.msra.mxu1 %v11252_v6 }
 0x50e   : > { %v9935_v36 = vpop.f32.mrf.mxu1  ;;  %8534 = vmatmul.mubr.bf16.vlgmr.msra.gmra.mxu1 %v8263_v26 }
 0x510   : > { %v9936_v57 = vpop.f32.mrf.mxu1  ;;  %v10001_v16 = vpop.f32.mrf.mxu0 }
 0x511   : > { %v9937_v9 = vadd.f32 %v9936_v57, %v9935_v36 }
 0x512   : > { %v9938_v15 = vpop.f32.mrf.mxu1  ;;  %v10002_v13 = vpop.f32.mrf.mxu0 }
 0x513   : > { %v6456_v12 = vadd.f32 %v9937_v9, %v12027_v60  ;;  %v10003_v11 = vadd.f32 %v10002_v13, %v10001_v16 }
 0x514   : > { %v9939_v47 = vpop.f32.mrf.mxu1  ;;  %v10004_v52 = vpop.f32.mrf.mxu0 }
 0x515   : > { %v6461_v41 = vadd.f32 %v6456_v12, %v6107_v2 }
 0x516   : > { %v10005_v17 = vpop.f32.mrf.mxu0 }
 0x52e   : > { %v9979_v23 = vpop.f32.mrf.mxu1 }
 0x530   : > { %v9980_v24 = vpop.f32.mrf.mxu1  ;;  %v10045_v18 = vpop.f32.mrf.mxu0 }
 0x531   : > { %v9981_v27 = vadd.f32 %v9980_v24, %v9979_v23 }
 0x532   : > { %v9982_v49 = vpop.f32.mrf.mxu1  ;;  %v10046_v8 = vpop.f32.mrf.mxu0 }
 0x533   : > { %v6806_v35 = vadd.f32 %v9981_v27, %v9959_v43  ;;  %v10047_v28 = vadd.f32 %v10046_v8, %v10045_v18 }
 0x534   : > { %v9983_v7 = vpop.f32.mrf.mxu1  ;;  %v10048_v31 = vpop.f32.mrf.mxu0 }
 0x535   : > { %v6811_v29 = vadd.f32 %v6806_v35, %v6461_v41 }
 0x536   : > { %v10049_v10 = vpop.f32.mrf.mxu0 }
 0x54e   : > { %v10023_v30 = vpop.f32.mrf.mxu1 }
 0x550   : > { %v10024_v32 = vpop.f32.mrf.mxu1  ;;  %v10089_v60 = vpop.f32.mrf.mxu0 }
 0x551   : > { %v10025_v14 = vadd.f32 %v10024_v32, %v10023_v30 }
 0x552   : > { %v10026_v42 = vpop.f32.mrf.mxu1  ;;  %v10090_v59 = vpop.f32.mrf.mxu0 }
 0x553   : > { %v7152_v33 = vadd.f32 %v10025_v14, %v10003_v11  ;;  %v10091_v39 = vadd.f32 %v10090_v59, %v10089_v60 }
 0x554   : > { %v10027_v61 = vpop.f32.mrf.mxu1  ;;  %v10092_v56 = vpop.f32.mrf.mxu0 }
 0x555   : > { %v7157_v21 = vadd.f32 %v7152_v33, %v6811_v29 }
 0x556   : > { %v10093_v22 = vpop.f32.mrf.mxu0 }
 0x56e   : > { %v10067_v51 = vpop.f32.mrf.mxu1 }
 0x570   : > { %v10068_v3 = vpop.f32.mrf.mxu1  ;;  %v10133_v37 = vpop.f32.mrf.mxu0 }
 0x571   : > { %v10069_v38 = vadd.f32 %v10068_v3, %v10067_v51 }
 0x572   : > { %v10070_v54 = vpop.f32.mrf.mxu1  ;;  %v10134_v55 = vpop.f32.mrf.mxu0 }
 0x573   : > { %v7498_v20 = vadd.f32 %v10069_v38, %v10047_v28  ;;  %v10135_v40 = vadd.f32 %v10134_v55, %v10133_v37 }
 0x574   : > { %v10071_v1 = vpop.f32.mrf.mxu1  ;;  %v10136_v4 = vpop.f32.mrf.mxu0 }
 0x575   : > { %v7503_v63 = vadd.f32 %v7498_v20, %v7157_v21 }
 0x576   : > { %v10137_v43 = vpop.f32.mrf.mxu0 }
 0x58e   : > { %v10111_v46 = vpop.f32.mrf.mxu1 }
 0x590   : > { %v10112_v62 = vpop.f32.mrf.mxu1  ;;  %v10177_v0 = vpop.f32.mrf.mxu0 }
 0x591   : > { %v10113_v50 = vadd.f32 %v10112_v62, %v10111_v46 }
 0x592   : > { %v10114_v2 = vpop.f32.mrf.mxu1  ;;  %v10178_v44 = vpop.f32.mrf.mxu0 }
 0x593   : > { %v7844_v48 = vadd.f32 %v10113_v50, %v10091_v39  ;;  %v10179_v15 = vadd.f32 %v10178_v44, %v10177_v0 }
 0x594   : > { %v10115_v19 = vpop.f32.mrf.mxu1  ;;  %v10180_v45 = vpop.f32.mrf.mxu0 }
 0x595   : > { %v7849_v25 = vadd.f32 %v7844_v48, %v7503_v63 }
 0x596   : > { %v10181_v34 = vpop.f32.mrf.mxu0 }
 0x5ae   : > { %v10155_v53 = vpop.f32.mrf.mxu1 }
 0x5b0   : > { %v10156_v5 = vpop.f32.mrf.mxu1 }
 0x5b1   : > { %v10157_v58 = vadd.f32 %v10156_v5, %v10155_v53 }
 0x5b2   : > { %v10158_v6 = vpop.f32.mrf.mxu1 }
 0x5b3   : > { %v8190_v26 = vadd.f32 %v10157_v58, %v10135_v40 }
 0x5b4   : > { %v10159_v36 = vpop.f32.mrf.mxu1 }
 0x5b5   : > { %v8195_v57 = vadd.f32 %v8190_v26, %v7849_v25 }
 0x5ce   : > { %v10199_v16 = vpop.f32.mrf.mxu1 }
 0x5d0   : > { %v10200_v9 = vpop.f32.mrf.mxu1 }
 0x5d1   : > { %v10201_v13 = vadd.f32 %v10200_v9, %v10199_v16 }
 0x5d2   : > { %v10202_v12 = vpop.f32.mrf.mxu1 }
 0x5d3   : > { %v8536_v11 = vadd.f32 %v10201_v13, %v10179_v15 }
 0x5d4   : > { %v10203_v47 = vpop.f32.mrf.mxu1 }
 0x5d5   : > { %v8541_v52 = vadd.f32 %v8536_v11, %v8195_v57 }
 0x5d7   : > { %v8542_v41 = vmax.f32 %v8541_v52, 0.0 }
 0x5d9   : > { %8543 = vst [vmem:[%s352_s8] sm:$0x1] %v8542_v41 }
 0x5da   : > { %11422 = shalt.err (!%p11419_p6)
}
 0x5db   : > { %s11423_s21 = scalar_lea.hbm %s8555_s20, 16  ;;  %s11427_s17 = scalar_lea.hbm %s12076_s7, 32 }
 0x5dc   : > { %p11424_p10 = scmp.ne.s32.totalorder %s8555_s20, %s11423_s21  ;;  %p11428_p11 = scmp.lt.s32.totalorder %s8555_s20, %s12076_s7 }
 0x5dd   : > { %p11429_p0 = scmp.lt.s32.totalorder %s11427_s17, %s11423_s21 }
 0x5de   : > { %p11425_p8 = pnand %p11424_p10, %p12094_p3 }
 0x5df   : > { %p11430_p1 = por %p11429_p0, %p11428_p11 }
 0x5e0   : > { %p11426_p12 = pneg %p11425_p8 }
 0x5e2   : > { %p11431_p2 = pnand %p11430_p1, %p11426_p12 }
 0x5e4   : > { %11434 = shalt.err (!%p11431_p2)
}
 0x5e5   : > { %10272 = dma.vmem_to_hbm [thread:$0]  (%p12094_p3), %s8558_s14, 16, %s8555_s20, %s8545_s19  }
 0x5e6 PF: > { %p10309_p9 = scmp.ge.s32.totalorder %s11485_s27, 2  ;;  %s8569_s16 = sand.u32 1, %s11473_s24  }
 0x5e7   : > { %p12095_p4 = scmp.ne.s32.totalorder %s12081_s12, 0  ;;  %s8570_s15 = scalar_lea.sflag [#allocation5], %s8569_s16 }
 0x5e9   : > { %p10294_p7 = pnand %p10309_p9, %p12095_p4 }
 0x5eb   : > { %p10295_p5 = pneg %p10294_p7 }
 0x5ed   : > { %11468 = dma.done.wait (%p10295_p5), %s8570_s15, 16  }
 0x5ee   : > { %11470 = vsyncadd (%p10295_p5), %s8570_s15, 4294967280  ;;  %p21_p13 = scmp.ge.s32.totalorder %s11568_s30, 4   ;;  %s12096_s24 = smov %s11477_s25 }
 0x5ef   : > { %s12097_s25 = smov %s11481_s26  ;;  %s12098_s26 = smov %s11579_s10 }
 0x5f0   : > { %s12099_s27 = smov %s11568_s30  ;;  %23 = sbr.rel (!%p21_p13) target bundleno = 7 (0x7), region = 128 }
 0x5f5   :  { %8574 = vsyncpa [#allocation4], 1 }
 0x5f6   :  { %8576 = vsyncpa [#allocation4 + $0x1], 1 }
 0x5f7   :  { %8577 = vsyncpa [#allocation7], 1 }
 0x5f8   :  { %8578 = vsyncpa [#allocation10], 1 }
 0x5f9   :  { %8579 = vsyncpa [#allocation13], 1 }
 0x5fa   :  { %8580 = vsyncpa [#allocation5], 1 }
 0x5fb   :  { %8582 = vsyncpa [#allocation5 + $0x1], 1 }

</bundles_post_ra>
